<compile_context>
chip_gen: v7x
topology: tpu7x:2x2x1
jax: 0.10.0
libtpu: 0.0.40
codegen_flags: <defaults>
</compile_context>

<pallas_src>
import functools

import numpy as np
import jax
import jax.numpy as jnp
from jax.experimental import pallas as pl
from jax.experimental.pallas import tpu as pltpu


# ----------------------------------------------------------------------------
# Pallas kernels
# ----------------------------------------------------------------------------
def _conv_view_pool_kernel(x_ref, w_ref, view_ref, pool_ref, xpad_ref,
                           *, K, p, T, H, W):
    """One (sample, view) grid step: 'same' conv for one view + its global max.

    grid = (N, 3); v = program_id(1): 0 -> hw, 1 -> tw, 2 -> th.

    x_ref    : (1, T, H, W, Cin)  channels-last input (resident across v)
    w_ref    : (K*K, Cin, Cout)   per-tap weight matrices, bf16 (grid-resident)
    view_ref : (1, 1, S, Cout)    bf16 conv output for this (n, v), S = T*H*W
    pool_ref : (1, 1, 1, Cout)    f32 global max over S for this (n, v)
    xpad_ref : VMEM (T+2p, H+2p, W+2p, Cin) f32 staging buffer, halo on all axes
    """
    v = pl.program_id(1)
    Cin = x_ref.shape[-1]
    Cout = w_ref.shape[-1]
    S = T * H * W
    Tp, Hp, Wp = T + 2 * p, H + 2 * p, W + 2 * p

    # Stage the sample ONCE (first view of each n): zero only the 6 halo slabs
    # (the interior is overwritten), then copy the interior.  The staging
    # buffer persists across the three (sequential) view steps of this sample.
    @pl.when(v == 0)
    def _stage():
        xpad_ref[0:p, :, :, :] = jnp.zeros((p, Hp, Wp, Cin), jnp.float32)
        xpad_ref[p + T:Tp, :, :, :] = jnp.zeros((p, Hp, Wp, Cin), jnp.float32)
        xpad_ref[p:p + T, 0:p, :, :] = jnp.zeros((T, p, Wp, Cin), jnp.float32)
        xpad_ref[p:p + T, p + H:Hp, :, :] = jnp.zeros((T, p, Wp, Cin),
                                                      jnp.float32)
        xpad_ref[p:p + T, p:p + H, 0:p, :] = jnp.zeros((T, H, p, Cin),
                                                       jnp.float32)
        xpad_ref[p:p + T, p:p + H, p + W:Wp, :] = jnp.zeros((T, H, p, Cin),
                                                            jnp.float32)
        xpad_ref[p:p + T, p:p + H, p:p + W, :] = x_ref[0]

    def conv_one_view(offsets):
        # Tap-accumulation: K*K shifted (S, Cin) x (Cin, Cout) bf16 MXU matmuls
        # accumulated in f32 (no materialized im2col patch).  The accumulator
        # is value-carried (compiler keeps it in vregs/VMEM); the fused
        # AdaptiveMaxPool3d((1,1,1)) + bf16 store are the epilogue.
        acc = jnp.zeros((S, Cout), jnp.float32)
        for i in range(K):
            for j in range(K):
                ot, oh, ow = offsets(i, j)
                slab = xpad_ref[ot:ot + T, oh:oh + H, ow:ow + W, :]
                slab = slab.reshape(S, Cin).astype(jnp.bfloat16)
                acc = acc + jnp.dot(slab, w_ref[i * K + j],
                                    preferred_element_type=jnp.float32)
        view_ref[0, 0, :, :] = acc.astype(view_ref.dtype)
        pool_ref[0, 0, :, :] = jnp.max(acc, axis=0, keepdims=True)

    # One branch per view so every tap slice has STATIC offsets (aligned VMEM
    # loads, no dynamic sublane slicing); only the selected branch runs at
    # runtime (pl.when cold paths are skipped).
    # TODO(synk): for K > 3 drive the tap loop with lax.fori_loop(unroll=True).
    @pl.when(v == 0)
    def _hw():                                   # conv over (H, W)
        conv_one_view(lambda i, j: (p, i, j))

    @pl.when(v == 1)
    def _tw():                                   # conv over (T, W)
        conv_one_view(lambda i, j: (i, p, j))

    @pl.when(v == 2)
    def _th():                                   # conv over (T, H)
        conv_one_view(lambda i, j: (i, j, p))


def _combine_kernel(views_ref, alpha_ref, bias_ref, o_ref):
    """out = hw*a0 + tw*a1 + th*a2 + bias on one (SB, Cout) spatial chunk.

    views_ref: (1, 3, SB, Cout) bf16; alpha_ref: (1, 3, Cout) f32;
    bias_ref : (1, 1, Cout) f32;      o_ref: (1, SB, Cout) f32.
    """
    a = alpha_ref[0]                                       # (3, Cout)
    hw = views_ref[0, 0, :, :].astype(jnp.float32)
    tw = views_ref[0, 1, :, :].astype(jnp.float32)
    th = views_ref[0, 2, :, :].astype(jnp.float32)
    res = hw * a[0:1, :] + tw * a[1:2, :] + th * a[2:3, :] + bias_ref[0]
    o_ref[0, :, :] = res.astype(o_ref.dtype)


# ----------------------------------------------------------------------------
# Pallas wrappers
# ----------------------------------------------------------------------------
def conv3v_pool(x_cl, w_taps, *, K, p):
    """x_cl: (N, T, H, W, Cin) f32; w_taps: (K*K, Cin, Cout) bf16.

    Returns views (N, 3, S, Cout) bf16 (view order hw, tw, th; S = T*H*W) and
    pools (N, 3, 1, Cout) f32 (per-view global max of the pre-bias conv).
    """
    N, T, H, W, Cin = x_cl.shape
    KK, _, Cout = w_taps.shape
    assert KK == K * K
    S = T * H * W
    Tp, Hp, Wp = T + 2 * p, H + 2 * p, W + 2 * p

    kern = functools.partial(_conv_view_pool_kernel, K=K, p=p, T=T, H=H, W=W)

    # Explicit scoped-VMEM budget: staging buffer + f32 accumulator +
    # double-buffered input/output blocks + resident weights, 2x headroom,
    # clamped to [16 MiB, 64 MiB] so it is valid on v5e/v6e/v7x alike.
    vmem_est = (Tp * Hp * Wp * Cin * 4 + S * Cout * 4
                + 2 * T * H * W * Cin * 4 + 2 * S * Cout * 2
                + 2 * Cout * 4 + K * K * Cin * Cout * 2)
    vmem_limit = int(min(64 << 20, max(16 << 20, 2 * vmem_est)))

    return pl.pallas_call(
        kern,
        out_shape=(jax.ShapeDtypeStruct((N, 3, S, Cout), jnp.bfloat16),
                   jax.ShapeDtypeStruct((N, 3, 1, Cout), jnp.float32)),
        grid=(N, 3),
        in_specs=[
            # same block index across v -> input stays resident for all 3 views
            pl.BlockSpec((1, T, H, W, Cin), lambda n, v: (n, 0, 0, 0, 0)),
            # grid-resident per-tap weights
            pl.BlockSpec((KK, Cin, Cout), lambda n, v: (0, 0, 0)),
        ],
        out_specs=(
            pl.BlockSpec((1, 1, S, Cout), lambda n, v: (n, v, 0, 0)),
            pl.BlockSpec((1, 1, 1, Cout), lambda n, v: (n, v, 0, 0)),
        ),
        scratch_shapes=[pltpu.VMEM((Tp, Hp, Wp, Cin), jnp.float32)],
        compiler_params=pltpu.CompilerParams(
            # samples are independent; the view axis reuses the staged sample
            dimension_semantics=("parallel", "arbitrary"),
            vmem_limit_bytes=vmem_limit),
    )(x_cl, w_taps)


def _pick_spatial_block(S, N, cout, *, bytes_per_elem=2, max_bytes=2 << 20,
                        min_blocks=8):
    """Spatial chunk for the combine grid: multiple of 8 dividing S, per-array
    block <= max_bytes, and >= min_blocks grid steps (2 TCs on v7x x 2-deep
    pipeline x margin) whenever possible."""
    if S % 8 != 0:
        return S                               # single full-S block fallback
    divisors = [d for d in range(8, S + 1, 8) if S % d == 0]
    under_cap = [d for d in divisors if d * cout * bytes_per_elem <= max_bytes]
    if not under_cap:
        return divisors[0]
    for d in sorted(under_cap, reverse=True):
        if (S // d) * N >= min_blocks:
            return d
    return max(under_cap)


def weighted_combine(views, alpha_nc, bias, *, s_block):
    """views: (N, 3, S, Cout) bf16; alpha_nc: (N, 3, Cout) f32; bias: (Cout,)."""
    N, _, S, Cout = views.shape
    n_s = S // s_block
    bias3 = bias.reshape(1, 1, Cout).astype(jnp.float32)

    blk_est = 2 * (3 * s_block * Cout * 2 + 3 * Cout * 4 + Cout * 4
                   + s_block * Cout * 4)
    vmem_limit = int(min(64 << 20, max(16 << 20, 2 * blk_est)))

    return pl.pallas_call(
        _combine_kernel,
        out_shape=jax.ShapeDtypeStruct((N, S, Cout), jnp.float32),
        grid=(N, n_s),
        in_specs=[
            pl.BlockSpec((1, 3, s_block, Cout), lambda n, s: (n, 0, s, 0)),
            pl.BlockSpec((1, 3, Cout), lambda n, s: (n, 0, 0)),
            pl.BlockSpec((1, 1, Cout), lambda n, s: (0, 0, 0)),
        ],
        out_specs=pl.BlockSpec((1, s_block, Cout), lambda n, s: (n, s, 0)),
        compiler_params=pltpu.CompilerParams(
            dimension_semantics=("parallel", "parallel"),
            vmem_limit_bytes=vmem_limit),
    )(views, alpha_nc, bias3)


# ----------------------------------------------------------------------------
# CoSTb forward
# ----------------------------------------------------------------------------
def costb_forward(x, params, *, kernel_size=3, padding=1):
    """x: (N, Cin, T, H, W) float32 (NCTHW).  Returns (N, Cout, T, H, W)."""
    N, Cin, T, H, W = x.shape
    w = params["weight"]       # (Cout, Cin, 1, K, K)
    bias = params["bias"]      # (Cout,)
    w1 = params["fc1"]         # (Cout, Cout)  -- y = x @ w1.T
    w2 = params["fc2"]         # (3, 3)        -- y = x @ w2.T
    K = kernel_size
    Cout = w.shape[0]
    if 2 * padding != K - 1:
        # TODO(synk): general stride/padding/dilation/groups not implemented.
        raise NotImplementedError("requires 2*padding == kernel_size - 1")

    # per-tap weight matrices: (Cout, Cin, 1, K, K) -> (K*K, Cin, Cout); bf16
    # cast done ONCE here for the MXU (accumulation stays f32 in the kernel).
    w_taps = jnp.transpose(w[:, :, 0], (2, 3, 1, 0)).reshape(K * K, Cin, Cout)
    w_taps = w_taps.astype(jnp.bfloat16)

    # single layout change to channels-last; all three views are produced from
    # this one tensor inside the kernel (no per-view transposes, no pads).
    x_cl = jnp.transpose(x, (0, 2, 3, 4, 1))               # (N, T, H, W, Cin)

    views, pools = conv3v_pool(x_cl, w_taps, K=K, p=padding)
    S = T * H * W

    # tiny attention MLP (3N x Cout and N*Cout x 3 matmuls) -> plain JAX glue
    p_hw, p_tw, p_th = pools[:, 0, 0, :], pools[:, 1, 0, :], pools[:, 2, 0, :]
    y = jnp.concatenate([p_hw, p_tw, p_th], axis=0)        # (3N, Cout)
    y = y @ w1.T                                           # fc1
    y = y.reshape(3, N * Cout).T                           # (N*Cout, 3)
    y = y @ w2.T                                           # fc2
    alpha = jax.nn.softmax(y.T.reshape(3, N, Cout), axis=0)
    alpha_nc = jnp.transpose(alpha, (1, 0, 2)).astype(jnp.float32)

    sb = _pick_spatial_block(S, N, Cout)
    out_cl = weighted_combine(views, alpha_nc, bias, s_block=sb)
    out_cl = out_cl.reshape(N, T, H, W, Cout)
    return jnp.transpose(out_cl, (0, 4, 1, 2, 3))          # NCTHW


# ----------------------------------------------------------------------------
# Pure-JAX reference (numerical sanity check)
# ----------------------------------------------------------------------------
def ref_forward(x, params, *, kernel_size=3, padding=1):
    w, bias, w1, w2 = params["weight"], params["bias"], params["fc1"], params["fc2"]
    N = x.shape[0]
    Cout = w.shape[0]
    p = padding
    dn = ("NCDHW", "OIDHW", "NCDHW")
    wsq = w[:, :, 0]                                       # (Cout, Cin, K, K)
    hw = jax.lax.conv_general_dilated(x, wsq[:, :, None, :, :], (1, 1, 1),
                                      [(0, 0), (p, p), (p, p)],
                                      dimension_numbers=dn)
    tw = jax.lax.conv_general_dilated(x, wsq[:, :, :, None, :], (1, 1, 1),
                                      [(p, p), (0, 0), (p, p)],
                                      dimension_numbers=dn)
    th = jax.lax.conv_general_dilated(x, wsq[:, :, :, :, None], (1, 1, 1),
                                      [(p, p), (p, p), (0, 0)],
                                      dimension_numbers=dn)
    pool = lambda z: jnp.max(z, axis=(2, 3, 4))
    xcat = jnp.concatenate([pool(hw), pool(tw), pool(th)], axis=0) @ w1.T
    xcat = xcat.reshape(3, -1).T @ w2.T
    alpha = jax.nn.softmax(xcat.T.reshape(3, N, Cout, 1, 1, 1), axis=0)
    out = hw * alpha[0] + tw * alpha[1] + th * alpha[2]
    return out + bias.reshape(1, Cout, 1, 1, 1)


# ----------------------------------------------------------------------------
# Demo
# ----------------------------------------------------------------------------
if __name__ == "__main__":
    N, Cin, Cout = 2, 4, 8
    T, H, W = 4, 8, 8
    K, padding = 3, 1

    key = jax.random.PRNGKey(0)
    k1, k2, k3, k4, k5 = jax.random.split(key, 5)
    fan_in = Cin * K * K
    params = {
        "weight": jax.random.normal(k1, (Cout, Cin, 1, K, K), jnp.float32)
                  * np.sqrt(2.0 / fan_in),                 # kaiming-like
        "bias": jax.random.normal(k2, (Cout,), jnp.float32) * 0.01,
        "fc1": jax.random.normal(k3, (Cout, Cout), jnp.float32) * 0.01,
        "fc2": jax.random.normal(k4, (3, 3), jnp.float32) * 0.01,
    }
    x = jax.random.normal(k5, (N, Cin, T, H, W), jnp.float32)

    out = jax.block_until_ready(
        costb_forward(x, params, kernel_size=K, padding=padding))
    ref = jax.block_until_ready(
        ref_forward(x, params, kernel_size=K, padding=padding))

    assert out.shape == (N, Cout, T, H, W), out.shape
    assert np.all(np.isfinite(np.asarray(out)))
    if not np.allclose(np.asarray(out), np.asarray(ref), rtol=2e-2, atol=2e-2):
        raise AssertionError("Pallas CoSTb output deviates from JAX reference")

    print("KERNEL_OK")
</pallas_src>

<mosaic_0001>
module attributes {stable_mosaic.version = 11 : i64} {
  func.func @_conv_view_pool_kernel(%arg0: i32, %arg1: i32, %arg2: memref<1x4x8x8x4xf32, #tpu.memory_space<vmem>>, %arg3: memref<9x4x8xbf16, #tpu.memory_space<vmem>>, %arg4: memref<1x1x256x8xbf16, #tpu.memory_space<vmem>>, %arg5: memref<1x1x1x8xf32, #tpu.memory_space<vmem>>, %arg6: memref<6x10x10x4xf32, #tpu.memory_space<vmem>>) attributes {dimension_semantics = [#tpu.dimension_semantics<parallel>, #tpu.dimension_semantics<arbitrary>], iteration_bounds = array<i64: 2, 3>, scalar_prefetch = 0 : i64, scratch_operands = 1 : i64, tpu.core_type = #tpu.core_type<tc>, window_params = [{transform_indices = @transform_0, window_bounds = array<i64: 1, 4, 8, 8, 4>}, {pipeline_mode = #tpu.pipeline_mode<synchronous>, transform_indices = @transform_1, window_bounds = array<i64: 9, 4, 8>}, {transform_indices = @transform_2, window_bounds = array<i64: 1, 1, 256, 8>}, {transform_indices = @transform_3, window_bounds = array<i64: 1, 1, 1, 8>}]} {
    %c0_i32 = arith.constant 0 : i32
    %0 = arith.cmpi eq, %arg1, %c0_i32 : i32
    %1 = arith.extui %0 : i1 to i32
    %c0_i32_0 = arith.constant 0 : i32
    %2 = arith.cmpi ne, %1, %c0_i32_0 : i32
    scf.if %2 {
      %cst = arith.constant 0.000000e+00 : f32
      %12 = vector.broadcast %cst : f32 to vector<1x10x10x4xf32>
      %c0 = arith.constant 0 : index
      %c0_5 = arith.constant 0 : index
      %c0_6 = arith.constant 0 : index
      %c0_7 = arith.constant 0 : index
      %13 = vector.load %arg6[%c0, %c0_5, %c0_6, %c0_7] : memref<6x10x10x4xf32, #tpu.memory_space<vmem>>, vector<1x10x10x4xf32>
      tpu.vector_store %arg6[%c0, %c0_5, %c0_6, %c0_7], %12 {strides = array<i32>} : memref<6x10x10x4xf32, #tpu.memory_space<vmem>>, vector<1x10x10x4xf32>,
      %cst_8 = arith.constant 0.000000e+00 : f32
      %14 = vector.broadcast %cst_8 : f32 to vector<1x10x10x4xf32>
      %c5 = arith.constant 5 : index
      %c0_9 = arith.constant 0 : index
      %c0_10 = arith.constant 0 : index
      %c0_11 = arith.constant 0 : index
      %15 = vector.load %arg6[%c5, %c0_9, %c0_10, %c0_11] : memref<6x10x10x4xf32, #tpu.memory_space<vmem>>, vector<1x10x10x4xf32>
      tpu.vector_store %arg6[%c5, %c0_9, %c0_10, %c0_11], %14 {strides = array<i32>} : memref<6x10x10x4xf32, #tpu.memory_space<vmem>>, vector<1x10x10x4xf32>,
      %cst_12 = arith.constant 0.000000e+00 : f32
      %16 = vector.broadcast %cst_12 : f32 to vector<4x1x10x4xf32>
      %c1 = arith.constant 1 : index
      %c0_13 = arith.constant 0 : index
      %c0_14 = arith.constant 0 : index
      %c0_15 = arith.constant 0 : index
      %17 = vector.load %arg6[%c1, %c0_13, %c0_14, %c0_15] : memref<6x10x10x4xf32, #tpu.memory_space<vmem>>, vector<4x1x10x4xf32>
      tpu.vector_store %arg6[%c1, %c0_13, %c0_14, %c0_15], %16 {strides = array<i32>} : memref<6x10x10x4xf32, #tpu.memory_space<vmem>>, vector<4x1x10x4xf32>,
      %cst_16 = arith.constant 0.000000e+00 : f32
      %18 = vector.broadcast %cst_16 : f32 to vector<4x1x10x4xf32>
      %c1_17 = arith.constant 1 : index
      %c9 = arith.constant 9 : index
      %c0_18 = arith.constant 0 : index
      %c0_19 = arith.constant 0 : index
      %19 = vector.load %arg6[%c1_17, %c9, %c0_18, %c0_19] : memref<6x10x10x4xf32, #tpu.memory_space<vmem>>, vector<4x1x10x4xf32>
      tpu.vector_store %arg6[%c1_17, %c9, %c0_18, %c0_19], %18 {strides = array<i32>} : memref<6x10x10x4xf32, #tpu.memory_space<vmem>>, vector<4x1x10x4xf32>,
      %cst_20 = arith.constant 0.000000e+00 : f32
      %20 = vector.broadcast %cst_20 : f32 to vector<4x8x1x4xf32>
      %c1_21 = arith.constant 1 : index
      %c1_22 = arith.constant 1 : index
      %c0_23 = arith.constant 0 : index
      %c0_24 = arith.constant 0 : index
      %21 = vector.load %arg6[%c1_21, %c1_22, %c0_23, %c0_24] : memref<6x10x10x4xf32, #tpu.memory_space<vmem>>, vector<4x8x1x4xf32>
      tpu.vector_store %arg6[%c1_21, %c1_22, %c0_23, %c0_24], %20 {strides = array<i32>} : memref<6x10x10x4xf32, #tpu.memory_space<vmem>>, vector<4x8x1x4xf32>,
      %cst_25 = arith.constant 0.000000e+00 : f32
      %22 = vector.broadcast %cst_25 : f32 to vector<4x8x1x4xf32>
      %c1_26 = arith.constant 1 : index
      %c1_27 = arith.constant 1 : index
      %c9_28 = arith.constant 9 : index
      %c0_29 = arith.constant 0 : index
      %23 = vector.load %arg6[%c1_26, %c1_27, %c9_28, %c0_29] : memref<6x10x10x4xf32, #tpu.memory_space<vmem>>, vector<4x8x1x4xf32>
      tpu.vector_store %arg6[%c1_26, %c1_27, %c9_28, %c0_29], %22 {strides = array<i32>} : memref<6x10x10x4xf32, #tpu.memory_space<vmem>>, vector<4x8x1x4xf32>,
      %c0_30 = arith.constant 0 : index
      %c0_31 = arith.constant 0 : index
      %c0_32 = arith.constant 0 : index
      %c0_33 = arith.constant 0 : index
      %c0_34 = arith.constant 0 : index
      %24 = vector.load %arg2[%c0_30, %c0_31, %c0_32, %c0_33, %c0_34] : memref<1x4x8x8x4xf32, #tpu.memory_space<vmem>>, vector<1x4x8x8x4xf32>
      %25 = vector.shape_cast %24 : vector<1x4x8x8x4xf32> to vector<4x8x8x4xf32>
      %c1_35 = arith.constant 1 : index
      %c1_36 = arith.constant 1 : index
      %c1_37 = arith.constant 1 : index
      %c0_38 = arith.constant 0 : index
      %26 = vector.load %arg6[%c1_35, %c1_36, %c1_37, %c0_38] : memref<6x10x10x4xf32, #tpu.memory_space<vmem>>, vector<4x8x8x4xf32>
      tpu.vector_store %arg6[%c1_35, %c1_36, %c1_37, %c0_38], %25 {strides = array<i32>} : memref<6x10x10x4xf32, #tpu.memory_space<vmem>>, vector<4x8x8x4xf32>,
    } else {
    }
    %c0_i32_1 = arith.constant 0 : i32
    %3 = arith.cmpi eq, %arg1, %c0_i32_1 : i32
    %4 = arith.extui %3 : i1 to i32
    %c0_i32_2 = arith.constant 0 : i32
    %5 = arith.cmpi ne, %4, %c0_i32_2 : i32
    scf.if %5 {
      %cst = arith.constant 0.000000e+00 : f32
      %12 = vector.broadcast %cst : f32 to vector<256x8xf32>
      %c1 = arith.constant 1 : index
      %c0 = arith.constant 0 : index
      %c0_5 = arith.constant 0 : index
      %c0_6 = arith.constant 0 : index
      %13 = vector.load %arg6[%c1, %c0, %c0_5, %c0_6] : memref<6x10x10x4xf32, #tpu.memory_space<vmem>>, vector<4x8x8x4xf32>
      %14 = vector.shape_cast %13 : vector<4x8x8x4xf32> to vector<256x4xf32>
      %15 = arith.truncf %14 : vector<256x4xf32> to vector<256x4xbf16>
      %c0_7 = arith.constant 0 : index
      %c0_8 = arith.constant 0 : index
      %c0_9 = arith.constant 0 : index
      %16 = vector.load %arg3[%c0_7, %c0_8, %c0_9] : memref<9x4x8xbf16, #tpu.memory_space<vmem>>, vector<1x4x8xbf16>
      %17 = vector.shape_cast %16 : vector<1x4x8xbf16> to vector<4x8xbf16>
      %cst_10 = arith.constant dense<0.000000e+00> : vector<256x8xf32>
      %18 = tpu.matmul %15, %17, %cst_10 {dimension_numbers = #tpu.dot_dimension_numbers<[1], [0], [0], [1], [0, 0, 1, 1], [], []>} : vector<256x4xbf16>, vector<4x8xbf16>, vector<256x8xf32> -> vector<256x8xf32>
      %19 = arith.addf %12, %18 : vector<256x8xf32>
      %c1_11 = arith.constant 1 : index
      %c0_12 = arith.constant 0 : index
      %c1_13 = arith.constant 1 : index
      %c0_14 = arith.constant 0 : index
      %20 = vector.load %arg6[%c1_11, %c0_12, %c1_13, %c0_14] : memref<6x10x10x4xf32, #tpu.memory_space<vmem>>, vector<4x8x8x4xf32>
      %21 = vector.shape_cast %20 : vector<4x8x8x4xf32> to vector<256x4xf32>
      %22 = arith.truncf %21 : vector<256x4xf32> to vector<256x4xbf16>
      %c1_15 = arith.constant 1 : index
      %c0_16 = arith.constant 0 : index
      %c0_17 = arith.constant 0 : index
      %23 = vector.load %arg3[%c1_15, %c0_16, %c0_17] : memref<9x4x8xbf16, #tpu.memory_space<vmem>>, vector<1x4x8xbf16>
      %24 = vector.shape_cast %23 : vector<1x4x8xbf16> to vector<4x8xbf16>
      %cst_18 = arith.constant dense<0.000000e+00> : vector<256x8xf32>
      %25 = tpu.matmul %22, %24, %cst_18 {dimension_numbers = #tpu.dot_dimension_numbers<[1], [0], [0], [1], [0, 0, 1, 1], [], []>} : vector<256x4xbf16>, vector<4x8xbf16>, vector<256x8xf32> -> vector<256x8xf32>
      %26 = arith.addf %19, %25 : vector<256x8xf32>
      %c1_19 = arith.constant 1 : index
      %c0_20 = arith.constant 0 : index
      %c2 = arith.constant 2 : index
      %c0_21 = arith.constant 0 : index
      %27 = vector.load %arg6[%c1_19, %c0_20, %c2, %c0_21] : memref<6x10x10x4xf32, #tpu.memory_space<vmem>>, vector<4x8x8x4xf32>
      %28 = vector.shape_cast %27 : vector<4x8x8x4xf32> to vector<256x4xf32>
      %29 = arith.truncf %28 : vector<256x4xf32> to vector<256x4xbf16>
      %c2_22 = arith.constant 2 : index
      %c0_23 = arith.constant 0 : index
      %c0_24 = arith.constant 0 : index
      %30 = vector.load %arg3[%c2_22, %c0_23, %c0_24] : memref<9x4x8xbf16, #tpu.memory_space<vmem>>, vector<1x4x8xbf16>
      %31 = vector.shape_cast %30 : vector<1x4x8xbf16> to vector<4x8xbf16>
      %cst_25 = arith.constant dense<0.000000e+00> : vector<256x8xf32>
      %32 = tpu.matmul %29, %31, %cst_25 {dimension_numbers = #tpu.dot_dimension_numbers<[1], [0], [0], [1], [0, 0, 1, 1], [], []>} : vector<256x4xbf16>, vector<4x8xbf16>, vector<256x8xf32> -> vector<256x8xf32>
      %33 = arith.addf %26, %32 : vector<256x8xf32>
      %c1_26 = arith.constant 1 : index
      %c1_27 = arith.constant 1 : index
      %c0_28 = arith.constant 0 : index
      %c0_29 = arith.constant 0 : index
      %34 = vector.load %arg6[%c1_26, %c1_27, %c0_28, %c0_29] : memref<6x10x10x4xf32, #tpu.memory_space<vmem>>, vector<4x8x8x4xf32>
      %35 = vector.shape_cast %34 : vector<4x8x8x4xf32> to vector<256x4xf32>
      %36 = arith.truncf %35 : vector<256x4xf32> to vector<256x4xbf16>
      %c3 = arith.constant 3 : index
      %c0_30 = arith.constant 0 : index
      %c0_31 = arith.constant 0 : index
      %37 = vector.load %arg3[%c3, %c0_30, %c0_31] : memref<9x4x8xbf16, #tpu.memory_space<vmem>>, vector<1x4x8xbf16>
      %38 = vector.shape_cast %37 : vector<1x4x8xbf16> to vector<4x8xbf16>
      %cst_32 = arith.constant dense<0.000000e+00> : vector<256x8xf32>
      %39 = tpu.matmul %36, %38, %cst_32 {dimension_numbers = #tpu.dot_dimension_numbers<[1], [0], [0], [1], [0, 0, 1, 1], [], []>} : vector<256x4xbf16>, vector<4x8xbf16>, vector<256x8xf32> -> vector<256x8xf32>
      %40 = arith.addf %33, %39 : vector<256x8xf32>
      %c1_33 = arith.constant 1 : index
      %c1_34 = arith.constant 1 : index
      %c1_35 = arith.constant 1 : index
      %c0_36 = arith.constant 0 : index
      %41 = vector.load %arg6[%c1_33, %c1_34, %c1_35, %c0_36] : memref<6x10x10x4xf32, #tpu.memory_space<vmem>>, vector<4x8x8x4xf32>
      %42 = vector.shape_cast %41 : vector<4x8x8x4xf32> to vector<256x4xf32>
      %43 = arith.truncf %42 : vector<256x4xf32> to vector<256x4xbf16>
      %c4 = arith.constant 4 : index
      %c0_37 = arith.constant 0 : index
      %c0_38 = arith.constant 0 : index
      %44 = vector.load %arg3[%c4, %c0_37, %c0_38] : memref<9x4x8xbf16, #tpu.memory_space<vmem>>, vector<1x4x8xbf16>
      %45 = vector.shape_cast %44 : vector<1x4x8xbf16> to vector<4x8xbf16>
      %cst_39 = arith.constant dense<0.000000e+00> : vector<256x8xf32>
      %46 = tpu.matmul %43, %45, %cst_39 {dimension_numbers = #tpu.dot_dimension_numbers<[1], [0], [0], [1], [0, 0, 1, 1], [], []>} : vector<256x4xbf16>, vector<4x8xbf16>, vector<256x8xf32> -> vector<256x8xf32>
      %47 = arith.addf %40, %46 : vector<256x8xf32>
      %c1_40 = arith.constant 1 : index
      %c1_41 = arith.constant 1 : index
      %c2_42 = arith.constant 2 : index
      %c0_43 = arith.constant 0 : index
      %48 = vector.load %arg6[%c1_40, %c1_41, %c2_42, %c0_43] : memref<6x10x10x4xf32, #tpu.memory_space<vmem>>, vector<4x8x8x4xf32>
      %49 = vector.shape_cast %48 : vector<4x8x8x4xf32> to vector<256x4xf32>
      %50 = arith.truncf %49 : vector<256x4xf32> to vector<256x4xbf16>
      %c5 = arith.constant 5 : index
      %c0_44 = arith.constant 0 : index
      %c0_45 = arith.constant 0 : index
      %51 = vector.load %arg3[%c5, %c0_44, %c0_45] : memref<9x4x8xbf16, #tpu.memory_space<vmem>>, vector<1x4x8xbf16>
      %52 = vector.shape_cast %51 : vector<1x4x8xbf16> to vector<4x8xbf16>
      %cst_46 = arith.constant dense<0.000000e+00> : vector<256x8xf32>
      %53 = tpu.matmul %50, %52, %cst_46 {dimension_numbers = #tpu.dot_dimension_numbers<[1], [0], [0], [1], [0, 0, 1, 1], [], []>} : vector<256x4xbf16>, vector<4x8xbf16>, vector<256x8xf32> -> vector<256x8xf32>
      %54 = arith.addf %47, %53 : vector<256x8xf32>
      %c1_47 = arith.constant 1 : index
      %c2_48 = arith.constant 2 : index
      %c0_49 = arith.constant 0 : index
      %c0_50 = arith.constant 0 : index
      %55 = vector.load %arg6[%c1_47, %c2_48, %c0_49, %c0_50] : memref<6x10x10x4xf32, #tpu.memory_space<vmem>>, vector<4x8x8x4xf32>
      %56 = vector.shape_cast %55 : vector<4x8x8x4xf32> to vector<256x4xf32>
      %57 = arith.truncf %56 : vector<256x4xf32> to vector<256x4xbf16>
      %c6 = arith.constant 6 : index
      %c0_51 = arith.constant 0 : index
      %c0_52 = arith.constant 0 : index
      %58 = vector.load %arg3[%c6, %c0_51, %c0_52] : memref<9x4x8xbf16, #tpu.memory_space<vmem>>, vector<1x4x8xbf16>
      %59 = vector.shape_cast %58 : vector<1x4x8xbf16> to vector<4x8xbf16>
      %cst_53 = arith.constant dense<0.000000e+00> : vector<256x8xf32>
      %60 = tpu.matmul %57, %59, %cst_53 {dimension_numbers = #tpu.dot_dimension_numbers<[1], [0], [0], [1], [0, 0, 1, 1], [], []>} : vector<256x4xbf16>, vector<4x8xbf16>, vector<256x8xf32> -> vector<256x8xf32>
      %61 = arith.addf %54, %60 : vector<256x8xf32>
      %c1_54 = arith.constant 1 : index
      %c2_55 = arith.constant 2 : index
      %c1_56 = arith.constant 1 : index
      %c0_57 = arith.constant 0 : index
      %62 = vector.load %arg6[%c1_54, %c2_55, %c1_56, %c0_57] : memref<6x10x10x4xf32, #tpu.memory_space<vmem>>, vector<4x8x8x4xf32>
      %63 = vector.shape_cast %62 : vector<4x8x8x4xf32> to vector<256x4xf32>
      %64 = arith.truncf %63 : vector<256x4xf32> to vector<256x4xbf16>
      %c7 = arith.constant 7 : index
      %c0_58 = arith.constant 0 : index
      %c0_59 = arith.constant 0 : index
      %65 = vector.load %arg3[%c7, %c0_58, %c0_59] : memref<9x4x8xbf16, #tpu.memory_space<vmem>>, vector<1x4x8xbf16>
      %66 = vector.shape_cast %65 : vector<1x4x8xbf16> to vector<4x8xbf16>
      %cst_60 = arith.constant dense<0.000000e+00> : vector<256x8xf32>
      %67 = tpu.matmul %64, %66, %cst_60 {dimension_numbers = #tpu.dot_dimension_numbers<[1], [0], [0], [1], [0, 0, 1, 1], [], []>} : vector<256x4xbf16>, vector<4x8xbf16>, vector<256x8xf32> -> vector<256x8xf32>
      %68 = arith.addf %61, %67 : vector<256x8xf32>
      %c1_61 = arith.constant 1 : index
      %c2_62 = arith.constant 2 : index
      %c2_63 = arith.constant 2 : index
      %c0_64 = arith.constant 0 : index
      %69 = vector.load %arg6[%c1_61, %c2_62, %c2_63, %c0_64] : memref<6x10x10x4xf32, #tpu.memory_space<vmem>>, vector<4x8x8x4xf32>
      %70 = vector.shape_cast %69 : vector<4x8x8x4xf32> to vector<256x4xf32>
      %71 = arith.truncf %70 : vector<256x4xf32> to vector<256x4xbf16>
      %c8 = arith.constant 8 : index
      %c0_65 = arith.constant 0 : index
      %c0_66 = arith.constant 0 : index
      %72 = vector.load %arg3[%c8, %c0_65, %c0_66] : memref<9x4x8xbf16, #tpu.memory_space<vmem>>, vector<1x4x8xbf16>
      %73 = vector.shape_cast %72 : vector<1x4x8xbf16> to vector<4x8xbf16>
      %cst_67 = arith.constant dense<0.000000e+00> : vector<256x8xf32>
      %74 = tpu.matmul %71, %73, %cst_67 {dimension_numbers = #tpu.dot_dimension_numbers<[1], [0], [0], [1], [0, 0, 1, 1], [], []>} : vector<256x4xbf16>, vector<4x8xbf16>, vector<256x8xf32> -> vector<256x8xf32>
      %75 = arith.addf %68, %74 : vector<256x8xf32>
      %76 = arith.truncf %75 : vector<256x8xf32> to vector<256x8xbf16>
      %c0_68 = arith.constant 0 : index
      %c0_69 = arith.constant 0 : index
      %c0_70 = arith.constant 0 : index
      %c0_71 = arith.constant 0 : index
      %77 = vector.load %arg4[%c0_68, %c0_69, %c0_70, %c0_71] : memref<1x1x256x8xbf16, #tpu.memory_space<vmem>>, vector<1x1x256x8xbf16>
      %78 = vector.shape_cast %77 : vector<1x1x256x8xbf16> to vector<256x8xbf16>
      %79 = vector.shape_cast %76 : vector<256x8xbf16> to vector<1x1x256x8xbf16>
      tpu.vector_store %arg4[%c0_68, %c0_69, %c0_70, %c0_71], %79 {strides = array<i32>} : memref<1x1x256x8xbf16, #tpu.memory_space<vmem>>, vector<1x1x256x8xbf16>,
      %cst_72 = arith.constant dense<0xFF800000> : vector<8xf32>
      %80 = vector.multi_reduction <maximumf>, %75, %cst_72 [0] : vector<256x8xf32> to vector<8xf32>
      %81 = vector.shape_cast %80 : vector<8xf32> to vector<1x8xf32>
      %c0_73 = arith.constant 0 : index
      %c0_74 = arith.constant 0 : index
      %c0_75 = arith.constant 0 : index
      %c0_76 = arith.constant 0 : index
      %82 = vector.load %arg5[%c0_73, %c0_74, %c0_75, %c0_76] : memref<1x1x1x8xf32, #tpu.memory_space<vmem>>, vector<1x1x1x8xf32>
      %83 = vector.shape_cast %82 : vector<1x1x1x8xf32> to vector<1x8xf32>
      %84 = vector.shape_cast %81 : vector<1x8xf32> to vector<1x1x1x8xf32>
      tpu.vector_store %arg5[%c0_73, %c0_74, %c0_75, %c0_76], %84 {strides = array<i32>} : memref<1x1x1x8xf32, #tpu.memory_space<vmem>>, vector<1x1x1x8xf32>,
    } else {
    }
    %c1_i32 = arith.constant 1 : i32
    %6 = arith.cmpi eq, %arg1, %c1_i32 : i32
    %7 = arith.extui %6 : i1 to i32
    %c0_i32_3 = arith.constant 0 : i32
    %8 = arith.cmpi ne, %7, %c0_i32_3 : i32
    scf.if %8 {
      %cst = arith.constant 0.000000e+00 : f32
      %12 = vector.broadcast %cst : f32 to vector<256x8xf32>
      %c0 = arith.constant 0 : index
      %c1 = arith.constant 1 : index
      %c0_5 = arith.constant 0 : index
      %c0_6 = arith.constant 0 : index
      %13 = vector.load %arg6[%c0, %c1, %c0_5, %c0_6] : memref<6x10x10x4xf32, #tpu.memory_space<vmem>>, vector<4x8x8x4xf32>
      %14 = vector.shape_cast %13 : vector<4x8x8x4xf32> to vector<256x4xf32>
      %15 = arith.truncf %14 : vector<256x4xf32> to vector<256x4xbf16>
      %c0_7 = arith.constant 0 : index
      %c0_8 = arith.constant 0 : index
      %c0_9 = arith.constant 0 : index
      %16 = vector.load %arg3[%c0_7, %c0_8, %c0_9] : memref<9x4x8xbf16, #tpu.memory_space<vmem>>, vector<1x4x8xbf16>
      %17 = vector.shape_cast %16 : vector<1x4x8xbf16> to vector<4x8xbf16>
      %cst_10 = arith.constant dense<0.000000e+00> : vector<256x8xf32>
      %18 = tpu.matmul %15, %17, %cst_10 {dimension_numbers = #tpu.dot_dimension_numbers<[1], [0], [0], [1], [0, 0, 1, 1], [], []>} : vector<256x4xbf16>, vector<4x8xbf16>, vector<256x8xf32> -> vector<256x8xf32>
      %19 = arith.addf %12, %18 : vector<256x8xf32>
      %c0_11 = arith.constant 0 : index
      %c1_12 = arith.constant 1 : index
      %c1_13 = arith.constant 1 : index
      %c0_14 = arith.constant 0 : index
      %20 = vector.load %arg6[%c0_11, %c1_12, %c1_13, %c0_14] : memref<6x10x10x4xf32, #tpu.memory_space<vmem>>, vector<4x8x8x4xf32>
      %21 = vector.shape_cast %20 : vector<4x8x8x4xf32> to vector<256x4xf32>
      %22 = arith.truncf %21 : vector<256x4xf32> to vector<256x4xbf16>
      %c1_15 = arith.constant 1 : index
      %c0_16 = arith.constant 0 : index
      %c0_17 = arith.constant 0 : index
      %23 = vector.load %arg3[%c1_15, %c0_16, %c0_17] : memref<9x4x8xbf16, #tpu.memory_space<vmem>>, vector<1x4x8xbf16>
      %24 = vector.shape_cast %23 : vector<1x4x8xbf16> to vector<4x8xbf16>
      %cst_18 = arith.constant dense<0.000000e+00> : vector<256x8xf32>
      %25 = tpu.matmul %22, %24, %cst_18 {dimension_numbers = #tpu.dot_dimension_numbers<[1], [0], [0], [1], [0, 0, 1, 1], [], []>} : vector<256x4xbf16>, vector<4x8xbf16>, vector<256x8xf32> -> vector<256x8xf32>
      %26 = arith.addf %19, %25 : vector<256x8xf32>
      %c0_19 = arith.constant 0 : index
      %c1_20 = arith.constant 1 : index
      %c2 = arith.constant 2 : index
      %c0_21 = arith.constant 0 : index
      %27 = vector.load %arg6[%c0_19, %c1_20, %c2, %c0_21] : memref<6x10x10x4xf32, #tpu.memory_space<vmem>>, vector<4x8x8x4xf32>
      %28 = vector.shape_cast %27 : vector<4x8x8x4xf32> to vector<256x4xf32>
      %29 = arith.truncf %28 : vector<256x4xf32> to vector<256x4xbf16>
      %c2_22 = arith.constant 2 : index
      %c0_23 = arith.constant 0 : index
      %c0_24 = arith.constant 0 : index
      %30 = vector.load %arg3[%c2_22, %c0_23, %c0_24] : memref<9x4x8xbf16, #tpu.memory_space<vmem>>, vector<1x4x8xbf16>
      %31 = vector.shape_cast %30 : vector<1x4x8xbf16> to vector<4x8xbf16>
      %cst_25 = arith.constant dense<0.000000e+00> : vector<256x8xf32>
      %32 = tpu.matmul %29, %31, %cst_25 {dimension_numbers = #tpu.dot_dimension_numbers<[1], [0], [0], [1], [0, 0, 1, 1], [], []>} : vector<256x4xbf16>, vector<4x8xbf16>, vector<256x8xf32> -> vector<256x8xf32>
      %33 = arith.addf %26, %32 : vector<256x8xf32>
      %c1_26 = arith.constant 1 : index
      %c1_27 = arith.constant 1 : index
      %c0_28 = arith.constant 0 : index
      %c0_29 = arith.constant 0 : index
      %34 = vector.load %arg6[%c1_26, %c1_27, %c0_28, %c0_29] : memref<6x10x10x4xf32, #tpu.memory_space<vmem>>, vector<4x8x8x4xf32>
      %35 = vector.shape_cast %34 : vector<4x8x8x4xf32> to vector<256x4xf32>
      %36 = arith.truncf %35 : vector<256x4xf32> to vector<256x4xbf16>
      %c3 = arith.constant 3 : index
      %c0_30 = arith.constant 0 : index
      %c0_31 = arith.constant 0 : index
      %37 = vector.load %arg3[%c3, %c0_30, %c0_31] : memref<9x4x8xbf16, #tpu.memory_space<vmem>>, vector<1x4x8xbf16>
      %38 = vector.shape_cast %37 : vector<1x4x8xbf16> to vector<4x8xbf16>
      %cst_32 = arith.constant dense<0.000000e+00> : vector<256x8xf32>
      %39 = tpu.matmul %36, %38, %cst_32 {dimension_numbers = #tpu.dot_dimension_numbers<[1], [0], [0], [1], [0, 0, 1, 1], [], []>} : vector<256x4xbf16>, vector<4x8xbf16>, vector<256x8xf32> -> vector<256x8xf32>
      %40 = arith.addf %33, %39 : vector<256x8xf32>
      %c1_33 = arith.constant 1 : index
      %c1_34 = arith.constant 1 : index
      %c1_35 = arith.constant 1 : index
      %c0_36 = arith.constant 0 : index
      %41 = vector.load %arg6[%c1_33, %c1_34, %c1_35, %c0_36] : memref<6x10x10x4xf32, #tpu.memory_space<vmem>>, vector<4x8x8x4xf32>
      %42 = vector.shape_cast %41 : vector<4x8x8x4xf32> to vector<256x4xf32>
      %43 = arith.truncf %42 : vector<256x4xf32> to vector<256x4xbf16>
      %c4 = arith.constant 4 : index
      %c0_37 = arith.constant 0 : index
      %c0_38 = arith.constant 0 : index
      %44 = vector.load %arg3[%c4, %c0_37, %c0_38] : memref<9x4x8xbf16, #tpu.memory_space<vmem>>, vector<1x4x8xbf16>
      %45 = vector.shape_cast %44 : vector<1x4x8xbf16> to vector<4x8xbf16>
      %cst_39 = arith.constant dense<0.000000e+00> : vector<256x8xf32>
      %46 = tpu.matmul %43, %45, %cst_39 {dimension_numbers = #tpu.dot_dimension_numbers<[1], [0], [0], [1], [0, 0, 1, 1], [], []>} : vector<256x4xbf16>, vector<4x8xbf16>, vector<256x8xf32> -> vector<256x8xf32>
      %47 = arith.addf %40, %46 : vector<256x8xf32>
      %c1_40 = arith.constant 1 : index
      %c1_41 = arith.constant 1 : index
      %c2_42 = arith.constant 2 : index
      %c0_43 = arith.constant 0 : index
      %48 = vector.load %arg6[%c1_40, %c1_41, %c2_42, %c0_43] : memref<6x10x10x4xf32, #tpu.memory_space<vmem>>, vector<4x8x8x4xf32>
      %49 = vector.shape_cast %48 : vector<4x8x8x4xf32> to vector<256x4xf32>
      %50 = arith.truncf %49 : vector<256x4xf32> to vector<256x4xbf16>
      %c5 = arith.constant 5 : index
      %c0_44 = arith.constant 0 : index
      %c0_45 = arith.constant 0 : index
      %51 = vector.load %arg3[%c5, %c0_44, %c0_45] : memref<9x4x8xbf16, #tpu.memory_space<vmem>>, vector<1x4x8xbf16>
      %52 = vector.shape_cast %51 : vector<1x4x8xbf16> to vector<4x8xbf16>
      %cst_46 = arith.constant dense<0.000000e+00> : vector<256x8xf32>
      %53 = tpu.matmul %50, %52, %cst_46 {dimension_numbers = #tpu.dot_dimension_numbers<[1], [0], [0], [1], [0, 0, 1, 1], [], []>} : vector<256x4xbf16>, vector<4x8xbf16>, vector<256x8xf32> -> vector<256x8xf32>
      %54 = arith.addf %47, %53 : vector<256x8xf32>
      %c2_47 = arith.constant 2 : index
      %c1_48 = arith.constant 1 : index
      %c0_49 = arith.constant 0 : index
      %c0_50 = arith.constant 0 : index
      %55 = vector.load %arg6[%c2_47, %c1_48, %c0_49, %c0_50] : memref<6x10x10x4xf32, #tpu.memory_space<vmem>>, vector<4x8x8x4xf32>
      %56 = vector.shape_cast %55 : vector<4x8x8x4xf32> to vector<256x4xf32>
      %57 = arith.truncf %56 : vector<256x4xf32> to vector<256x4xbf16>
      %c6 = arith.constant 6 : index
      %c0_51 = arith.constant 0 : index
      %c0_52 = arith.constant 0 : index
      %58 = vector.load %arg3[%c6, %c0_51, %c0_52] : memref<9x4x8xbf16, #tpu.memory_space<vmem>>, vector<1x4x8xbf16>
      %59 = vector.shape_cast %58 : vector<1x4x8xbf16> to vector<4x8xbf16>
      %cst_53 = arith.constant dense<0.000000e+00> : vector<256x8xf32>
      %60 = tpu.matmul %57, %59, %cst_53 {dimension_numbers = #tpu.dot_dimension_numbers<[1], [0], [0], [1], [0, 0, 1, 1], [], []>} : vector<256x4xbf16>, vector<4x8xbf16>, vector<256x8xf32> -> vector<256x8xf32>
      %61 = arith.addf %54, %60 : vector<256x8xf32>
      %c2_54 = arith.constant 2 : index
      %c1_55 = arith.constant 1 : index
      %c1_56 = arith.constant 1 : index
      %c0_57 = arith.constant 0 : index
      %62 = vector.load %arg6[%c2_54, %c1_55, %c1_56, %c0_57] : memref<6x10x10x4xf32, #tpu.memory_space<vmem>>, vector<4x8x8x4xf32>
      %63 = vector.shape_cast %62 : vector<4x8x8x4xf32> to vector<256x4xf32>
      %64 = arith.truncf %63 : vector<256x4xf32> to vector<256x4xbf16>
      %c7 = arith.constant 7 : index
      %c0_58 = arith.constant 0 : index
      %c0_59 = arith.constant 0 : index
      %65 = vector.load %arg3[%c7, %c0_58, %c0_59] : memref<9x4x8xbf16, #tpu.memory_space<vmem>>, vector<1x4x8xbf16>
      %66 = vector.shape_cast %65 : vector<1x4x8xbf16> to vector<4x8xbf16>
      %cst_60 = arith.constant dense<0.000000e+00> : vector<256x8xf32>
      %67 = tpu.matmul %64, %66, %cst_60 {dimension_numbers = #tpu.dot_dimension_numbers<[1], [0], [0], [1], [0, 0, 1, 1], [], []>} : vector<256x4xbf16>, vector<4x8xbf16>, vector<256x8xf32> -> vector<256x8xf32>
      %68 = arith.addf %61, %67 : vector<256x8xf32>
      %c2_61 = arith.constant 2 : index
      %c1_62 = arith.constant 1 : index
      %c2_63 = arith.constant 2 : index
      %c0_64 = arith.constant 0 : index
      %69 = vector.load %arg6[%c2_61, %c1_62, %c2_63, %c0_64] : memref<6x10x10x4xf32, #tpu.memory_space<vmem>>, vector<4x8x8x4xf32>
      %70 = vector.shape_cast %69 : vector<4x8x8x4xf32> to vector<256x4xf32>
      %71 = arith.truncf %70 : vector<256x4xf32> to vector<256x4xbf16>
      %c8 = arith.constant 8 : index
      %c0_65 = arith.constant 0 : index
      %c0_66 = arith.constant 0 : index
      %72 = vector.load %arg3[%c8, %c0_65, %c0_66] : memref<9x4x8xbf16, #tpu.memory_space<vmem>>, vector<1x4x8xbf16>
      %73 = vector.shape_cast %72 : vector<1x4x8xbf16> to vector<4x8xbf16>
      %cst_67 = arith.constant dense<0.000000e+00> : vector<256x8xf32>
      %74 = tpu.matmul %71, %73, %cst_67 {dimension_numbers = #tpu.dot_dimension_numbers<[1], [0], [0], [1], [0, 0, 1, 1], [], []>} : vector<256x4xbf16>, vector<4x8xbf16>, vector<256x8xf32> -> vector<256x8xf32>
      %75 = arith.addf %68, %74 : vector<256x8xf32>
      %76 = arith.truncf %75 : vector<256x8xf32> to vector<256x8xbf16>
      %c0_68 = arith.constant 0 : index
      %c0_69 = arith.constant 0 : index
      %c0_70 = arith.constant 0 : index
      %c0_71 = arith.constant 0 : index
      %77 = vector.load %arg4[%c0_68, %c0_69, %c0_70, %c0_71] : memref<1x1x256x8xbf16, #tpu.memory_space<vmem>>, vector<1x1x256x8xbf16>
      %78 = vector.shape_cast %77 : vector<1x1x256x8xbf16> to vector<256x8xbf16>
      %79 = vector.shape_cast %76 : vector<256x8xbf16> to vector<1x1x256x8xbf16>
      tpu.vector_store %arg4[%c0_68, %c0_69, %c0_70, %c0_71], %79 {strides = array<i32>} : memref<1x1x256x8xbf16, #tpu.memory_space<vmem>>, vector<1x1x256x8xbf16>,
      %cst_72 = arith.constant dense<0xFF800000> : vector<8xf32>
      %80 = vector.multi_reduction <maximumf>, %75, %cst_72 [0] : vector<256x8xf32> to vector<8xf32>
      %81 = vector.shape_cast %80 : vector<8xf32> to vector<1x8xf32>
      %c0_73 = arith.constant 0 : index
      %c0_74 = arith.constant 0 : index
      %c0_75 = arith.constant 0 : index
      %c0_76 = arith.constant 0 : index
      %82 = vector.load %arg5[%c0_73, %c0_74, %c0_75, %c0_76] : memref<1x1x1x8xf32, #tpu.memory_space<vmem>>, vector<1x1x1x8xf32>
      %83 = vector.shape_cast %82 : vector<1x1x1x8xf32> to vector<1x8xf32>
      %84 = vector.shape_cast %81 : vector<1x8xf32> to vector<1x1x1x8xf32>
      tpu.vector_store %arg5[%c0_73, %c0_74, %c0_75, %c0_76], %84 {strides = array<i32>} : memref<1x1x1x8xf32, #tpu.memory_space<vmem>>, vector<1x1x1x8xf32>,
    } else {
    }
    %c2_i32 = arith.constant 2 : i32
    %9 = arith.cmpi eq, %arg1, %c2_i32 : i32
    %10 = arith.extui %9 : i1 to i32
    %c0_i32_4 = arith.constant 0 : i32
    %11 = arith.cmpi ne, %10, %c0_i32_4 : i32
    scf.if %11 {
      %cst = arith.constant 0.000000e+00 : f32
      %12 = vector.broadcast %cst : f32 to vector<256x8xf32>
      %c0 = arith.constant 0 : index
      %c0_5 = arith.constant 0 : index
      %c1 = arith.constant 1 : index
      %c0_6 = arith.constant 0 : index
      %13 = vector.load %arg6[%c0, %c0_5, %c1, %c0_6] : memref<6x10x10x4xf32, #tpu.memory_space<vmem>>, vector<4x8x8x4xf32>
      %14 = vector.shape_cast %13 : vector<4x8x8x4xf32> to vector<256x4xf32>
      %15 = arith.truncf %14 : vector<256x4xf32> to vector<256x4xbf16>
      %c0_7 = arith.constant 0 : index
      %c0_8 = arith.constant 0 : index
      %c0_9 = arith.constant 0 : index
      %16 = vector.load %arg3[%c0_7, %c0_8, %c0_9] : memref<9x4x8xbf16, #tpu.memory_space<vmem>>, vector<1x4x8xbf16>
      %17 = vector.shape_cast %16 : vector<1x4x8xbf16> to vector<4x8xbf16>
      %cst_10 = arith.constant dense<0.000000e+00> : vector<256x8xf32>
      %18 = tpu.matmul %15, %17, %cst_10 {dimension_numbers = #tpu.dot_dimension_numbers<[1], [0], [0], [1], [0, 0, 1, 1], [], []>} : vector<256x4xbf16>, vector<4x8xbf16>, vector<256x8xf32> -> vector<256x8xf32>
      %19 = arith.addf %12, %18 : vector<256x8xf32>
      %c0_11 = arith.constant 0 : index
      %c1_12 = arith.constant 1 : index
      %c1_13 = arith.constant 1 : index
      %c0_14 = arith.constant 0 : index
      %20 = vector.load %arg6[%c0_11, %c1_12, %c1_13, %c0_14] : memref<6x10x10x4xf32, #tpu.memory_space<vmem>>, vector<4x8x8x4xf32>
      %21 = vector.shape_cast %20 : vector<4x8x8x4xf32> to vector<256x4xf32>
      %22 = arith.truncf %21 : vector<256x4xf32> to vector<256x4xbf16>
      %c1_15 = arith.constant 1 : index
      %c0_16 = arith.constant 0 : index
      %c0_17 = arith.constant 0 : index
      %23 = vector.load %arg3[%c1_15, %c0_16, %c0_17] : memref<9x4x8xbf16, #tpu.memory_space<vmem>>, vector<1x4x8xbf16>
      %24 = vector.shape_cast %23 : vector<1x4x8xbf16> to vector<4x8xbf16>
      %cst_18 = arith.constant dense<0.000000e+00> : vector<256x8xf32>
      %25 = tpu.matmul %22, %24, %cst_18 {dimension_numbers = #tpu.dot_dimension_numbers<[1], [0], [0], [1], [0, 0, 1, 1], [], []>} : vector<256x4xbf16>, vector<4x8xbf16>, vector<256x8xf32> -> vector<256x8xf32>
      %26 = arith.addf %19, %25 : vector<256x8xf32>
      %c0_19 = arith.constant 0 : index
      %c2 = arith.constant 2 : index
      %c1_20 = arith.constant 1 : index
      %c0_21 = arith.constant 0 : index
      %27 = vector.load %arg6[%c0_19, %c2, %c1_20, %c0_21] : memref<6x10x10x4xf32, #tpu.memory_space<vmem>>, vector<4x8x8x4xf32>
      %28 = vector.shape_cast %27 : vector<4x8x8x4xf32> to vector<256x4xf32>
      %29 = arith.truncf %28 : vector<256x4xf32> to vector<256x4xbf16>
      %c2_22 = arith.constant 2 : index
      %c0_23 = arith.constant 0 : index
      %c0_24 = arith.constant 0 : index
      %30 = vector.load %arg3[%c2_22, %c0_23, %c0_24] : memref<9x4x8xbf16, #tpu.memory_space<vmem>>, vector<1x4x8xbf16>
      %31 = vector.shape_cast %30 : vector<1x4x8xbf16> to vector<4x8xbf16>
      %cst_25 = arith.constant dense<0.000000e+00> : vector<256x8xf32>
      %32 = tpu.matmul %29, %31, %cst_25 {dimension_numbers = #tpu.dot_dimension_numbers<[1], [0], [0], [1], [0, 0, 1, 1], [], []>} : vector<256x4xbf16>, vector<4x8xbf16>, vector<256x8xf32> -> vector<256x8xf32>
      %33 = arith.addf %26, %32 : vector<256x8xf32>
      %c1_26 = arith.constant 1 : index
      %c0_27 = arith.constant 0 : index
      %c1_28 = arith.constant 1 : index
      %c0_29 = arith.constant 0 : index
      %34 = vector.load %arg6[%c1_26, %c0_27, %c1_28, %c0_29] : memref<6x10x10x4xf32, #tpu.memory_space<vmem>>, vector<4x8x8x4xf32>
      %35 = vector.shape_cast %34 : vector<4x8x8x4xf32> to vector<256x4xf32>
      %36 = arith.truncf %35 : vector<256x4xf32> to vector<256x4xbf16>
      %c3 = arith.constant 3 : index
      %c0_30 = arith.constant 0 : index
      %c0_31 = arith.constant 0 : index
      %37 = vector.load %arg3[%c3, %c0_30, %c0_31] : memref<9x4x8xbf16, #tpu.memory_space<vmem>>, vector<1x4x8xbf16>
      %38 = vector.shape_cast %37 : vector<1x4x8xbf16> to vector<4x8xbf16>
      %cst_32 = arith.constant dense<0.000000e+00> : vector<256x8xf32>
      %39 = tpu.matmul %36, %38, %cst_32 {dimension_numbers = #tpu.dot_dimension_numbers<[1], [0], [0], [1], [0, 0, 1, 1], [], []>} : vector<256x4xbf16>, vector<4x8xbf16>, vector<256x8xf32> -> vector<256x8xf32>
      %40 = arith.addf %33, %39 : vector<256x8xf32>
      %c1_33 = arith.constant 1 : index
      %c1_34 = arith.constant 1 : index
      %c1_35 = arith.constant 1 : index
      %c0_36 = arith.constant 0 : index
      %41 = vector.load %arg6[%c1_33, %c1_34, %c1_35, %c0_36] : memref<6x10x10x4xf32, #tpu.memory_space<vmem>>, vector<4x8x8x4xf32>
      %42 = vector.shape_cast %41 : vector<4x8x8x4xf32> to vector<256x4xf32>
      %43 = arith.truncf %42 : vector<256x4xf32> to vector<256x4xbf16>
      %c4 = arith.constant 4 : index
      %c0_37 = arith.constant 0 : index
      %c0_38 = arith.constant 0 : index
      %44 = vector.load %arg3[%c4, %c0_37, %c0_38] : memref<9x4x8xbf16, #tpu.memory_space<vmem>>, vector<1x4x8xbf16>
      %45 = vector.shape_cast %44 : vector<1x4x8xbf16> to vector<4x8xbf16>
      %cst_39 = arith.constant dense<0.000000e+00> : vector<256x8xf32>
      %46 = tpu.matmul %43, %45, %cst_39 {dimension_numbers = #tpu.dot_dimension_numbers<[1], [0], [0], [1], [0, 0, 1, 1], [], []>} : vector<256x4xbf16>, vector<4x8xbf16>, vector<256x8xf32> -> vector<256x8xf32>
      %47 = arith.addf %40, %46 : vector<256x8xf32>
      %c1_40 = arith.constant 1 : index
      %c2_41 = arith.constant 2 : index
      %c1_42 = arith.constant 1 : index
      %c0_43 = arith.constant 0 : index
      %48 = vector.load %arg6[%c1_40, %c2_41, %c1_42, %c0_43] : memref<6x10x10x4xf32, #tpu.memory_space<vmem>>, vector<4x8x8x4xf32>
      %49 = vector.shape_cast %48 : vector<4x8x8x4xf32> to vector<256x4xf32>
      %50 = arith.truncf %49 : vector<256x4xf32> to vector<256x4xbf16>
      %c5 = arith.constant 5 : index
      %c0_44 = arith.constant 0 : index
      %c0_45 = arith.constant 0 : index
      %51 = vector.load %arg3[%c5, %c0_44, %c0_45] : memref<9x4x8xbf16, #tpu.memory_space<vmem>>, vector<1x4x8xbf16>
      %52 = vector.shape_cast %51 : vector<1x4x8xbf16> to vector<4x8xbf16>
      %cst_46 = arith.constant dense<0.000000e+00> : vector<256x8xf32>
      %53 = tpu.matmul %50, %52, %cst_46 {dimension_numbers = #tpu.dot_dimension_numbers<[1], [0], [0], [1], [0, 0, 1, 1], [], []>} : vector<256x4xbf16>, vector<4x8xbf16>, vector<256x8xf32> -> vector<256x8xf32>
      %54 = arith.addf %47, %53 : vector<256x8xf32>
      %c2_47 = arith.constant 2 : index
      %c0_48 = arith.constant 0 : index
      %c1_49 = arith.constant 1 : index
      %c0_50 = arith.constant 0 : index
      %55 = vector.load %arg6[%c2_47, %c0_48, %c1_49, %c0_50] : memref<6x10x10x4xf32, #tpu.memory_space<vmem>>, vector<4x8x8x4xf32>
      %56 = vector.shape_cast %55 : vector<4x8x8x4xf32> to vector<256x4xf32>
      %57 = arith.truncf %56 : vector<256x4xf32> to vector<256x4xbf16>
      %c6 = arith.constant 6 : index
      %c0_51 = arith.constant 0 : index
      %c0_52 = arith.constant 0 : index
      %58 = vector.load %arg3[%c6, %c0_51, %c0_52] : memref<9x4x8xbf16, #tpu.memory_space<vmem>>, vector<1x4x8xbf16>
      %59 = vector.shape_cast %58 : vector<1x4x8xbf16> to vector<4x8xbf16>
      %cst_53 = arith.constant dense<0.000000e+00> : vector<256x8xf32>
      %60 = tpu.matmul %57, %59, %cst_53 {dimension_numbers = #tpu.dot_dimension_numbers<[1], [0], [0], [1], [0, 0, 1, 1], [], []>} : vector<256x4xbf16>, vector<4x8xbf16>, vector<256x8xf32> -> vector<256x8xf32>
      %61 = arith.addf %54, %60 : vector<256x8xf32>
      %c2_54 = arith.constant 2 : index
      %c1_55 = arith.constant 1 : index
      %c1_56 = arith.constant 1 : index
      %c0_57 = arith.constant 0 : index
      %62 = vector.load %arg6[%c2_54, %c1_55, %c1_56, %c0_57] : memref<6x10x10x4xf32, #tpu.memory_space<vmem>>, vector<4x8x8x4xf32>
      %63 = vector.shape_cast %62 : vector<4x8x8x4xf32> to vector<256x4xf32>
      %64 = arith.truncf %63 : vector<256x4xf32> to vector<256x4xbf16>
      %c7 = arith.constant 7 : index
      %c0_58 = arith.constant 0 : index
      %c0_59 = arith.constant 0 : index
      %65 = vector.load %arg3[%c7, %c0_58, %c0_59] : memref<9x4x8xbf16, #tpu.memory_space<vmem>>, vector<1x4x8xbf16>
      %66 = vector.shape_cast %65 : vector<1x4x8xbf16> to vector<4x8xbf16>
      %cst_60 = arith.constant dense<0.000000e+00> : vector<256x8xf32>
      %67 = tpu.matmul %64, %66, %cst_60 {dimension_numbers = #tpu.dot_dimension_numbers<[1], [0], [0], [1], [0, 0, 1, 1], [], []>} : vector<256x4xbf16>, vector<4x8xbf16>, vector<256x8xf32> -> vector<256x8xf32>
      %68 = arith.addf %61, %67 : vector<256x8xf32>
      %c2_61 = arith.constant 2 : index
      %c2_62 = arith.constant 2 : index
      %c1_63 = arith.constant 1 : index
      %c0_64 = arith.constant 0 : index
      %69 = vector.load %arg6[%c2_61, %c2_62, %c1_63, %c0_64] : memref<6x10x10x4xf32, #tpu.memory_space<vmem>>, vector<4x8x8x4xf32>
      %70 = vector.shape_cast %69 : vector<4x8x8x4xf32> to vector<256x4xf32>
      %71 = arith.truncf %70 : vector<256x4xf32> to vector<256x4xbf16>
      %c8 = arith.constant 8 : index
      %c0_65 = arith.constant 0 : index
      %c0_66 = arith.constant 0 : index
      %72 = vector.load %arg3[%c8, %c0_65, %c0_66] : memref<9x4x8xbf16, #tpu.memory_space<vmem>>, vector<1x4x8xbf16>
      %73 = vector.shape_cast %72 : vector<1x4x8xbf16> to vector<4x8xbf16>
      %cst_67 = arith.constant dense<0.000000e+00> : vector<256x8xf32>
      %74 = tpu.matmul %71, %73, %cst_67 {dimension_numbers = #tpu.dot_dimension_numbers<[1], [0], [0], [1], [0, 0, 1, 1], [], []>} : vector<256x4xbf16>, vector<4x8xbf16>, vector<256x8xf32> -> vector<256x8xf32>
      %75 = arith.addf %68, %74 : vector<256x8xf32>
      %76 = arith.truncf %75 : vector<256x8xf32> to vector<256x8xbf16>
      %c0_68 = arith.constant 0 : index
      %c0_69 = arith.constant 0 : index
      %c0_70 = arith.constant 0 : index
      %c0_71 = arith.constant 0 : index
      %77 = vector.load %arg4[%c0_68, %c0_69, %c0_70, %c0_71] : memref<1x1x256x8xbf16, #tpu.memory_space<vmem>>, vector<1x1x256x8xbf16>
      %78 = vector.shape_cast %77 : vector<1x1x256x8xbf16> to vector<256x8xbf16>
      %79 = vector.shape_cast %76 : vector<256x8xbf16> to vector<1x1x256x8xbf16>
      tpu.vector_store %arg4[%c0_68, %c0_69, %c0_70, %c0_71], %79 {strides = array<i32>} : memref<1x1x256x8xbf16, #tpu.memory_space<vmem>>, vector<1x1x256x8xbf16>,
      %cst_72 = arith.constant dense<0xFF800000> : vector<8xf32>
      %80 = vector.multi_reduction <maximumf>, %75, %cst_72 [0] : vector<256x8xf32> to vector<8xf32>
      %81 = vector.shape_cast %80 : vector<8xf32> to vector<1x8xf32>
      %c0_73 = arith.constant 0 : index
      %c0_74 = arith.constant 0 : index
      %c0_75 = arith.constant 0 : index
      %c0_76 = arith.constant 0 : index
      %82 = vector.load %arg5[%c0_73, %c0_74, %c0_75, %c0_76] : memref<1x1x1x8xf32, #tpu.memory_space<vmem>>, vector<1x1x1x8xf32>
      %83 = vector.shape_cast %82 : vector<1x1x1x8xf32> to vector<1x8xf32>
      %84 = vector.shape_cast %81 : vector<1x8xf32> to vector<1x1x1x8xf32>
      tpu.vector_store %arg5[%c0_73, %c0_74, %c0_75, %c0_76], %84 {strides = array<i32>} : memref<1x1x1x8xf32, #tpu.memory_space<vmem>>, vector<1x1x1x8xf32>,
    } else {
    }
    return
  }
  func.func @transform_0(%arg0: i32, %arg1: i32) -> (i32, i32, i32, i32, i32) {
    %c0_i32 = arith.constant 0 : i32
    %c0_i32_0 = arith.constant 0 : i32
    %c0_i32_1 = arith.constant 0 : i32
    %c0_i32_2 = arith.constant 0 : i32
    %c0_i32_3 = arith.constant 0 : i32
    return %arg0, %c0_i32, %c0_i32_0, %c0_i32_1, %c0_i32_2 : i32, i32, i32, i32, i32
  }
  func.func @transform_1(%arg0: i32, %arg1: i32) -> (i32, i32, i32) {
    %c0_i32 = arith.constant 0 : i32
    %c0_i32_0 = arith.constant 0 : i32
    %c0_i32_1 = arith.constant 0 : i32
    %c0_i32_2 = arith.constant 0 : i32
    return %c0_i32, %c0_i32_0, %c0_i32_1 : i32, i32, i32
  }
  func.func @transform_2(%arg0: i32, %arg1: i32) -> (i32, i32, i32, i32) {
    %c0_i32 = arith.constant 0 : i32
    %c0_i32_0 = arith.constant 0 : i32
    %c0_i32_1 = arith.constant 0 : i32
    return %arg0, %arg1, %c0_i32, %c0_i32_0 : i32, i32, i32, i32
  }
  func.func @transform_3(%arg0: i32, %arg1: i32) -> (i32, i32, i32, i32) {
    %c0_i32 = arith.constant 0 : i32
    %c0_i32_0 = arith.constant 0 : i32
    %c0_i32_1 = arith.constant 0 : i32
    return %arg0, %arg1, %c0_i32, %c0_i32_0 : i32, i32, i32, i32
  }
}

</mosaic_0001>

<bundles_post_ra>
// kernel: tpu_custom_call.1
= control target key start
LH: loop header
LB: loop body
LE: loop exit
PB: predicated region body
PF: predicated region fallthrough
CT: control target
= control target key end

     0   :  { %9 = vsyncpa [#allocation4], 0  ;;  %s14360_s0 = inlined_call_operand.vmem [shape: f32[2,4,8,8,4], index: 0, kind: input, shape index: {}]   ;;  %s14361_s1 = inlined_call_operand.vmem [shape: bf16[9,4,8], index: 1, kind: input, shape index: {}]   ;;  %s14362_s2 = inlined_call_operand.vmem [shape: bf16[2,3,256,8], index: 2, kind: output, shape index: {0}]   ;;  %s14363_s3 = inlined_call_operand.hbm [shape: f32[2,3,1,8], index: 3, kind: output, shape index: {1}]  }
   0x1   :  { %11 = vsyncpa [#allocation4 + $0x1], 0  ;;  %s12041_s12 = smov 0   ;;  %s12043_s13 = smov 0  }
   0x2   :  { %s12045_s14 = smov 0   ;;  %s12047_s15 = smov 0  }
   0x3   :  { %s12049_s16 = smov 0   ;;  %s12051_s17 = smov 0  }
   0x4   :  { %s12053_s18 = smov 0   ;;  %s12055_s19 = smov 0  }
   0x5 LB: > { %s9004_s20 = sadd.s32 4294967295, %s12017_s19   ;;  %s9005_s21 = sadd.s32 4294967294, %s12017_s19   ;;  %s12017_s19 = sphi %s12055_s19, %s17_s19   ;;  %s12013_s18 = sphi %s12053_s18, %s14475_s18   ;;  %s12009_s17 = sphi %s12051_s17, %s14474_s17   ;;  %s12005_s16 = sphi %s12049_s16, %s14473_s16   ;;  %s12001_s15 = sphi %s12047_s15, %s14472_s15   ;;  %s11997_s14 = sphi %s12045_s14, %s14471_s14   ;;  %s11993_s13 = sphi %s12043_s13, %s14470_s13   ;;  %s11989_s12 = sphi %s12041_s12, %s14469_s12  }
   0x6   : > { %s26_s22 = sadd.s32 1, %s12009_s17  ;;  %s29_s23 = sadd.s32 1, %s12013_s18 }
   0x7   : > { %p27_p0 = scmp.ge.s32.totalorder %s26_s22, 3  ;;  %p123_p1 = scmp.ne.s32.totalorder %s11997_s14, %s11993_s13 }
   0x8   : > { %p124_p2 = scmp.eq.s32.totalorder %s9004_s20, 5  ;;  %p129_p5 = scmp.ne.s32.totalorder %s11993_s13, %s11989_s12 }
   0x9   : > { %s14477_s22 = smov (%p27_p0, %s26_s22), 0  ;;  %s14479_s23 = smov (!%p27_p0, %s29_s23), %s12013_s18 }
   0xa   : > { %14395 = sst [smem:[#allocation6_spill]] %s14477_s22  ;;  %s109_s24 = ssub.s32 %s12009_s17, %s14477_s22 }
   0xb   : > { %p12092_p3 = por %p124_p2, %p123_p1  ;;  %p31_p4 = scmp.ge.s32.totalorder %s14479_s23, 2 }
   0xc   : > { %p130_p6 = scmp.eq.s32.totalorder %s9005_s21, 5  ;;  %p9008_p7 = scmp.ge.s32.totalorder %s12017_s19, 1 }
   0xd   : > { %s14481_s23 = smov (%p31_p4, %s14479_s23), 0  ;;  %p159_p9 = scmp.lt.s32.totalorder %s12017_s19, 7 }
   0xe   : > { %14397 = sst [smem:[#allocation7_spill]] %s14481_s23  ;;  %p12101_p8 = por %p130_p6, %p129_p5 }
   0xf   : > { %s108_s27 = ssub.s32 %s12013_s18, %s14481_s23  ;;  %s113_s28 = sadd.s32 1, %s11997_s14 }
  0x10   : > { %s110_s29 = sor.u32 %s109_s24, %s108_s27  ;;  %p160_p10 = pnand %p9008_p7, %p159_p9 }
  0x11   : > { %p111_p11 = scmp.eq.s32.totalorder %s110_s29, 0  ;;  %s189_s4 = sand.u32 (!%p160_p10), 1, %s11993_s13  }
  0x12   : > { %163 = sbr.rel (%p160_p10) target bundleno = 1698 (0x6a2), region = 28  ;;  %p191_p12 = scmp.lt.s32.totalorder (!%p160_p10), %s12005_s16, 1 }
  0x13   : > { %s12110_s30 = scalar_select %p111_p11, %s11997_s14, %s113_s28  }
  0x14   : > { %p198_p13 = scmp.lt.s32.totalorder (!%p160_p10), %s12001_s15, 2  ;;  %s12129_s23 = scalar_lea.vmem (!%p160_p10), [#allocation3], %s189_s4 }
  0x15   : > { %p9013_p0 = scmp.ne.s32.totalorder (!%p160_p10), %s12001_s15, 0 }
  0x19   : > { %s192_s5 = scalar_select %p191_p12, %s12005_s16, 1 }
  0x1a   : > { %s199_s6 = scalar_select %p198_p13, %s12001_s15, 2 }
  0x1b   : > { %s9571_s7 = sshll.u32 %s192_s5, 8  ;;  %s11849_s8 = smul.u32 96, %s192_s5 }
  0x1c   : > { %s12120_s11 = scalar_lea.vmem %s14360_s0, %s9571_s7  ;;  %s9011_s20 = sshll.u32 %s199_s6, 5 }
  0x1d   : > { %s202_s21 = sadd.s32 %s11849_s8, %s9011_s20  ;;  %209 = sbr.rel (%p9013_p0) target bundleno = 620 (0x26c), region = 32 }
  0x1e   : > { %s9012_s24 = sshll.u32 %s202_s21, 2 }
  0x1f   : > { %s12125_s29 = scalar_lea.vmem %s14362_s2, %s9012_s24 }
  0x24   : > { %v9014_v0 = vld [vmem:[%s14361_s1 + $0x2] sm:$0x3]  ;;  %vm548_vm0 = vcmask 1041408   ;;  %v12138_v1 = vld [vmem:[%s14361_s1 + $0x8] sm:$0x3]  ;;  %vm210_vm1 = vcmask 31744  }
  0x25   : > { %11819 = vmatprep.subr.msk.bf16.mxu1 %vm548_vm0, %v9014_v0  ;;  %11823 = vmatprep.subr.msk.bf16.mxu0 %vm548_vm0, %v12138_v1  ;;  %v550_v2 = vsel %vm548_vm0, %v9014_v0, 0  ;;  %v12146_v3 = vsel %vm548_vm0, %v12138_v1, 0  ;;  %vm212_vm2 = vcmask 25600   ;;  %v337_v4 = vld [vmem:[%s12120_s11] sm:$0xff]  ;;  %v338_v5 = vld [vmem:[%s12120_s11 + $0x8] sm:$0xff]  ;;  %v12019_v6 = vmov 0.0  }
  0x26   : > { %10128 = vmatpush3.bf16.msra.mxu1 %v550_v2  ;;  %10264 = vmatpush3.bf16.msra.mxu0 %v12146_v3  ;;  %211 = vst.msk [vmem:[#allocation2] sm:$0xff] %vm210_vm1, %v12019_v6  ;;  %214 = vst.msk [vmem:[#allocation2 + $0x10] sm:$0xff] %vm210_vm1, %v12019_v6  ;;  %v12267_v7 = vld [vmem:[%s14361_s1] sm:$0x3]  ;;  %v12273_v8 = vld [vmem:[%s14361_s1 + $0xa] sm:$0x3] }
  0x27   : > { %213 = vst.msk [vmem:[#allocation2 + $0x8] sm:$0x3] %vm212_vm2, %v12019_v6  ;;  %215 = vst.msk [vmem:[#allocation2 + $0x18] sm:$0x3] %vm212_vm2, %v12019_v6  ;;  %v339_v9 = vld [vmem:[%s12120_s11 + $0x10] sm:$0xff]  ;;  %vm272_vm3 = vcmask 24576   ;;  %11820 = vmatprep.subr.msk.bf16.mxu1 %vm548_vm0, %v12267_v7  ;;  %11825 = vmatprep.subr.msk.bf16.mxu0 %vm548_vm0, %v12273_v8 }
  0x28   : > { %216 = vst.msk [vmem:[#allocation2 + $0x20] sm:$0xff] %vm210_vm1, %v12019_v6  ;;  %218 = vst.msk [vmem:[#allocation2 + $0x30] sm:$0xff] %vm210_vm1, %v12019_v6  ;;  %v12282_v10 = vld [vmem:[%s12120_s11 + $0x18] sm:$0xff]  ;;  %v12285_v11 = vld [vmem:[%s12120_s11 + $0x20] sm:$0xff]  ;;  %v762_v34 = vsel %vm548_vm0, %v12267_v7, 0  ;;  %v1906_v39 = vsel %vm548_vm0, %v12273_v8, 0 }
  0x29   : > { %217 = vst.msk [vmem:[#allocation2 + $0x28] sm:$0x3] %vm212_vm2, %v12019_v6  ;;  %219 = vst.msk [vmem:[#allocation2 + $0x38] sm:$0x3] %vm212_vm2, %v12019_v6  ;;  %v12288_v12 = vld [vmem:[%s12120_s11 + $0x28] sm:$0xff]  ;;  %v343_v13 = vld [vmem:[%s12120_s11 + $0x30] sm:$0xff] }
  0x2a   : > { %220 = vst.msk [vmem:[#allocation2 + $0x40] sm:$0xff] %vm210_vm1, %v12019_v6  ;;  %222 = vst.msk [vmem:[#allocation2 + $0x50] sm:$0xff] %vm210_vm1, %v12019_v6  ;;  %v344_v14 = vld [vmem:[%s12120_s11 + $0x38] sm:$0xff]  ;;  %v345_v15 = vld [vmem:[%s12120_s11 + $0x40] sm:$0xff]  ;;  %vm3112_vm4 = vcmask 60416   ;;  %vm3145_vm5 = vcmask 64512  }
  0x2b   : > { %221 = vst.msk [vmem:[#allocation2 + $0x48] sm:$0x3] %vm212_vm2, %v12019_v6  ;;  %223 = vst.msk [vmem:[#allocation2 + $0x58] sm:$0x3] %vm212_vm2, %v12019_v6  ;;  %v346_v16 = vld [vmem:[%s12120_s11 + $0x48] sm:$0xff]  ;;  %v347_v17 = vld [vmem:[%s12120_s11 + $0x50] sm:$0xff] }
  0x2c   : > { %224 = vst.msk [vmem:[#allocation2 + $0x60] sm:$0xff] %vm210_vm1, %v12019_v6  ;;  %226 = vst.msk [vmem:[#allocation2 + $0x70] sm:$0xff] %vm210_vm1, %v12019_v6  ;;  %v348_v18 = vld [vmem:[%s12120_s11 + $0x58] sm:$0xff]  ;;  %v349_v19 = vld [vmem:[%s12120_s11 + $0x60] sm:$0xff]  ;;  %vm3215_vm6 = vcmask 57344  }
  0x2d   : > { %225 = vst.msk [vmem:[#allocation2 + $0x68] sm:$0x3] %vm212_vm2, %v12019_v6  ;;  %227 = vst.msk [vmem:[#allocation2 + $0x78] sm:$0x3] %vm212_vm2, %v12019_v6  ;;  %v350_v20 = vld [vmem:[%s12120_s11 + $0x68] sm:$0xff]  ;;  %v351_v21 = vld [vmem:[%s12120_s11 + $0x70] sm:$0xff] }
  0x2e   : > { %228 = vst.msk [vmem:[#allocation2 + $0x80] sm:$0xff] %vm210_vm1, %v12019_v6  ;;  %230 = vst.msk [vmem:[#allocation2 + $0x90] sm:$0xff] %vm210_vm1, %v12019_v6  ;;  %v352_v22 = vld [vmem:[%s12120_s11 + $0x78] sm:$0xff]  ;;  %v353_v23 = vld [vmem:[%s12120_s11 + $0x80] sm:$0xff] }
  0x2f   : > { %229 = vst.msk [vmem:[#allocation2 + $0x88] sm:$0x3] %vm212_vm2, %v12019_v6  ;;  %231 = vst.msk [vmem:[#allocation2 + $0x98] sm:$0x3] %vm212_vm2, %v12019_v6  ;;  %v354_v24 = vld [vmem:[%s12120_s11 + $0x88] sm:$0xff]  ;;  %v355_v25 = vld [vmem:[%s12120_s11 + $0x90] sm:$0xff] }
  0x30   : > { %233 = vst.msk [vmem:[#allocation2 + $0x320] sm:$0xff] %vm210_vm1, %v12019_v6  ;;  %235 = vst.msk [vmem:[#allocation2 + $0x330] sm:$0xff] %vm210_vm1, %v12019_v6  ;;  %v356_v26 = vld [vmem:[%s12120_s11 + $0x98] sm:$0xff]  ;;  %v12467_v42 = vld [vmem:[%s14361_s1 + $0xc] sm:$0x3] }
  0x31   : > { %234 = vst.msk [vmem:[#allocation2 + $0x328] sm:$0x3] %vm212_vm2, %v12019_v6  ;;  %236 = vst.msk [vmem:[#allocation2 + $0x338] sm:$0x3] %vm212_vm2, %v12019_v6  ;;  %v357_v51 = vld [vmem:[%s12120_s11 + $0xa0] sm:$0xff]  ;;  %v358_v59 = vld [vmem:[%s12120_s11 + $0xa8] sm:$0xff] }
  0x32   : > { %237 = vst.msk [vmem:[#allocation2 + $0x340] sm:$0xff] %vm210_vm1, %v12019_v6  ;;  %239 = vst.msk [vmem:[#allocation2 + $0x350] sm:$0xff] %vm210_vm1, %v12019_v6  ;;  %v359_v60 = vld [vmem:[%s12120_s11 + $0xb0] sm:$0xff]  ;;  %v361_v63 = vld [vmem:[%s12120_s11 + $0xc0] sm:$0xff] }
  0x33   : > { %238 = vst.msk [vmem:[#allocation2 + $0x348] sm:$0x3] %vm212_vm2, %v12019_v6  ;;  %240 = vst.msk [vmem:[#allocation2 + $0x358] sm:$0x3] %vm212_vm2, %v12019_v6  ;;  %v363_v7 = vld [vmem:[%s12120_s11 + $0xd0] sm:$0xff] }
  0x34   : > { %241 = vst.msk [vmem:[#allocation2 + $0x360] sm:$0xff] %vm210_vm1, %v12019_v6  ;;  %243 = vst.msk [vmem:[#allocation2 + $0x370] sm:$0xff] %vm210_vm1, %v12019_v6 }
  0x35   : > { %242 = vst.msk [vmem:[#allocation2 + $0x368] sm:$0x3] %vm212_vm2, %v12019_v6  ;;  %244 = vst.msk [vmem:[#allocation2 + $0x378] sm:$0x3] %vm212_vm2, %v12019_v6 }
  0x36   : > { %245 = vst.msk [vmem:[#allocation2 + $0x380] sm:$0xff] %vm210_vm1, %v12019_v6  ;;  %247 = vst.msk [vmem:[#allocation2 + $0x390] sm:$0xff] %vm210_vm1, %v12019_v6 }
  0x37   : > { %246 = vst.msk [vmem:[#allocation2 + $0x388] sm:$0x3] %vm212_vm2, %v12019_v6  ;;  %248 = vst.msk [vmem:[#allocation2 + $0x398] sm:$0x3] %vm212_vm2, %v12019_v6 }
  0x38   : > { %249 = vst.msk [vmem:[#allocation2 + $0x3a0] sm:$0xff] %vm210_vm1, %v12019_v6  ;;  %251 = vst.msk [vmem:[#allocation2 + $0x3b0] sm:$0xff] %vm210_vm1, %v12019_v6 }
  0x39   : > { %250 = vst.msk [vmem:[#allocation2 + $0x3a8] sm:$0x3] %vm212_vm2, %v12019_v6  ;;  %252 = vst.msk [vmem:[#allocation2 + $0x3b8] sm:$0x3] %vm212_vm2, %v12019_v6 }
  0x3a   : > { %254 = vst.msk [vmem:[#allocation2 + $0xa0] sm:$0xff] %vm210_vm1, %v12019_v6  ;;  %369 = vst.msk [vmem:[#allocation2 + $0xb1] sm:$0xff] %vm210_vm1, %v337_v4 }
  0x3b   : > { %255 = vst.msk [vmem:[#allocation2 + $0xa8] sm:$0x3] %vm212_vm2, %v12019_v6  ;;  %257 = vst.msk [vmem:[#allocation2 + $0x148] sm:$0x3] %vm212_vm2, %v12019_v6 }
  0x3c   : > { %256 = vst.msk [vmem:[#allocation2 + $0x140] sm:$0xff] %vm210_vm1, %v12019_v6  ;;  %258 = vst.msk [vmem:[#allocation2 + $0x1e0] sm:$0xff] %vm210_vm1, %v12019_v6 }
  0x3d   : > { %259 = vst.msk [vmem:[#allocation2 + $0x1e8] sm:$0x3] %vm212_vm2, %v12019_v6  ;;  %261 = vst.msk [vmem:[#allocation2 + $0x288] sm:$0x3] %vm212_vm2, %v12019_v6 }
  0x3e   : > { %260 = vst.msk [vmem:[#allocation2 + $0x280] sm:$0xff] %vm210_vm1, %v12019_v6  ;;  %263 = vst.msk [vmem:[#allocation2 + $0x130] sm:$0xff] %vm210_vm1, %v12019_v6 }
  0x3f   : > { %264 = vst.msk [vmem:[#allocation2 + $0x138] sm:$0x3] %vm212_vm2, %v12019_v6  ;;  %266 = vst.msk [vmem:[#allocation2 + $0x1d8] sm:$0x3] %vm212_vm2, %v12019_v6 }
  0x40   : > { %265 = vst.msk [vmem:[#allocation2 + $0x1d0] sm:$0xff] %vm210_vm1, %v12019_v6  ;;  %267 = vst.msk [vmem:[#allocation2 + $0x270] sm:$0xff] %vm210_vm1, %v12019_v6 }
  0x41   : > { %268 = vst.msk [vmem:[#allocation2 + $0x278] sm:$0x3] %vm212_vm2, %v12019_v6  ;;  %270 = vst.msk [vmem:[#allocation2 + $0x318] sm:$0x3] %vm212_vm2, %v12019_v6  ;;  %v451_v28 = vld [vmem:[#allocation2 + $0xb1] sm:$0xff] }
  0x42   : > { %269 = vst.msk [vmem:[#allocation2 + $0x310] sm:$0xff] %vm210_vm1, %v12019_v6  ;;  %370 = vst.msk [vmem:[#allocation2 + $0xc1] sm:$0xff] %vm210_vm1, %v338_v5  ;;  %v450_v27 = vld [vmem:[#allocation2 + $0xa1] sm:$0xff] }
  0x43   : > { %371 = vst.msk [vmem:[#allocation2 + $0xd1] sm:$0xff] %vm210_vm1, %v339_v9  ;;  %372 = vst.msk [vmem:[#allocation2 + $0xe1] sm:$0xff] %vm210_vm1, %v12282_v10  ;;  %v482_v30 = vpack.c.bf16 %v451_v28, %v450_v27  ;;  %v458_v45 = vld [vmem:[#allocation2 + $0x141] sm:$0xff]  ;;  %v364_v10 = vld [vmem:[%s12120_s11 + $0xd8] sm:$0xff] }
  0x44   : > { %305 = vst.msk [vmem:[#allocation2 + $0xb9] sm:$0x1] %vm272_vm3, %v12019_v6  ;;  %306 = vst.msk [vmem:[#allocation2 + $0xc9] sm:$0x1] %vm272_vm3, %v12019_v6  ;;  %v362_v5 = vld [vmem:[%s12120_s11 + $0xc8] sm:$0xff] }
  0x45   : > { %273 = vst.msk [vmem:[#allocation2 + $0xb0] sm:$0x1] %vm272_vm3, %v12019_v6  ;;  %274 = vst.msk [vmem:[#allocation2 + $0xc0] sm:$0x1] %vm272_vm3, %v12019_v6  ;;  %10129 = vmatprep.mubr.msk.bf16.mxu1 %vm210_vm1, %v482_v30 }
  0x46   : > { %275 = vst.msk [vmem:[#allocation2 + $0xd0] sm:$0x1] %vm272_vm3, %v12019_v6  ;;  %276 = vst.msk [vmem:[#allocation2 + $0xe0] sm:$0x1] %vm272_vm3, %v12019_v6 }
  0x47   : > { %277 = vst.msk [vmem:[#allocation2 + $0xf0] sm:$0x1] %vm272_vm3, %v12019_v6  ;;  %278 = vst.msk [vmem:[#allocation2 + $0x100] sm:$0x1] %vm272_vm3, %v12019_v6 }
  0x48   : > { %279 = vst.msk [vmem:[#allocation2 + $0x110] sm:$0x1] %vm272_vm3, %v12019_v6  ;;  %280 = vst.msk [vmem:[#allocation2 + $0x120] sm:$0x1] %vm272_vm3, %v12019_v6 }
  0x49   : > { %281 = vst.msk [vmem:[#allocation2 + $0x150] sm:$0x1] %vm272_vm3, %v12019_v6  ;;  %282 = vst.msk [vmem:[#allocation2 + $0x160] sm:$0x1] %vm272_vm3, %v12019_v6  ;;  %v1514_v29 = vld [vmem:[#allocation2 + $0xc1] sm:$0xff] }
  0x4a   : > { %283 = vst.msk [vmem:[#allocation2 + $0x170] sm:$0x1] %vm272_vm3, %v12019_v6  ;;  %284 = vst.msk [vmem:[#allocation2 + $0x180] sm:$0x1] %vm272_vm3, %v12019_v6  ;;  %v1545_v31 = vpack.c.bf16 %v1514_v29, %v451_v28  ;;  %v453_v32 = vld [vmem:[#allocation2 + $0xd1] sm:$0xff]  ;;  %v1516_v35 = vld [vmem:[#allocation2 + $0xe1] sm:$0xff] }
  0x4b   : > { %285 = vst.msk [vmem:[#allocation2 + $0x190] sm:$0x1] %vm272_vm3, %v12019_v6  ;;  %286 = vst.msk [vmem:[#allocation2 + $0x1a0] sm:$0x1] %vm272_vm3, %v12019_v6  ;;  %v12452_v33 = vpack.c.bf16 %v453_v32, %v1514_v29  ;;  %v1546_v38 = vpack.c.bf16 %v1516_v35, %v453_v32  ;;  %v12479_v49 = vld [vmem:[#allocation2 + $0xc2] sm:$0xff] }
  0x4c   : > { %287 = vst.msk [vmem:[#allocation2 + $0x1b0] sm:$0x1] %vm272_vm3, %v12019_v6  ;;  %288 = vst.msk [vmem:[#allocation2 + $0x1c0] sm:$0x1] %vm272_vm3, %v12019_v6  ;;  %10265 = vmatprep.mubr.msk.bf16.mxu0 %vm210_vm1, %v1545_v31  ;;  %v466_v28 = vld [vmem:[#allocation2 + $0x1e1] sm:$0xff]  ;;  %v12572_v31 = vld [vmem:[#allocation2 + $0xb2] sm:$0xff] }
  0x4d   : > { %289 = vst.msk [vmem:[#allocation2 + $0x1f0] sm:$0x1] %vm272_vm3, %v12019_v6  ;;  %290 = vst.msk [vmem:[#allocation2 + $0x200] sm:$0x1] %vm272_vm3, %v12019_v6  ;;  %10130 = vmatmul.mubr.msk.bf16.vlgmr.msra.gmra.mrb[0].mxu1 %vm210_vm1, %v12452_v33  ;;  %10266 = vmatmul.mubr.msk.bf16.vlgmr.msra.gmra.mrb[0].mxu0 %vm210_vm1, %v1546_v38 }
  0x4e   : > { %291 = vst.msk [vmem:[#allocation2 + $0x210] sm:$0x1] %vm272_vm3, %v12019_v6  ;;  %292 = vst.msk [vmem:[#allocation2 + $0x220] sm:$0x1] %vm272_vm3, %v12019_v6  ;;  %10162 = vmatpush3.bf16.msra.mxu1 %v762_v34  ;;  %10298 = vmatpush3.bf16.msra.mxu0 %v1906_v39 }
  0x4f   : > { %293 = vst.msk [vmem:[#allocation2 + $0x230] sm:$0x1] %vm272_vm3, %v12019_v6  ;;  %294 = vst.msk [vmem:[#allocation2 + $0x240] sm:$0x1] %vm272_vm3, %v12019_v6  ;;  %11826 = vmatprep.subr.msk.bf16.mxu0 %vm548_vm0, %v12467_v42 }
  0x50   : > { %295 = vst.msk [vmem:[#allocation2 + $0x250] sm:$0x1] %vm272_vm3, %v12019_v6  ;;  %296 = vst.msk [vmem:[#allocation2 + $0x260] sm:$0x1] %vm272_vm3, %v12019_v6 }
  0x51   : > { %297 = vst.msk [vmem:[#allocation2 + $0x290] sm:$0x1] %vm272_vm3, %v12019_v6  ;;  %298 = vst.msk [vmem:[#allocation2 + $0x2a0] sm:$0x1] %vm272_vm3, %v12019_v6 }
  0x52   : > { %299 = vst.msk [vmem:[#allocation2 + $0x2b0] sm:$0x1] %vm272_vm3, %v12019_v6  ;;  %300 = vst.msk [vmem:[#allocation2 + $0x2c0] sm:$0x1] %vm272_vm3, %v12019_v6 }
  0x53   : > { %301 = vst.msk [vmem:[#allocation2 + $0x2d0] sm:$0x1] %vm272_vm3, %v12019_v6  ;;  %302 = vst.msk [vmem:[#allocation2 + $0x2e0] sm:$0x1] %vm272_vm3, %v12019_v6 }
  0x54   : > { %303 = vst.msk [vmem:[#allocation2 + $0x2f0] sm:$0x1] %vm272_vm3, %v12019_v6  ;;  %304 = vst.msk [vmem:[#allocation2 + $0x300] sm:$0x1] %vm272_vm3, %v12019_v6 }
  0x55   : > { %307 = vst.msk [vmem:[#allocation2 + $0xd9] sm:$0x1] %vm272_vm3, %v12019_v6  ;;  %308 = vst.msk [vmem:[#allocation2 + $0xe9] sm:$0x1] %vm272_vm3, %v12019_v6 }
  0x56   : > { %309 = vst.msk [vmem:[#allocation2 + $0xf9] sm:$0x1] %vm272_vm3, %v12019_v6  ;;  %310 = vst.msk [vmem:[#allocation2 + $0x109] sm:$0x1] %vm272_vm3, %v12019_v6 }
  0x57   : > { %311 = vst.msk [vmem:[#allocation2 + $0x119] sm:$0x1] %vm272_vm3, %v12019_v6  ;;  %312 = vst.msk [vmem:[#allocation2 + $0x129] sm:$0x1] %vm272_vm3, %v12019_v6 }
  0x58   : > { %313 = vst.msk [vmem:[#allocation2 + $0x159] sm:$0x1] %vm272_vm3, %v12019_v6  ;;  %314 = vst.msk [vmem:[#allocation2 + $0x169] sm:$0x1] %vm272_vm3, %v12019_v6 }
  0x59   : > { %315 = vst.msk [vmem:[#allocation2 + $0x179] sm:$0x1] %vm272_vm3, %v12019_v6  ;;  %316 = vst.msk [vmem:[#allocation2 + $0x189] sm:$0x1] %vm272_vm3, %v12019_v6 }
  0x5a   : > { %317 = vst.msk [vmem:[#allocation2 + $0x199] sm:$0x1] %vm272_vm3, %v12019_v6  ;;  %318 = vst.msk [vmem:[#allocation2 + $0x1a9] sm:$0x1] %vm272_vm3, %v12019_v6 }
  0x5b   : > { %319 = vst.msk [vmem:[#allocation2 + $0x1b9] sm:$0x1] %vm272_vm3, %v12019_v6  ;;  %320 = vst.msk [vmem:[#allocation2 + $0x1c9] sm:$0x1] %vm272_vm3, %v12019_v6 }
  0x5c   : > { %321 = vst.msk [vmem:[#allocation2 + $0x1f9] sm:$0x1] %vm272_vm3, %v12019_v6  ;;  %322 = vst.msk [vmem:[#allocation2 + $0x209] sm:$0x1] %vm272_vm3, %v12019_v6  ;;  %v12481_v50 = vld [vmem:[#allocation2 + $0xd2] sm:$0xff]  ;;  %v12485_v54 = vld [vmem:[#allocation2 + $0xe2] sm:$0xff] }
  0x5d   : > { %323 = vst.msk [vmem:[#allocation2 + $0x219] sm:$0x1] %vm272_vm3, %v12019_v6  ;;  %324 = vst.msk [vmem:[#allocation2 + $0x229] sm:$0x1] %vm272_vm3, %v12019_v6  ;;  %v12494_v57 = vpack.c.bf16 %v12481_v50, %v12479_v49 }
  0x5e   : > { %325 = vst.msk [vmem:[#allocation2 + $0x239] sm:$0x1] %vm272_vm3, %v12019_v6  ;;  %326 = vst.msk [vmem:[#allocation2 + $0x249] sm:$0x1] %vm272_vm3, %v12019_v6 }
  0x5f   : > { %327 = vst.msk [vmem:[#allocation2 + $0x259] sm:$0x1] %vm272_vm3, %v12019_v6  ;;  %328 = vst.msk [vmem:[#allocation2 + $0x269] sm:$0x1] %vm272_vm3, %v12019_v6 }
  0x60   : > { %329 = vst.msk [vmem:[#allocation2 + $0x299] sm:$0x1] %vm272_vm3, %v12019_v6  ;;  %330 = vst.msk [vmem:[#allocation2 + $0x2a9] sm:$0x1] %vm272_vm3, %v12019_v6 }
  0x61   : > { %331 = vst.msk [vmem:[#allocation2 + $0x2b9] sm:$0x1] %vm272_vm3, %v12019_v6  ;;  %332 = vst.msk [vmem:[#allocation2 + $0x2c9] sm:$0x1] %vm272_vm3, %v12019_v6 }
  0x62   : > { %333 = vst.msk [vmem:[#allocation2 + $0x2d9] sm:$0x1] %vm272_vm3, %v12019_v6  ;;  %334 = vst.msk [vmem:[#allocation2 + $0x2e9] sm:$0x1] %vm272_vm3, %v12019_v6 }
  0x63   : > { %335 = vst.msk [vmem:[#allocation2 + $0x2f9] sm:$0x1] %vm272_vm3, %v12019_v6  ;;  %336 = vst.msk [vmem:[#allocation2 + $0x309] sm:$0x1] %vm272_vm3, %v12019_v6 }
  0x64   : > { %373 = vst.msk [vmem:[#allocation2 + $0xf1] sm:$0xff] %vm210_vm1, %v12285_v11  ;;  %374 = vst.msk [vmem:[#allocation2 + $0x101] sm:$0xff] %vm210_vm1, %v12288_v12  ;;  %v365_v11 = vld [vmem:[%s12120_s11 + $0xe0] sm:$0xff] }
  0x65   : > { %375 = vst.msk [vmem:[#allocation2 + $0x111] sm:$0xff] %vm210_vm1, %v343_v13  ;;  %376 = vst.msk [vmem:[#allocation2 + $0x121] sm:$0xff] %vm210_vm1, %v344_v14  ;;  %v366_v14 = vld [vmem:[%s12120_s11 + $0xe8] sm:$0xff] }
  0x66   : > { %377 = vst.msk [vmem:[#allocation2 + $0x151] sm:$0xff] %vm210_vm1, %v345_v15  ;;  %378 = vst.msk [vmem:[#allocation2 + $0x161] sm:$0xff] %vm210_vm1, %v346_v16  ;;  %v367_v15 = vld [vmem:[%s12120_s11 + $0xf0] sm:$0xff] }
  0x67   : > { %379 = vst.msk [vmem:[#allocation2 + $0x171] sm:$0xff] %vm210_vm1, %v347_v17  ;;  %380 = vst.msk [vmem:[#allocation2 + $0x181] sm:$0xff] %vm210_vm1, %v348_v18 }
  0x68   : > { %381 = vst.msk [vmem:[#allocation2 + $0x191] sm:$0xff] %vm210_vm1, %v349_v19  ;;  %382 = vst.msk [vmem:[#allocation2 + $0x1a1] sm:$0xff] %vm210_vm1, %v350_v20  ;;  %v12544_v19 = vld [vmem:[%s14361_s1 + $0x4] sm:$0x3] }
  0x69   : > { %383 = vst.msk [vmem:[#allocation2 + $0x1b1] sm:$0xff] %vm210_vm1, %v351_v21  ;;  %384 = vst.msk [vmem:[#allocation2 + $0x1c1] sm:$0xff] %vm210_vm1, %v352_v22  ;;  %11821 = vmatprep.subr.msk.bf16.mxu1 %vm548_vm0, %v12544_v19 }
  0x6a   : > { %385 = vst.msk [vmem:[#allocation2 + $0x1f1] sm:$0xff] %vm210_vm1, %v353_v23  ;;  %386 = vst.msk [vmem:[#allocation2 + $0x201] sm:$0xff] %vm210_vm1, %v354_v24 }
  0x6b   : > { %387 = vst.msk [vmem:[#allocation2 + $0x211] sm:$0xff] %vm210_vm1, %v355_v25  ;;  %388 = vst.msk [vmem:[#allocation2 + $0x221] sm:$0xff] %vm210_vm1, %v356_v26  ;;  %v455_v36 = vld [vmem:[#allocation2 + $0xf1] sm:$0xff]  ;;  %v1518_v37 = vld [vmem:[#allocation2 + $0x101] sm:$0xff] }
  0x6c   : > { %v12460_v40 = vpack.c.bf16 %v455_v36, %v1516_v35  ;;  %v1547_v41 = vpack.c.bf16 %v1518_v37, %v455_v36  ;;  %v457_v43 = vld [vmem:[#allocation2 + $0x111] sm:$0xff]  ;;  %v12472_v44 = vld [vmem:[#allocation2 + $0x121] sm:$0xff]  ;;  %389 = vst.msk [vmem:[#allocation2 + $0x231] sm:$0xff] %vm210_vm1, %v357_v51  ;;  %390 = vst.msk [vmem:[#allocation2 + $0x241] sm:$0xff] %vm210_vm1, %v358_v59  ;;  %v2201_v59 = vsel %vm548_vm0, %v12467_v42, 0 }
  0x6d   : > { %v459_v46 = vld [vmem:[#allocation2 + $0x151] sm:$0xff]  ;;  %v1522_v47 = vld [vmem:[#allocation2 + $0x161] sm:$0xff]  ;;  %v12477_v48 = vpack.c.bf16 %v457_v43, %v1518_v37  ;;  %v1548_v52 = vpack.c.bf16 %v12472_v44, %v457_v43  ;;  %391 = vst.msk [vmem:[#allocation2 + $0x251] sm:$0xff] %vm210_vm1, %v359_v60  ;;  %393 = vst.msk [vmem:[#allocation2 + $0x291] sm:$0xff] %vm210_vm1, %v361_v63  ;;  %v1839_v37 = vpack.c.bf16 %v12479_v49, %v12572_v31 }
  0x6e   : > { %10133 = vmatprep.mubr.msk.bf16.mxu1 %vm210_vm1, %v12460_v40  ;;  %10269 = vmatprep.mubr.msk.bf16.mxu0 %vm210_vm1, %v1547_v41  ;;  %v486_v53 = vpack.c.bf16 %v459_v46, %v458_v45  ;;  %v12488_v55 = vld [vmem:[#allocation2 + $0xf2] sm:$0xff]  ;;  %v12490_v56 = vld [vmem:[#allocation2 + $0x102] sm:$0xff]  ;;  %v1549_v58 = vpack.c.bf16 %v1522_v47, %v459_v46  ;;  %394 = vst.msk [vmem:[#allocation2 + $0x2a1] sm:$0xff] %vm210_vm1, %v362_v5  ;;  %395 = vst.msk [vmem:[#allocation2 + $0x2b1] sm:$0xff] %vm210_vm1, %v363_v7 }
  0x6f   : > { %v12498_v61 = vld [vmem:[#allocation2 + $0x112] sm:$0xff]  ;;  %v12502_v62 = vpack.c.bf16 %v12488_v55, %v12485_v54  ;;  %10134 = vmatmul.mubr.msk.bf16.gmra.mrb[4].mxu1 %vm210_vm1, %v12477_v48  ;;  %v1524_v4 = vld [vmem:[#allocation2 + $0x181] sm:$0xff]  ;;  %10270 = vmatmul.mubr.msk.bf16.gmra.mrb[4].mxu0 %vm210_vm1, %v1548_v52  ;;  %396 = vst.msk [vmem:[#allocation2 + $0x2c1] sm:$0xff] %vm210_vm1, %v364_v10  ;;  %397 = vst.msk [vmem:[#allocation2 + $0x2d1] sm:$0xff] %vm210_vm1, %v365_v11  ;;  %v1840_v52 = vpack.c.bf16 %v12485_v54, %v12481_v50 }
  0x70   : > { %v12509_v0 = vpack.c.bf16 %v12498_v61, %v12490_v56  ;;  %v461_v2 = vld [vmem:[#allocation2 + $0x171] sm:$0xff]  ;;  %10137 = vmatprep.mubr.msk.bf16.mxu1 %vm210_vm1, %v486_v53  ;;  %v12517_v6 = vld [vmem:[#allocation2 + $0x162] sm:$0xff]  ;;  %10273 = vmatprep.mubr.msk.bf16.mxu0 %vm210_vm1, %v1549_v58  ;;  %398 = vst.msk [vmem:[#allocation2 + $0x2e1] sm:$0xff] %vm210_vm1, %v366_v14  ;;  %399 = vst.msk [vmem:[#allocation2 + $0x2f1] sm:$0xff] %vm210_vm1, %v367_v15  ;;  %v1841_v58 = vpack.c.bf16 %v12490_v56, %v12488_v55 }
  0x71   : > { %v12521_v8 = vld [vmem:[#allocation2 + $0x172] sm:$0xff]  ;;  %v1526_v13 = vld [vmem:[#allocation2 + $0x1a1] sm:$0xff]  ;;  %v12535_v16 = vpack.c.bf16 %v461_v2, %v1522_v47  ;;  %v1550_v17 = vpack.c.bf16 %v1524_v4, %v461_v2  ;;  %v12629_v50 = vld [vmem:[%s14361_s1 + $0xe] sm:$0x3] }
  0x72   : > { %v463_v9 = vld [vmem:[#allocation2 + $0x191] sm:$0xff]  ;;  %v12529_v12 = vpack.c.bf16 %v12521_v8, %v12517_v6  ;;  %v12550_v21 = vld [vmem:[#allocation2 + $0x182] sm:$0xff] }
  0x73   : > { %v12539_v18 = vpack.c.bf16 %v463_v9, %v1524_v4  ;;  %v1551_v20 = vpack.c.bf16 %v1526_v13, %v463_v9  ;;  %v12552_v22 = vld [vmem:[#allocation2 + $0x192] sm:$0xff]  ;;  %v12557_v24 = vld [vmem:[#allocation2 + $0x1a2] sm:$0xff] }
  0x74   : > { %v465_v23 = vld [vmem:[#allocation2 + $0x1b1] sm:$0xff]  ;;  %v12563_v26 = vpack.c.bf16 %v12552_v22, %v12550_v21  ;;  %v12566_v27 = vld [vmem:[#allocation2 + $0x1c1] sm:$0xff] }
  0x75   : > { %v12559_v25 = vld [vmem:[#allocation2 + $0x1b2] sm:$0xff]  ;;  %v12574_v32 = vpack.c.bf16 %v465_v23, %v1526_v13  ;;  %v1552_v34 = vpack.c.bf16 %v12566_v27, %v465_v23  ;;  %v12583_v38 = vld [vmem:[#allocation2 + $0x201] sm:$0xff] }
  0x76   : > { %v467_v29 = vld [vmem:[#allocation2 + $0x1f1] sm:$0xff]  ;;  %v12570_v30 = vpack.c.bf16 %v12559_v25, %v12557_v24  ;;  %14399 = vst [vmem:[#allocation8_spill] sm:$0xff] %v12583_v38  ;;  %v12589_v41 = vld [vmem:[#allocation2 + $0x202] sm:$0xff] }
  0x77   : > { %10138 = vmatmul.mubr.msk.bf16.gmra.mrb[8].mxu1 %vm210_vm1, %v12535_v16  ;;  %10274 = vmatmul.mubr.msk.bf16.gmra.mrb[8].mxu0 %vm210_vm1, %v1550_v17  ;;  %v490_v35 = vpack.c.bf16 %v467_v29, %v466_v28  ;;  %v360_v36 = vld [vmem:[%s12120_s11 + $0xb8] sm:$0xff]  ;;  %v12594_v45 = vld [vmem:[#allocation2 + $0x221] sm:$0xff] }
  0x78   : > { %10141 = vmatprep.mubr.msk.bf16.mxu1 %vm210_vm1, %v12539_v18  ;;  %10277 = vmatprep.mubr.msk.bf16.mxu0 %vm210_vm1, %v1551_v20  ;;  %392 = vst.msk [vmem:[#allocation2 + $0x261] sm:$0xff] %vm210_vm1, %v360_v36  ;;  %v12587_v39 = vld [vmem:[#allocation2 + $0x211] sm:$0xff]  ;;  %14401 = vst [vmem:[#allocation10_spill] sm:$0xff] %v12594_v45  ;;  %v12618_v60 = vld [vmem:[#allocation2 + $0x241] sm:$0xff] }
  0x79   : > { %14400 = vst [vmem:[#allocation9_spill] sm:$0xff] %v12587_v39  ;;  %v12591_v43 = vld [vmem:[#allocation2 + $0x212] sm:$0xff]  ;;  %v12606_v51 = vpack.c.bf16 %v12587_v39, %v12583_v38  ;;  %14403 = vst [vmem:[#allocation12_spill] sm:$0xff] %v12618_v60  ;;  %v12624_v2 = vld [vmem:[#allocation2 + $0x222] sm:$0xff] }
  0x7a   : > { %v12596_v46 = vld [vmem:[#allocation2 + $0x231] sm:$0xff]  ;;  %v12601_v49 = vpack.c.bf16 %v12591_v43, %v12589_v41  ;;  %v12636_v54 = vld [vmem:[#allocation2 + $0x242] sm:$0xff] }
  0x7b   : > { %14402 = vst [vmem:[#allocation11_spill] sm:$0xff] %v12596_v46  ;;  %v368_v47 = vld [vmem:[%s12120_s11 + $0xf8] sm:$0xff]  ;;  %v12612_v53 = vpack.c.bf16 %v12596_v46, %v12594_v45  ;;  %v12641_v56 = vld [vmem:[#allocation2 + $0x122] sm:$0xff] }
  0x7c   : > { %400 = vst.msk [vmem:[#allocation2 + $0x301] sm:$0xff] %vm210_vm1, %v368_v47  ;;  %v12622_v63 = vld [vmem:[#allocation2 + $0x251] sm:$0xff]  ;;  %14405 = vst [vmem:[#allocation14_spill] sm:$0xff] %v12641_v56  ;;  %v474_v4 = vld [vmem:[#allocation2 + $0x281] sm:$0xff]  ;;  %v1842_v13 = vpack.c.bf16 %v12641_v56, %v12498_v61 }
  0x7d   : > { %14404 = vst [vmem:[#allocation13_spill] sm:$0xff] %v12622_v63  ;;  %v12634_v42 = vld [vmem:[#allocation2 + $0x232] sm:$0xff]  ;;  %v12659_v11 = vpack.c.bf16 %v12622_v63, %v12618_v60  ;;  %v12668_v17 = vld [vmem:[#allocation2 + $0x2a1] sm:$0xff] }
  0x7e   : > { %v12638_v55 = vld [vmem:[#allocation2 + $0x252] sm:$0xff]  ;;  %v12647_v7 = vpack.c.bf16 %v12634_v42, %v12624_v2  ;;  %14407 = vst [vmem:[#allocation16_spill] sm:$0xff] %v12668_v17  ;;  %v12674_v23 = vld [vmem:[#allocation2 + $0x2a2] sm:$0xff] }
  0x7f   : > { %10142 = vmatmul.mubr.msk.bf16.gmra.mrb[12].mxu1 %vm210_vm1, %v12574_v32  ;;  %10278 = vmatmul.mubr.msk.bf16.gmra.mrb[12].mxu0 %vm210_vm1, %v1552_v34  ;;  %v12643_v5 = vld [vmem:[#allocation2 + $0x291] sm:$0xff]  ;;  %v12651_v9 = vpack.c.bf16 %v12638_v55, %v12636_v54  ;;  %v12679_v61 = vld [vmem:[#allocation2 + $0x2c1] sm:$0xff] }
  0x80   : > { %10145 = vmatprep.mubr.msk.bf16.mxu1 %vm210_vm1, %v490_v35  ;;  %10299 = vmatprep.mubr.msk.bf16.mxu0 %vm210_vm1, %v1839_v37  ;;  %14406 = vst [vmem:[#allocation15_spill] sm:$0xff] %v12643_v5  ;;  %v12653_v10 = vld [vmem:[#allocation2 + $0x152] sm:$0xff]  ;;  %v494_v14 = vpack.c.bf16 %v12643_v5, %v474_v4  ;;  %14409 = vst [vmem:[#allocation18_spill] sm:$0xff] %v12679_v61  ;;  %v1844_v35 = vpack.c.bf16 %v12550_v21, %v12521_v8  ;;  %v12701_v47 = vld [vmem:[#allocation2 + $0x2e1] sm:$0xff] }
  0x81   : > { %v1843_v15 = vpack.c.bf16 %v12517_v6, %v12653_v10  ;;  %v12672_v20 = vld [vmem:[#allocation2 + $0x2b1] sm:$0xff]  ;;  %v1845_v37 = vpack.c.bf16 %v12557_v24, %v12552_v22  ;;  %14411 = vst [vmem:[#allocation20_spill] sm:$0xff] %v12701_v47  ;;  %v12712_v21 = vld [vmem:[#allocation2 + $0x2e2] sm:$0xff] }
  0x82   : > { %14408 = vst [vmem:[#allocation17_spill] sm:$0xff] %v12672_v20  ;;  %v12676_v28 = vld [vmem:[#allocation2 + $0x2b2] sm:$0xff]  ;;  %v12689_v34 = vpack.c.bf16 %v12672_v20, %v12668_v17  ;;  %v12721_v24 = vld [vmem:[#allocation2 + $0x1c2] sm:$0xff] }
  0x83   : > { %v12681_v6 = vld [vmem:[#allocation2 + $0x2d1] sm:$0xff]  ;;  %v12685_v29 = vpack.c.bf16 %v12676_v28, %v12674_v23  ;;  %14413 = vst [vmem:[#allocation22_spill] sm:$0xff] %v12721_v24  ;;  %v401_v4 = vld [vmem:[#allocation2 + $0xa0] sm:$0xff] }
  0x84   : > { %14410 = vst [vmem:[#allocation19_spill] sm:$0xff] %v12681_v6  ;;  %v12695_v36 = vpack.c.bf16 %v12681_v6, %v12679_v61  ;;  %v12710_v8 = vld [vmem:[#allocation2 + $0x2f1] sm:$0xff]  ;;  %v1846_v6 = vpack.c.bf16 %v12721_v24, %v12559_v25  ;;  %v12742_v20 = vld [vmem:[#allocation2 + $0xc0] sm:$0xff] }
  0x85   : > { %14412 = vst [vmem:[#allocation21_spill] sm:$0xff] %v12710_v8  ;;  %v12746_v17 = vld [vmem:[#allocation2 + $0xd0] sm:$0xff]  ;;  %v12775_v25 = vld [vmem:[%s14361_s1 + $0x6] sm:$0x3] }
  0x86   : > { %v12789_v63 = vld [vmem:[#allocation2 + $0x150] sm:$0xff]  ;;  %v12805_v45 = vld [vmem:[#allocation2 + $0x160] sm:$0xff] }
  0x87   : > { %10146 = vmatmul.mubr.msk.bf16.gmra.mrb[16].mxu1 %vm210_vm1, %v12606_v51  ;;  %10300 = vmatmul.mubr.msk.bf16.vlgmr.msra.gmra.mrb[0].mxu0 %vm210_vm1, %v1840_v52  ;;  %v12703_v52 = vld [vmem:[#allocation2 + $0x2c2] sm:$0xff]  ;;  %v12884_v24 = vld [vmem:[#allocation2 + $0x250] sm:$0xff] }
  0x88   : > { %10149 = vmatprep.mubr.msk.bf16.mxu1 %vm210_vm1, %v12612_v53  ;;  %10332 = vmatpush3.bf16.msra.mxu0 %v2201_v59  ;;  %v12714_v59 = vld [vmem:[#allocation2 + $0x2f2] sm:$0xff]  ;;  %v12811_v39 = vld [vmem:[#allocation2 + $0x180] sm:$0xff] }
  0x89   : > { %10303 = vmatprep.mubr.msk.bf16.mxu0 %vm210_vm1, %v1841_v58  ;;  %11827 = vmatprep.subr.msk.bf16.mxu0 %vm548_vm0, %v12629_v50  ;;  %v12705_v58 = vld [vmem:[#allocation2 + $0x2d2] sm:$0xff] }
  0x8a   : > { %v12718_v22 = vpack.c.bf16 %v12705_v58, %v12703_v52  ;;  %v1853_v38 = vpack.c.bf16 %v12712_v21, %v12705_v58  ;;  %v417_v58 = vld [vmem:[#allocation2 + $0x1e0] sm:$0xff] }
  0x8f   : > { %10150 = vmatmul.mubr.msk.bf16.gmra.mrb[20].mxu1 %vm210_vm1, %v12659_v11  ;;  %10304 = vmatmul.mubr.msk.bf16.gmra.mrb[4].mxu0 %vm210_vm1, %v1842_v13  ;;  %v12723_v13 = vld [vmem:[#allocation2 + $0xb0] sm:$0xff] }
  0x90   : > { %10153 = vmatprep.mubr.msk.bf16.mxu1 %vm210_vm1, %v494_v14  ;;  %10307 = vmatprep.mubr.msk.bf16.mxu0 %vm210_vm1, %v1843_v15  ;;  %v12727_v14 = vpack.c.bf16 %v12714_v59, %v12712_v21  ;;  %v12729_v15 = vld [vmem:[#allocation2 + $0x1f2] sm:$0xff] }
  0x91   : > { %v1847_v61 = vpack.c.bf16 %v12589_v41, %v12729_v15  ;;  %v12770_v41 = vld [vmem:[#allocation2 + $0x100] sm:$0xff]  ;;  %v12842_v21 = vld [vmem:[#allocation2 + $0x1f0] sm:$0xff] }
  0x92   : > { %14419 = vst [vmem:[#allocation28_spill] sm:$0xff] %v12842_v21 }
  0x97   : > { %10154 = vmatmul.mubr.msk.bf16.gmra.mrb[24].mxu1 %vm210_vm1, %v12689_v34  ;;  %10308 = vmatmul.mubr.msk.bf16.gmra.mrb[8].mxu0 %vm210_vm1, %v1844_v35  ;;  %v12733_v35 = vpack.c.bf16 %v12710_v8, %v12701_v47  ;;  %v12748_v8 = vld [vmem:[#allocation2 + $0xe0] sm:$0xff]  ;;  %v434_v47 = vpack.c.bf16 %v12746_v17, %v12742_v20 }
  0x98   : > { %10157 = vmatprep.mubr.msk.bf16.mxu1 %vm210_vm1, %v12695_v36  ;;  %10311 = vmatprep.mubr.msk.bf16.mxu0 %vm210_vm1, %v1845_v37  ;;  %v433_v37 = vpack.c.bf16 %v12723_v13, %v401_v4  ;;  %v12755_v4 = vld [vmem:[#allocation2 + $0xf0] sm:$0xff] }
  0x99   : > { %14414 = vst [vmem:[#allocation23_spill] sm:$0xff] %v12733_v35  ;;  %v12765_v5 = vpack.c.bf16 %v12755_v4, %v12748_v8 }
  0x9f   : > { %10158 = vmatmul.mubr.msk.bf16.gmra.mrb[28].mxu1 %vm210_vm1, %v12733_v35  ;;  %10312 = vmatmul.mubr.msk.bf16.gmra.mrb[12].mxu0 %vm210_vm1, %v1846_v6  ;;  %v1848_v6 = vpack.c.bf16 %v12624_v2, %v12591_v43  ;;  %v12780_v43 = vld [vmem:[#allocation2 + $0x120] sm:$0xff]  ;;  %v441_v35 = vpack.c.bf16 %v12842_v21, %v417_v58 }
  0xa0   : > { %10163 = vmatprep.mubr.msk.bf16.mxu1 %vm210_vm1, %v433_v37  ;;  %10315 = vmatprep.mubr.msk.bf16.mxu0 %vm210_vm1, %v1847_v61  ;;  %v1024_v37 = vsel %vm548_vm0, %v12544_v19, 0  ;;  %v1849_v61 = vpack.c.bf16 %v12636_v54, %v12634_v42  ;;  %v12778_v19 = vld [vmem:[#allocation2 + $0x110] sm:$0xff]  ;;  %v12787_v42 = vld [vmem:[#allocation2 + $0x262] sm:$0xff] }
  0xa1   : > { %14415 = vst [vmem:[#allocation24_spill] sm:$0xff] %v12787_v42  ;;  %v409_v54 = vld [vmem:[#allocation2 + $0x140] sm:$0xff]  ;;  %v436_v2 = vpack.c.bf16 %v12778_v19, %v12770_v41  ;;  %v1850_v60 = vpack.c.bf16 %v12787_v42, %v12638_v55 }
  0xa2   : > { %v12835_v55 = vld [vmem:[#allocation2 + $0x1c0] sm:$0xff] }
  0xa3   : > { %v12882_v58 = vld [vmem:[#allocation2 + $0x240] sm:$0xff] }
  0xa7   : > { %10164 = vmatmul.mubr.msk.bf16.vlgmr.msra.gmra.mrb[0].mxu1 %vm210_vm1, %v434_v47  ;;  %10316 = vmatmul.mubr.msk.bf16.gmra.mrb[16].mxu0 %vm210_vm1, %v1848_v6  ;;  %v12809_v6 = vld [vmem:[#allocation2 + $0x170] sm:$0xff] }
  0xa8   : > { %10196 = vmatpush3.bf16.msra.mxu1 %v1024_v37  ;;  %10167 = vmatprep.mubr.msk.bf16.mxu1 %vm210_vm1, %v12765_v5  ;;  %v12793_v37 = vld [vmem:[#allocation2 + $0x292] sm:$0xff]  ;;  %v438_v42 = vpack.c.bf16 %v12809_v6, %v12805_v45 }
  0xa9   : > { %10319 = vmatprep.mubr.msk.bf16.mxu0 %vm210_vm1, %v1849_v61  ;;  %11822 = vmatprep.subr.msk.bf16.mxu1 %vm548_vm0, %v12775_v25  ;;  %v437_v61 = vpack.c.bf16 %v12789_v63, %v409_v54  ;;  %v1851_v46 = vpack.c.bf16 %v12674_v23, %v12793_v37  ;;  %v12816_v54 = vld [vmem:[#allocation2 + $0x190] sm:$0xff] }
  0xaa   : > { %14416 = vst [vmem:[#allocation25_spill] sm:$0xff] %v12816_v54  ;;  %v12833_v23 = vld [vmem:[#allocation2 + $0x1b0] sm:$0xff] }
  0xab   : > { %14417 = vst [vmem:[#allocation26_spill] sm:$0xff] %v12833_v23 }
  0xaf   : > { %10168 = vmatmul.mubr.msk.bf16.gmra.mrb[4].mxu1 %vm210_vm1, %v436_v2  ;;  %10320 = vmatmul.mubr.msk.bf16.gmra.mrb[20].mxu0 %vm210_vm1, %v1850_v60  ;;  %v1852_v60 = vpack.c.bf16 %v12703_v52, %v12676_v28  ;;  %v12840_v52 = vld [vmem:[#allocation2 + $0x302] sm:$0xff] }
  0xb0   : > { %10171 = vmatprep.mubr.msk.bf16.mxu1 %vm210_vm1, %v437_v61  ;;  %10323 = vmatprep.mubr.msk.bf16.mxu0 %vm210_vm1, %v1851_v46  ;;  %v439_v61 = vpack.c.bf16 %v12816_v54, %v12811_v39  ;;  %v12829_v46 = vld [vmem:[#allocation2 + $0x1a0] sm:$0xff]  ;;  %14418 = vst [vmem:[#allocation27_spill] sm:$0xff] %v12840_v52  ;;  %v1854_v56 = vpack.c.bf16 %v12840_v52, %v12714_v59  ;;  %v12863_v59 = vld [vmem:[#allocation2 + $0x230] sm:$0xff] }
  0xb1   : > { %v12852_v28 = vld [vmem:[#allocation2 + $0x200] sm:$0xff]  ;;  %14423 = vst [vmem:[#allocation32_spill] sm:$0xff] %v12863_v59 }
  0xb2   : > { %14420 = vst [vmem:[#allocation29_spill] sm:$0xff] %v12852_v28  ;;  %v12858_v54 = vld [vmem:[#allocation2 + $0x220] sm:$0xff] }
  0xb3   : > { %14422 = vst [vmem:[#allocation31_spill] sm:$0xff] %v12858_v54 }
  0xb7   : > { %10172 = vmatmul.mubr.msk.bf16.gmra.mrb[8].mxu1 %vm210_vm1, %v438_v42  ;;  %10324 = vmatmul.mubr.msk.bf16.gmra.mrb[24].mxu0 %vm210_vm1, %v1852_v60  ;;  %v440_v60 = vpack.c.bf16 %v12833_v23, %v12829_v46  ;;  %v12905_v23 = vld [vmem:[#allocation2 + $0x2d0] sm:$0xff] }
  0xb8   : > { %10175 = vmatprep.mubr.msk.bf16.mxu1 %vm210_vm1, %v439_v61  ;;  %10327 = vmatprep.mubr.msk.bf16.mxu0 %vm210_vm1, %v1853_v38  ;;  %v12856_v38 = vld [vmem:[#allocation2 + $0x210] sm:$0xff]  ;;  %14427 = vst [vmem:[#allocation36_spill] sm:$0xff] %v12905_v23 }
  0xb9   : > { %14421 = vst [vmem:[#allocation30_spill] sm:$0xff] %v12856_v38  ;;  %v442_v52 = vpack.c.bf16 %v12856_v38, %v12852_v28  ;;  %v425_v38 = vld [vmem:[#allocation2 + $0x280] sm:$0xff] }
  0xba   : > { %v12903_v28 = vld [vmem:[#allocation2 + $0x2c0] sm:$0xff] }
  0xbf   : > { %10176 = vmatmul.mubr.msk.bf16.gmra.mrb[12].mxu1 %vm210_vm1, %v440_v60  ;;  %10328 = vmatmul.mubr.msk.bf16.gmra.mrb[28].mxu0 %vm210_vm1, %v1854_v56  ;;  %v443_v56 = vpack.c.bf16 %v12863_v59, %v12858_v54  ;;  %v12887_v54 = vld [vmem:[#allocation2 + $0x290] sm:$0xff]  ;;  %v444_v59 = vpack.c.bf16 %v12884_v24, %v12882_v58 }
  0xc0   : > { %10179 = vmatprep.mubr.msk.bf16.mxu1 %vm210_vm1, %v441_v35  ;;  %10333 = vmatprep.mubr.msk.bf16.mxu0 %vm210_vm1, %v434_v47  ;;  %v2495_v35 = vsel %vm548_vm0, %v12629_v50, 0  ;;  %v12877_v47 = vld [vmem:[%s14361_s1 + $0x10] sm:$0x3]  ;;  %14424 = vst [vmem:[#allocation33_spill] sm:$0xff] %v12887_v54  ;;  %v445_v21 = vpack.c.bf16 %v12887_v54, %v425_v38  ;;  %v447_v38 = vpack.c.bf16 %v12905_v23, %v12903_v28  ;;  %v925_v54 = vld [vmem:[#allocation2 + $0xa2] sm:$0xff] }
  0xc1   : > { %v2109_v50 = vld [vmem:[#allocation2 + $0x130] sm:$0xff]  ;;  %v957_v23 = vpack.c.bf16 %v12572_v31, %v925_v54  ;;  %v12935_v31 = vld [vmem:[#allocation2 + $0x260] sm:$0xff] }
  0xc2   : > { %v2125_v54 = vld [vmem:[#allocation2 + $0x270] sm:$0xff] }
  0xc7   : > { %10180 = vmatmul.mubr.msk.bf16.gmra.mrb[16].mxu1 %vm210_vm1, %v442_v52  ;;  %10334 = vmatmul.mubr.msk.bf16.vlgmr.msra.gmra.mrb[0].mxu0 %vm210_vm1, %v12765_v5  ;;  %v2137_v5 = vpack.c.bf16 %v2109_v50, %v12780_v43 }
  0xc8   : > { %10183 = vmatprep.mubr.msk.bf16.mxu1 %vm210_vm1, %v443_v56  ;;  %10366 = vmatpush3.bf16.msra.mxu0 %v2495_v35  ;;  %v12900_v35 = vld [vmem:[#allocation2 + $0x2b0] sm:$0xff] }
  0xc9   : > { %10337 = vmatprep.mubr.msk.bf16.mxu0 %vm210_vm1, %v436_v2  ;;  %11828 = vmatprep.subr.msk.bf16.mxu0 %vm548_vm0, %v12877_v47  ;;  %v12898_v2 = vld [vmem:[#allocation2 + $0x2a0] sm:$0xff]  ;;  %14426 = vst [vmem:[#allocation35_spill] sm:$0xff] %v12900_v35 }
  0xca   : > { %14425 = vst [vmem:[#allocation34_spill] sm:$0xff] %v12898_v2  ;;  %v446_v50 = vpack.c.bf16 %v12900_v35, %v12898_v2 }
  0xcf   : > { %10184 = vmatmul.mubr.msk.bf16.gmra.mrb[20].mxu1 %vm210_vm1, %v444_v59  ;;  %10338 = vmatmul.mubr.msk.bf16.gmra.mrb[4].mxu0 %vm210_vm1, %v2137_v5  ;;  %v12916_v5 = vld [vmem:[#allocation2 + $0x2f0] sm:$0xff] }
  0xd0   : > { %10187 = vmatprep.mubr.msk.bf16.mxu1 %vm210_vm1, %v445_v21  ;;  %10341 = vmatprep.mubr.msk.bf16.mxu0 %vm210_vm1, %v438_v42  ;;  %v12914_v21 = vld [vmem:[#allocation2 + $0x2e0] sm:$0xff]  ;;  %v2117_v42 = vld [vmem:[#allocation2 + $0x1d0] sm:$0xff] }
  0xd1   : > { %v448_v35 = vpack.c.bf16 %v12916_v5, %v12914_v21  ;;  %v2141_v2 = vpack.c.bf16 %v2117_v42, %v12835_v55  ;;  %v14448_v42 = vld [vmem:[#allocation34_spill] sm:$0xff] }
  0xd7   : > { %10188 = vmatmul.mubr.msk.bf16.gmra.mrb[24].mxu1 %vm210_vm1, %v446_v50  ;;  %10342 = vmatmul.mubr.msk.bf16.gmra.mrb[8].mxu0 %vm210_vm1, %v439_v61  ;;  %v1318_v61 = vsel %vm548_vm0, %v12775_v25, 0  ;;  %v2145_v25 = vpack.c.bf16 %v2125_v54, %v12935_v31  ;;  %v14450_v54 = vld [vmem:[#allocation36_spill] sm:$0xff] }
  0xd8   : > { %10191 = vmatprep.mubr.msk.bf16.mxu1 %vm210_vm1, %v447_v38  ;;  %10345 = vmatprep.mubr.msk.bf16.mxu0 %vm210_vm1, %v440_v60  ;;  %v941_v60 = vld [vmem:[#allocation2 + $0x1e2] sm:$0xff] }
  0xdf   : > { %10192 = vmatmul.mubr.msk.bf16.gmra.mrb[28].mxu1 %vm210_vm1, %v448_v35  ;;  %10346 = vmatmul.mubr.msk.bf16.gmra.mrb[12].mxu0 %vm210_vm1, %v2141_v2  ;;  %v2789_v2 = vsel %vm548_vm0, %v12877_v47, 0  ;;  %v14446_v47 = vld [vmem:[#allocation14_spill] sm:$0xff] }
  0xe0   : > { %10197 = vmatprep.mubr.msk.bf16.mxu1 %vm210_vm1, %v957_v23  ;;  %10349 = vmatprep.mubr.msk.bf16.mxu0 %vm210_vm1, %v442_v52  ;;  %v933_v23 = vld [vmem:[#allocation2 + $0x142] sm:$0xff] }
  0xe1   : > { %v961_v52 = vpack.c.bf16 %v12653_v10, %v933_v23  ;;  %v2133_v10 = vld [vmem:[#allocation2 + $0x310] sm:$0xff] }
  0xe2   : > { %v1529_v23 = vld [vmem:[#allocation2 + $0x1f1] sm:$0xff] }
  0xe7   : > { %10198 = vmatmul.mubr.msk.bf16.vlgmr.msra.gmra.mrb[0].mxu1 %vm210_vm1, %v12494_v57  ;;  %10350 = vmatmul.mubr.msk.bf16.gmra.mrb[16].mxu0 %vm210_vm1, %v443_v56  ;;  %v965_v56 = vpack.c.bf16 %v12729_v15, %v941_v60  ;;  %v2403_v15 = vld [vmem:[#allocation2 + $0x131] sm:$0xff]  ;;  %v14455_v60 = vld [vmem:[#allocation11_spill] sm:$0xff] }
  0xe8   : > { %10230 = vmatpush3.bf16.msra.mxu1 %v1318_v61  ;;  %10201 = vmatprep.mubr.msk.bf16.mxu1 %vm210_vm1, %v12502_v62 }
  0xe9   : > { %10353 = vmatprep.mubr.msk.bf16.mxu0 %vm210_vm1, %v444_v59  ;;  %11824 = vmatprep.subr.msk.bf16.mxu1 %vm548_vm0, %v12138_v1  ;;  %v12952_v1 = vld [vmem:[#allocation2 + $0x300] sm:$0xff] }
  0xea   : > { %v2149_v59 = vpack.c.bf16 %v2133_v10, %v12952_v1 }
  0xef   : > { %10202 = vmatmul.mubr.msk.bf16.gmra.mrb[4].mxu1 %vm210_vm1, %v12509_v0  ;;  %10354 = vmatmul.mubr.msk.bf16.gmra.mrb[20].mxu0 %vm210_vm1, %v2145_v25  ;;  %v14451_v25 = vld [vmem:[#allocation22_spill] sm:$0xff] }
  0xf0   : > { %10205 = vmatprep.mubr.msk.bf16.mxu1 %vm210_vm1, %v961_v52  ;;  %10357 = vmatprep.mubr.msk.bf16.mxu0 %vm210_vm1, %v446_v50  ;;  %v14452_v52 = vld [vmem:[#allocation8_spill] sm:$0xff] }
  0xf1   : > { %v1553_v10 = vpack.c.bf16 %v14452_v52, %v1529_v23 }
  0xf7   : > { %10206 = vmatmul.mubr.msk.bf16.gmra.mrb[8].mxu1 %vm210_vm1, %v12529_v12  ;;  %10358 = vmatmul.mubr.msk.bf16.gmra.mrb[24].mxu0 %vm210_vm1, %v447_v38 }
  0xf8   : > { %10209 = vmatprep.mubr.msk.bf16.mxu1 %vm210_vm1, %v12563_v26  ;;  %10361 = vmatprep.mubr.msk.bf16.mxu0 %vm210_vm1, %v448_v35  ;;  %v949_v35 = vld [vmem:[#allocation2 + $0x282] sm:$0xff] }
  0xf9   : > { %v969_v50 = vpack.c.bf16 %v12793_v37, %v949_v35  ;;  %v14444_v37 = vld [vmem:[#allocation30_spill] sm:$0xff]  ;;  %v14459_v35 = vld [vmem:[#allocation15_spill] sm:$0xff] }
  0xff   : > { %10210 = vmatmul.mubr.msk.bf16.gmra.mrb[12].mxu1 %vm210_vm1, %v12570_v30  ;;  %10362 = vmatmul.mubr.msk.bf16.gmra.mrb[28].mxu0 %vm210_vm1, %v2149_v59  ;;  %v14456_v59 = vld [vmem:[#allocation12_spill] sm:$0xff] }
 0x100   : > { %10213 = vmatprep.mubr.msk.bf16.mxu1 %vm210_vm1, %v965_v56  ;;  %10367 = vmatprep.mubr.msk.bf16.mxu0 %vm210_vm1, %v12452_v33  ;;  %v2431_v33 = vpack.c.bf16 %v2403_v15, %v12472_v44  ;;  %v1555_v56 = vpack.c.bf16 %v14456_v59, %v14455_v60 }
 0x107   : > { %10214 = vmatmul.mubr.msk.bf16.gmra.mrb[16].mxu1 %vm210_vm1, %v12601_v49  ;;  %10368 = vmatmul.mubr.msk.bf16.vlgmr.msra.gmra.mrb[0].mxu0 %vm210_vm1, %v12460_v40  ;;  %v2411_v40 = vld [vmem:[#allocation2 + $0x1d1] sm:$0xff] }
 0x108   : > { %10217 = vmatprep.mubr.msk.bf16.mxu1 %vm210_vm1, %v12647_v7  ;;  %10400 = vmatpush3.bf16.msra.mxu0 %v2789_v2  ;;  %v2435_v44 = vpack.c.bf16 %v2411_v40, %v12566_v27  ;;  %v2418_v27 = vld [vmem:[#allocation2 + $0x261] sm:$0xff]  ;;  %v14462_v40 = vld [vmem:[#allocation18_spill] sm:$0xff] }
 0x109   : > { %10371 = vmatprep.mubr.msk.bf16.mxu0 %vm210_vm1, %v12477_v48  ;;  %v14428_v48 = vpack.c.bf16 %v12742_v20, %v12723_v13 }
 0x10f   : > { %10218 = vmatmul.mubr.msk.bf16.gmra.mrb[20].mxu1 %vm210_vm1, %v12651_v9  ;;  %10372 = vmatmul.mubr.msk.bf16.gmra.mrb[4].mxu0 %vm210_vm1, %v2431_v33  ;;  %v14460_v33 = vld [vmem:[#allocation16_spill] sm:$0xff] }
 0x110   : > { %10221 = vmatprep.mubr.msk.bf16.mxu1 %vm210_vm1, %v969_v50  ;;  %10375 = vmatprep.mubr.msk.bf16.mxu0 %vm210_vm1, %v12535_v16  ;;  %v14429_v16 = vpack.c.bf16 %v12748_v8, %v12746_v17  ;;  %v14431_v17 = vpack.c.bf16 %v12780_v43, %v12778_v19  ;;  %v14436_v8 = vld [vmem:[#allocation23_spill] sm:$0xff]  ;;  %v14442_v19 = vld [vmem:[#allocation32_spill] sm:$0xff]  ;;  %v1557_v50 = vpack.c.bf16 %v14460_v33, %v14459_v35 }
 0x111   : > { %v1261_v43 = vpack.c.bf16 %v12882_v58, %v14442_v19  ;;  %v14447_v58 = vld [vmem:[#allocation33_spill] sm:$0xff] }
 0x112   : > { %v1263_v61 = vpack.c.bf16 %v14448_v42, %v14447_v58 }
 0x117   : > { %10222 = vmatmul.mubr.msk.bf16.gmra.mrb[24].mxu1 %vm210_vm1, %v12685_v29  ;;  %10376 = vmatmul.mubr.msk.bf16.gmra.mrb[8].mxu0 %vm210_vm1, %v12539_v18  ;;  %v14430_v18 = vpack.c.bf16 %v12770_v41, %v12755_v4 }
 0x118   : > { %10225 = vmatprep.mubr.msk.bf16.mxu1 %vm210_vm1, %v12718_v22  ;;  %10379 = vmatprep.mubr.msk.bf16.mxu0 %vm210_vm1, %v12574_v32  ;;  %v2419_v32 = vld [vmem:[#allocation2 + $0x271] sm:$0xff] }
 0x11f   : > { %10226 = vmatmul.mubr.msk.bf16.gmra.mrb[28].mxu1 %vm210_vm1, %v12727_v14  ;;  %10380 = vmatmul.mubr.msk.bf16.gmra.mrb[12].mxu0 %vm210_vm1, %v2435_v44  ;;  %v14463_v44 = vld [vmem:[#allocation19_spill] sm:$0xff] }
 0x120   : > { %10231 = vmatprep.mubr.msk.bf16.mxu1 %vm210_vm1, %v14428_v48  ;;  %10383 = vmatprep.mubr.msk.bf16.mxu0 %vm210_vm1, %v12606_v51  ;;  %v2439_v51 = vpack.c.bf16 %v2419_v32, %v2418_v27  ;;  %v14464_v48 = vld [vmem:[#allocation20_spill] sm:$0xff] }
 0x127   : > { %10232 = vmatmul.mubr.msk.bf16.vlgmr.msra.gmra.mrb[0].mxu1 %vm210_vm1, %v14429_v16  ;;  %10384 = vmatmul.mubr.msk.bf16.gmra.mrb[16].mxu0 %vm210_vm1, %v12612_v53  ;;  %v14433_v53 = vpack.c.bf16 %v12811_v39, %v12809_v6  ;;  %v14439_v39 = vld [vmem:[#allocation29_spill] sm:$0xff]  ;;  %v14443_v6 = vld [vmem:[#allocation31_spill] sm:$0xff]  ;;  %v1559_v16 = vpack.c.bf16 %v14464_v48, %v14463_v44 }
 0x128   : > { %11046 = vmatpush3.bf16.msra.mxu1 %v12146_v3  ;;  %10235 = vmatprep.mubr.msk.bf16.mxu1 %vm210_vm1, %v14430_v18  ;;  %v14432_v3 = vpack.c.bf16 %v12805_v45, %v12789_v63  ;;  %v2426_v45 = vld [vmem:[#allocation2 + $0x301] sm:$0xff]  ;;  %v2427_v63 = vld [vmem:[#allocation2 + $0x311] sm:$0xff] }
 0x129   : > { %10387 = vmatprep.mubr.msk.bf16.mxu0 %vm210_vm1, %v12659_v11  ;;  %v14434_v11 = vld [vmem:[#allocation25_spill] sm:$0xff]  ;;  %v2443_v13 = vpack.c.bf16 %v2427_v63, %v2426_v45  ;;  %v2721_v18 = vld [vmem:[#allocation2 + $0x312] sm:$0xff] }
 0x12a   : > { %v14435_v20 = vpack.c.bf16 %v12829_v46, %v14434_v11  ;;  %v14445_v46 = vpack.c.bf16 %v14443_v6, %v14444_v37 }
 0x12f   : > { %10236 = vmatmul.mubr.msk.bf16.gmra.mrb[4].mxu1 %vm210_vm1, %v14431_v17  ;;  %10388 = vmatmul.mubr.msk.bf16.gmra.mrb[20].mxu0 %vm210_vm1, %v2439_v51 }
 0x130   : > { %10239 = vmatprep.mubr.msk.bf16.mxu1 %vm210_vm1, %v14432_v3  ;;  %10391 = vmatprep.mubr.msk.bf16.mxu0 %vm210_vm1, %v12689_v34  ;;  %v14437_v34 = vld [vmem:[#allocation26_spill] sm:$0xff] }
 0x131   : > { %v14438_v41 = vpack.c.bf16 %v12835_v55, %v14437_v34  ;;  %v2697_v55 = vld [vmem:[#allocation2 + $0x132] sm:$0xff] }
 0x132   : > { %v2725_v38 = vpack.c.bf16 %v2697_v55, %v14446_v47 }
 0x137   : > { %10240 = vmatmul.mubr.msk.bf16.gmra.mrb[8].mxu1 %vm210_vm1, %v14433_v53  ;;  %10392 = vmatmul.mubr.msk.bf16.gmra.mrb[24].mxu0 %vm210_vm1, %v12695_v36  ;;  %v14440_v36 = vld [vmem:[#allocation28_spill] sm:$0xff] }
 0x138   : > { %10243 = vmatprep.mubr.msk.bf16.mxu1 %vm210_vm1, %v14435_v20  ;;  %10395 = vmatprep.mubr.msk.bf16.mxu0 %vm210_vm1, %v14436_v8  ;;  %v14441_v4 = vpack.c.bf16 %v14439_v39, %v14440_v36 }
 0x13f   : > { %10244 = vmatmul.mubr.msk.bf16.gmra.mrb[12].mxu1 %vm210_vm1, %v14438_v41  ;;  %10396 = vmatmul.mubr.msk.bf16.gmra.mrb[28].mxu0 %vm210_vm1, %v2443_v13 }
 0x140   : > { %10247 = vmatprep.mubr.msk.bf16.mxu1 %vm210_vm1, %v14441_v4  ;;  %10401 = vmatprep.mubr.msk.bf16.mxu0 %vm210_vm1, %v12494_v57  ;;  %v1262_v57 = vpack.c.bf16 %v12935_v31, %v12884_v24  ;;  %v1265_v24 = vpack.c.bf16 %v12914_v21, %v14450_v54  ;;  %v2705_v31 = vld [vmem:[#allocation2 + $0x1d2] sm:$0xff] }
 0x147   : > { %10248 = vmatmul.mubr.msk.bf16.gmra.mrb[16].mxu1 %vm210_vm1, %v14445_v46  ;;  %10402 = vmatmul.mubr.msk.bf16.vlgmr.msra.gmra.mrb[0].mxu0 %vm210_vm1, %v12502_v62  ;;  %v14449_v62 = vld [vmem:[#allocation35_spill] sm:$0xff] }
 0x148   : > { %10251 = vmatprep.mubr.msk.bf16.mxu1 %vm210_vm1, %v1261_v43  ;;  %10405 = vmatprep.mubr.msk.bf16.mxu0 %vm210_vm1, %v12509_v0  ;;  %v1264_v0 = vpack.c.bf16 %v12903_v28, %v14449_v62  ;;  %v2729_v28 = vpack.c.bf16 %v2705_v31, %v14451_v25 }
 0x14f   : > { %10252 = vmatmul.mubr.msk.bf16.gmra.mrb[20].mxu1 %vm210_vm1, %v1262_v57  ;;  %10406 = vmatmul.mubr.msk.bf16.gmra.mrb[4].mxu0 %vm210_vm1, %v2725_v38 }
 0x150   : > { %10255 = vmatprep.mubr.msk.bf16.mxu1 %vm210_vm1, %v1263_v61  ;;  %10409 = vmatprep.mubr.msk.bf16.mxu0 %vm210_vm1, %v12529_v12  ;;  %v1266_v12 = vpack.c.bf16 %v12952_v1, %v12916_v5  ;;  %v2713_v5 = vld [vmem:[#allocation2 + $0x272] sm:$0xff]  ;;  %v14457_v1 = vld [vmem:[#allocation13_spill] sm:$0xff] }
 0x151   : > { %v1556_v2 = vpack.c.bf16 %v2418_v27, %v14457_v1  ;;  %v14465_v27 = vld [vmem:[#allocation21_spill] sm:$0xff] }
 0x152   : > { %v1560_v32 = vpack.c.bf16 %v2426_v45, %v14465_v27 }
 0x157   : > { %10256 = vmatmul.mubr.msk.bf16.gmra.mrb[24].mxu1 %vm210_vm1, %v1264_v0  ;;  %10410 = vmatmul.mubr.msk.bf16.gmra.mrb[8].mxu0 %vm210_vm1, %v12563_v26  ;;  %v14453_v26 = vld [vmem:[#allocation9_spill] sm:$0xff] }
 0x158   : > { %10259 = vmatprep.mubr.msk.bf16.mxu1 %vm210_vm1, %v1265_v24  ;;  %10413 = vmatprep.mubr.msk.bf16.mxu0 %vm210_vm1, %v12570_v30  ;;  %v14454_v30 = vld [vmem:[#allocation10_spill] sm:$0xff] }
 0x159   : > { %v1554_v21 = vpack.c.bf16 %v14454_v30, %v14453_v26 }
 0x15f   : > { %10260 = vmatmul.mubr.msk.bf16.gmra.mrb[28].mxu1 %vm210_vm1, %v1266_v12  ;;  %10414 = vmatmul.mubr.msk.bf16.gmra.mrb[12].mxu0 %vm210_vm1, %v2729_v28 }
 0x160   : > { %10281 = vmatprep.mubr.msk.bf16.mxu1 %vm210_vm1, %v1553_v10  ;;  %10417 = vmatprep.mubr.msk.bf16.mxu0 %vm210_vm1, %v12601_v49  ;;  %v14458_v49 = vld [vmem:[#allocation24_spill] sm:$0xff] }
 0x161   : > { %v2733_v15 = vpack.c.bf16 %v2713_v5, %v14458_v49 }
 0x167   : > { %10282 = vmatmul.mubr.msk.bf16.vlgmr.msra.gmra.mrb[16].mxu1 %vm210_vm1, %v1554_v21  ;;  %10418 = vmatmul.mubr.msk.bf16.gmra.mrb[16].mxu0 %vm210_vm1, %v12647_v7  ;;  %v14461_v7 = vld [vmem:[#allocation17_spill] sm:$0xff] }
 0x168   : > { %10285 = vmatprep.mubr.msk.bf16.mxu1 %vm210_vm1, %v1555_v56  ;;  %10421 = vmatprep.mubr.msk.bf16.mxu0 %vm210_vm1, %v12651_v9  ;;  %v1558_v9 = vpack.c.bf16 %v14462_v40, %v14461_v7 }
 0x16f   : > { %10286 = vmatmul.mubr.msk.bf16.gmra.mrb[20].mxu1 %vm210_vm1, %v1556_v2  ;;  %10422 = vmatmul.mubr.msk.bf16.gmra.mrb[20].mxu0 %vm210_vm1, %v2733_v15 }
 0x170   : > { %10289 = vmatprep.mubr.msk.bf16.mxu1 %vm210_vm1, %v1557_v50  ;;  %10425 = vmatprep.mubr.msk.bf16.mxu0 %vm210_vm1, %v12685_v29  ;;  %v14466_v29 = vld [vmem:[#allocation27_spill] sm:$0xff] }
 0x171   : > { %v2737_v51 = vpack.c.bf16 %v2721_v18, %v14466_v29 }
 0x177   : > { %10290 = vmatmul.mubr.msk.bf16.gmra.mrb[24].mxu1 %vm210_vm1, %v1558_v9  ;;  %10426 = vmatmul.mubr.msk.bf16.gmra.mrb[24].mxu0 %vm210_vm1, %v12718_v22 }
 0x178   : > { %10293 = vmatprep.mubr.msk.bf16.mxu1 %vm210_vm1, %v1559_v16  ;;  %10429 = vmatprep.mubr.msk.bf16.mxu0 %vm210_vm1, %v12727_v14 }
 0x17f   : > { %10294 = vmatmul.mubr.msk.bf16.gmra.mrb[28].mxu1 %vm210_vm1, %v1560_v32  ;;  %10430 = vmatmul.mubr.msk.bf16.gmra.mrb[28].mxu0 %vm210_vm1, %v2737_v51 }
 0x1fa   : > { %v10233_v17 = vpop.f32.mrb[0].mxu1 }
 0x1fb   : > { %v1354_v3 = vpop.f32.mrb[1].mxu1 }
 0x1fc   : > { %v10234_v53 = vpop.f32.mrb[2].mxu1 }
 0x1fd   : > { %v1357_v11 = vpop.f32.mrb[3].mxu1 }
 0x202   : > { %v10237_v20 = vpop.f32.mrb[4].mxu1 }
 0x203   : > { %v1370_v22 = vpop.f32.mrb[5].mxu1 }
 0x204   : > { %v10238_v8 = vpop.f32.mrb[6].mxu1 }
 0x205   : > { %v1373_v63 = vpop.f32.mrb[7].mxu1 }
 0x20a   : > { %v10241_v13 = vpop.f32.mrb[8].mxu1 }
 0x20b   : > { %v1386_v34 = vpop.f32.mrb[9].mxu1 }
 0x20c   : > { %v10242_v14 = vpop.f32.mrb[10].mxu1 }
 0x20d   : > { %v13118_v41 = vpop.f32.mrb[11].mxu1 }
 0x212   : > { %v13120_v45 = vpop.f32.mrb[12].mxu1 }
 0x213   : > { %v13122_v39 = vpop.f32.mrb[13].mxu1 }
 0x214   : > { %v13124_v36 = vpop.f32.mrb[14].mxu1 }
 0x215   : > { %v13126_v4 = vpop.f32.mrb[15].mxu1 }
 0x21a   : > { %v10403_v19 = vpop.f32.mrb[0].mxu0 }
 0x21b   : > { %v11047_v43 = vadd.f32 %v10403_v19, %v10233_v17  ;;  %v2825_v6 = vpop.f32.mrb[1].mxu0 }
 0x21c   : > { %v11048_v37 = vadd.f32 %v2825_v6, %v1354_v3  ;;  %v10404_v46 = vpop.f32.mrb[2].mxu0 }
 0x21d   : > { %v9574_v55 = vpack.c.bf16 %v11047_v43, %v11047_v43  ;;  %v11049_v57 = vadd.f32 %v10404_v46, %v10234_v53  ;;  %v2828_v47 = vpop.f32.mrb[3].mxu0  ;;  %v3148_v24 = vsel %vm3145_vm5, %v11047_v43, -inf }
 0x21e   : > { %v9572_v38 = vpack.c.bf16 %v11048_v37, %v11048_v37  ;;  %v11050_v58 = vadd.f32 %v2828_v47, %v1357_v11  ;;  %v3146_v12 = vsel %vm3145_vm5, %v11048_v37, -inf }
 0x21f   : > { %3115 = vst.msk [vmem:[%s12125_s29 + $0x8] sm:$0xf] %vm3112_vm4, %v9574_v55  ;;  %v9575_v42 = vpack.c.bf16 %v11049_v57, %v11049_v57  ;;  %v3149_v59 = vsel %vm3145_vm5, %v11049_v57, -inf }
 0x220   : > { %3113 = vst.msk [vmem:[%s12125_s29] sm:$0xf] %vm3112_vm4, %v9572_v38  ;;  %v9573_v61 = vpack.c.bf16 %v11050_v58, %v11050_v58  ;;  %v3147_v2 = vsel %vm3145_vm5, %v11050_v58, -inf }
 0x221   : > { %3116 = vst.msk [vmem:[%s12125_s29 + $0xc] sm:$0xf] %vm3112_vm4, %v9575_v42 }
 0x222   : > { %3114 = vst.msk [vmem:[%s12125_s29 + $0x4] sm:$0xf] %vm3112_vm4, %v9573_v61  ;;  %v10407_v62 = vpop.f32.mrb[4].mxu0 }
 0x223   : > { %v11051_v0 = vadd.f32 %v10407_v62, %v10237_v20  ;;  %v2841_v54 = vpop.f32.mrb[5].mxu0 }
 0x224   : > { %v11052_v31 = vadd.f32 %v2841_v54, %v1370_v22  ;;  %v10408_v23 = vpop.f32.mrb[6].mxu0 }
 0x225   : > { %v9578_v25 = vpack.c.bf16 %v11051_v0, %v11051_v0  ;;  %v3154_v28 = vsel %vm3145_vm5, %v11051_v0, -inf  ;;  %v11053_v52 = vadd.f32 %v10408_v23, %v10238_v8  ;;  %v2844_v10 = vpop.f32.mrb[7].mxu0 }
 0x226   : > { %v3155_v26 = vmax.f32 %v3148_v24, %v3154_v28  ;;  %v9576_v30 = vpack.c.bf16 %v11052_v31, %v11052_v31  ;;  %v3150_v21 = vsel %vm3145_vm5, %v11052_v31, -inf  ;;  %v11054_v60 = vadd.f32 %v2844_v10, %v1373_v63 }
 0x227   : > { %3119 = vst.msk [vmem:[%s12125_s29 + $0x18] sm:$0xf] %vm3112_vm4, %v9578_v25  ;;  %v3151_v56 = vmax.f32 %v3146_v12, %v3150_v21  ;;  %v9579_v5 = vpack.c.bf16 %v11053_v52, %v11053_v52  ;;  %v3156_v1 = vsel %vm3145_vm5, %v11053_v52, -inf }
 0x228   : > { %3117 = vst.msk [vmem:[%s12125_s29 + $0x10] sm:$0xf] %vm3112_vm4, %v9576_v30  ;;  %v3157_v49 = vmax.f32 %v3149_v59, %v3156_v1  ;;  %v9577_v15 = vpack.c.bf16 %v11054_v60, %v11054_v60  ;;  %v3152_v35 = vsel %vm3145_vm5, %v11054_v60, -inf }
 0x229   : > { %3120 = vst.msk [vmem:[%s12125_s29 + $0x1c] sm:$0xf] %vm3112_vm4, %v9579_v5  ;;  %v3153_v33 = vmax.f32 %v3147_v2, %v3152_v35 }
 0x22a   : > { %3118 = vst.msk [vmem:[%s12125_s29 + $0x14] sm:$0xf] %vm3112_vm4, %v9577_v15  ;;  %v10411_v50 = vpop.f32.mrb[8].mxu0 }
 0x22b   : > { %v11055_v7 = vadd.f32 %v10411_v50, %v10241_v13  ;;  %v2857_v40 = vpop.f32.mrb[9].mxu0 }
 0x22c   : > { %v11056_v9 = vadd.f32 %v2857_v40, %v1386_v34  ;;  %v10412_v44 = vpop.f32.mrb[10].mxu0 }
 0x22d   : > { %v9582_v48 = vpack.c.bf16 %v11055_v7, %v11055_v7  ;;  %v3162_v16 = vsel %vm3145_vm5, %v11055_v7, -inf  ;;  %v11057_v18 = vadd.f32 %v10412_v44, %v10242_v14  ;;  %v2860_v27 = vpop.f32.mrb[11].mxu0 }
 0x22e   : > { %v3163_v32 = vmax.f32 %v3155_v26, %v3162_v16  ;;  %v9580_v29 = vpack.c.bf16 %v11056_v9, %v11056_v9  ;;  %v3158_v51 = vsel %vm3145_vm5, %v11056_v9, -inf  ;;  %v11058_v17 = vadd.f32 %v2860_v27, %v13118_v41 }
 0x22f   : > { %3123 = vst.msk [vmem:[%s12125_s29 + $0x28] sm:$0xf] %vm3112_vm4, %v9582_v48  ;;  %v3159_v3 = vmax.f32 %v3151_v56, %v3158_v51  ;;  %v9583_v53 = vpack.c.bf16 %v11057_v18, %v11057_v18  ;;  %v3164_v11 = vsel %vm3145_vm5, %v11057_v18, -inf }
 0x230   : > { %3121 = vst.msk [vmem:[%s12125_s29 + $0x20] sm:$0xf] %vm3112_vm4, %v9580_v29  ;;  %v3165_v20 = vmax.f32 %v3157_v49, %v3164_v11  ;;  %v9581_v22 = vpack.c.bf16 %v11058_v17, %v11058_v17  ;;  %v3160_v8 = vsel %vm3145_vm5, %v11058_v17, -inf }
 0x231   : > { %3124 = vst.msk [vmem:[%s12125_s29 + $0x2c] sm:$0xf] %vm3112_vm4, %v9583_v53  ;;  %v3161_v63 = vmax.f32 %v3153_v33, %v3160_v8 }
 0x232   : > { %3122 = vst.msk [vmem:[%s12125_s29 + $0x24] sm:$0xf] %vm3112_vm4, %v9581_v22  ;;  %v10415_v13 = vpop.f32.mrb[12].mxu0 }
 0x233   : > { %v11059_v34 = vadd.f32 %v10415_v13, %v13120_v45  ;;  %v2873_v14 = vpop.f32.mrb[13].mxu0 }
 0x234   : > { %v11060_v41 = vadd.f32 %v2873_v14, %v13122_v39  ;;  %v10416_v19 = vpop.f32.mrb[14].mxu0 }
 0x235   : > { %v9586_v43 = vpack.c.bf16 %v11059_v34, %v11059_v34  ;;  %v3170_v6 = vsel %vm3145_vm5, %v11059_v34, -inf  ;;  %v11061_v37 = vadd.f32 %v10416_v19, %v13124_v36  ;;  %v2876_v46 = vpop.f32.mrb[15].mxu0 }
 0x236   : > { %v3171_v55 = vmax.f32 %v3163_v32, %v3170_v6  ;;  %v9584_v57 = vpack.c.bf16 %v11060_v41, %v11060_v41  ;;  %v3166_v47 = vsel %vm3145_vm5, %v11060_v41, -inf  ;;  %v11062_v38 = vadd.f32 %v2876_v46, %v13126_v4 }
 0x237   : > { %3127 = vst.msk [vmem:[%s12125_s29 + $0x38] sm:$0xf] %vm3112_vm4, %v9586_v43  ;;  %v3167_v45 = vmax.f32 %v3159_v3, %v3166_v47  ;;  %v9587_v58 = vpack.c.bf16 %v11061_v37, %v11061_v37  ;;  %v3172_v39 = vsel %vm3145_vm5, %v11061_v37, -inf }
 0x238   : > { %3125 = vst.msk [vmem:[%s12125_s29 + $0x30] sm:$0xf] %vm3112_vm4, %v9584_v57  ;;  %v3173_v42 = vmax.f32 %v3165_v20, %v3172_v39  ;;  %v9585_v61 = vpack.c.bf16 %v11062_v38, %v11062_v38  ;;  %v3168_v36 = vsel %vm3145_vm5, %v11062_v38, -inf }
 0x239   : > { %3128 = vst.msk [vmem:[%s12125_s29 + $0x3c] sm:$0xf] %vm3112_vm4, %v9587_v58  ;;  %v3169_v62 = vmax.f32 %v3161_v63, %v3168_v36 }
 0x23a   : > { %v10283_v0 = vpop.f32.mrb[16].mxu1  ;;  %3126 = vst.msk [vmem:[%s12125_s29 + $0x34] sm:$0xf] %vm3112_vm4, %v9585_v61  ;;  %v10419_v54 = vpop.f32.mrb[16].mxu0 }
 0x23b   : > { %v1712_v4 = vpop.f32.mrb[17].mxu1  ;;  %v11063_v24 = vadd.f32 %v10419_v54, %v10283_v0  ;;  %v2889_v31 = vpop.f32.mrb[17].mxu0 }
 0x23c   : > { %v10284_v23 = vpop.f32.mrb[18].mxu1  ;;  %v11064_v12 = vadd.f32 %v2889_v31, %v1712_v4  ;;  %v10420_v25 = vpop.f32.mrb[18].mxu0 }
 0x23d   : > { %v1715_v28 = vpop.f32.mrb[19].mxu1  ;;  %v9590_v52 = vpack.c.bf16 %v11063_v24, %v11063_v24  ;;  %v3178_v10 = vsel %vm3145_vm5, %v11063_v24, -inf  ;;  %v11065_v26 = vadd.f32 %v10420_v25, %v10284_v23  ;;  %v2892_v30 = vpop.f32.mrb[19].mxu0 }
 0x23e   : > { %v3179_v21 = vmax.f32 %v3171_v55, %v3178_v10  ;;  %v9588_v60 = vpack.c.bf16 %v11064_v12, %v11064_v12  ;;  %v3174_v59 = vsel %vm3145_vm5, %v11064_v12, -inf  ;;  %v11066_v56 = vadd.f32 %v2892_v30, %v1715_v28 }
 0x23f   : > { %3131 = vst.msk [vmem:[%s12125_s29 + $0x48] sm:$0xf] %vm3112_vm4, %v9590_v52  ;;  %v3175_v5 = vmax.f32 %v3167_v45, %v3174_v59  ;;  %v9591_v1 = vpack.c.bf16 %v11065_v26, %v11065_v26  ;;  %v3180_v2 = vsel %vm3145_vm5, %v11065_v26, -inf }
 0x240   : > { %3129 = vst.msk [vmem:[%s12125_s29 + $0x40] sm:$0xf] %vm3112_vm4, %v9588_v60  ;;  %v3181_v49 = vmax.f32 %v3173_v42, %v3180_v2  ;;  %v9589_v15 = vpack.c.bf16 %v11066_v56, %v11066_v56  ;;  %v3176_v35 = vsel %vm3145_vm5, %v11066_v56, -inf }
 0x241   : > { %3132 = vst.msk [vmem:[%s12125_s29 + $0x4c] sm:$0xf] %vm3112_vm4, %v9591_v1  ;;  %v3177_v33 = vmax.f32 %v3169_v62, %v3176_v35 }
 0x242   : > { %v10287_v50 = vpop.f32.mrb[20].mxu1  ;;  %3130 = vst.msk [vmem:[%s12125_s29 + $0x44] sm:$0xf] %vm3112_vm4, %v9589_v15  ;;  %v10423_v7 = vpop.f32.mrb[20].mxu0 }
 0x243   : > { %v1728_v40 = vpop.f32.mrb[21].mxu1  ;;  %v11067_v9 = vadd.f32 %v10423_v7, %v10287_v50  ;;  %v2905_v44 = vpop.f32.mrb[21].mxu0 }
 0x244   : > { %v10288_v48 = vpop.f32.mrb[22].mxu1  ;;  %v11068_v16 = vadd.f32 %v2905_v44, %v1728_v40  ;;  %v10424_v18 = vpop.f32.mrb[22].mxu0 }
 0x245   : > { %v1731_v27 = vpop.f32.mrb[23].mxu1  ;;  %v9594_v32 = vpack.c.bf16 %v11067_v9, %v11067_v9  ;;  %v3186_v29 = vsel %vm3145_vm5, %v11067_v9, -inf  ;;  %v11069_v51 = vadd.f32 %v10424_v18, %v10288_v48  ;;  %v2908_v17 = vpop.f32.mrb[23].mxu0 }
 0x246   : > { %v3187_v3 = vmax.f32 %v3179_v21, %v3186_v29  ;;  %v9592_v53 = vpack.c.bf16 %v11068_v16, %v11068_v16  ;;  %v3182_v11 = vsel %vm3145_vm5, %v11068_v16, -inf  ;;  %v11070_v20 = vadd.f32 %v2908_v17, %v1731_v27 }
 0x247   : > { %3135 = vst.msk [vmem:[%s12125_s29 + $0x58] sm:$0xf] %vm3112_vm4, %v9594_v32  ;;  %v3183_v22 = vmax.f32 %v3175_v5, %v3182_v11  ;;  %v9595_v8 = vpack.c.bf16 %v11069_v51, %v11069_v51  ;;  %v3188_v63 = vsel %vm3145_vm5, %v11069_v51, -inf }
 0x248   : > { %3133 = vst.msk [vmem:[%s12125_s29 + $0x50] sm:$0xf] %vm3112_vm4, %v9592_v53  ;;  %v3189_v13 = vmax.f32 %v3181_v49, %v3188_v63  ;;  %v9593_v34 = vpack.c.bf16 %v11070_v20, %v11070_v20  ;;  %v3184_v14 = vsel %vm3145_vm5, %v11070_v20, -inf }
 0x249   : > { %3136 = vst.msk [vmem:[%s12125_s29 + $0x5c] sm:$0xf] %vm3112_vm4, %v9595_v8  ;;  %v3185_v41 = vmax.f32 %v3177_v33, %v3184_v14 }
 0x24a   : > { %v10291_v19 = vpop.f32.mrb[24].mxu1  ;;  %3134 = vst.msk [vmem:[%s12125_s29 + $0x54] sm:$0xf] %vm3112_vm4, %v9593_v34  ;;  %v10427_v43 = vpop.f32.mrb[24].mxu0 }
 0x24b   : > { %v1744_v6 = vpop.f32.mrb[25].mxu1  ;;  %v11071_v37 = vadd.f32 %v10427_v43, %v10291_v19  ;;  %v2921_v46 = vpop.f32.mrb[25].mxu0 }
 0x24c   : > { %v10292_v55 = vpop.f32.mrb[26].mxu1  ;;  %v11072_v57 = vadd.f32 %v2921_v46, %v1744_v6  ;;  %v10428_v47 = vpop.f32.mrb[26].mxu0 }
 0x24d   : > { %v1747_v38 = vpop.f32.mrb[27].mxu1  ;;  %v9598_v45 = vpack.c.bf16 %v11071_v37, %v11071_v37  ;;  %v3194_v58 = vsel %vm3145_vm5, %v11071_v37, -inf  ;;  %v11073_v39 = vadd.f32 %v10428_v47, %v10292_v55  ;;  %v2924_v42 = vpop.f32.mrb[27].mxu0 }
 0x24e   : > { %v3195_v61 = vmax.f32 %v3187_v3, %v3194_v58  ;;  %v9596_v36 = vpack.c.bf16 %v11072_v57, %v11072_v57  ;;  %v3190_v62 = vsel %vm3145_vm5, %v11072_v57, -inf  ;;  %v11074_v0 = vadd.f32 %v2924_v42, %v1747_v38 }
 0x24f   : > { %3139 = vst.msk [vmem:[%s12125_s29 + $0x68] sm:$0xf] %vm3112_vm4, %v9598_v45  ;;  %v3191_v54 = vmax.f32 %v3183_v22, %v3190_v62  ;;  %v9599_v4 = vpack.c.bf16 %v11073_v39, %v11073_v39  ;;  %v3196_v24 = vsel %vm3145_vm5, %v11073_v39, -inf }
 0x250   : > { %3137 = vst.msk [vmem:[%s12125_s29 + $0x60] sm:$0xf] %vm3112_vm4, %v9596_v36  ;;  %v3197_v31 = vmax.f32 %v3189_v13, %v3196_v24  ;;  %v9597_v23 = vpack.c.bf16 %v11074_v0, %v11074_v0  ;;  %v3192_v12 = vsel %vm3145_vm5, %v11074_v0, -inf }
 0x251   : > { %3140 = vst.msk [vmem:[%s12125_s29 + $0x6c] sm:$0xf] %vm3112_vm4, %v9599_v4  ;;  %v3193_v25 = vmax.f32 %v3185_v41, %v3192_v12 }
 0x252   : > { %v10295_v28 = vpop.f32.mrb[28].mxu1  ;;  %3138 = vst.msk [vmem:[%s12125_s29 + $0x64] sm:$0xf] %vm3112_vm4, %v9597_v23  ;;  %v10431_v52 = vpop.f32.mrb[28].mxu0 }
 0x253   : > { %v1760_v10 = vpop.f32.mrb[29].mxu1  ;;  %v11075_v26 = vadd.f32 %v10431_v52, %v10295_v28  ;;  %v2937_v30 = vpop.f32.mrb[29].mxu0 }
 0x254   : > { %v10296_v21 = vpop.f32.mrb[30].mxu1  ;;  %v11076_v60 = vadd.f32 %v2937_v30, %v1760_v10  ;;  %v10432_v59 = vpop.f32.mrb[30].mxu0 }
 0x255   : > { %v1763_v56 = vpop.f32.mrb[31].mxu1  ;;  %v9602_v5 = vpack.c.bf16 %v11075_v26, %v11075_v26  ;;  %v3202_v1 = vsel %vm3145_vm5, %v11075_v26, -inf  ;;  %v11077_v2 = vadd.f32 %v10432_v59, %v10296_v21  ;;  %v2940_v49 = vpop.f32.mrb[31].mxu0 }
 0x256   : > { %v3203_v15 = vmax.f32 %v3195_v61, %v3202_v1  ;;  %v9600_v35 = vpack.c.bf16 %v11076_v60, %v11076_v60  ;;  %v3198_v33 = vsel %vm3145_vm5, %v11076_v60, -inf  ;;  %v11078_v50 = vadd.f32 %v2940_v49, %v1763_v56 }
 0x257   : > { %3143 = vst.msk [vmem:[%s12125_s29 + $0x78] sm:$0xf] %vm3112_vm4, %v9602_v5  ;;  %v3199_v7 = vmax.f32 %v3191_v54, %v3198_v33  ;;  %v9603_v40 = vpack.c.bf16 %v11077_v2, %v11077_v2  ;;  %v3204_v9 = vsel %vm3145_vm5, %v11077_v2, -inf }
 0x258   : > { %3141 = vst.msk [vmem:[%s12125_s29 + $0x70] sm:$0xf] %vm3112_vm4, %v9600_v35  ;;  %v3205_v44 = vmax.f32 %v3197_v31, %v3204_v9  ;;  %v9601_v48 = vpack.c.bf16 %v11078_v50, %v11078_v50  ;;  %v3200_v16 = vsel %vm3145_vm5, %v11078_v50, -inf }
 0x259   : > { %3144 = vst.msk [vmem:[%s12125_s29 + $0x7c] sm:$0xf] %vm3112_vm4, %v9603_v40  ;;  %v3201_v18 = vmax.f32 %v3193_v25, %v3200_v16 }
 0x25a   : > { %v3207_v27 = vmax.f32 %v3203_v15, %v3205_v44  ;;  %3142 = vst.msk [vmem:[%s12125_s29 + $0x74] sm:$0xf] %vm3112_vm4, %v9601_v48 }
 0x25b   : > { %v3206_v32 = vmax.f32 %v3199_v7, %v3201_v18 }
 0x25d   : > { %v3208_v29 = vmax.f32 %v3206_v32, %v3207_v27 }
 0x25f   : > { %v3209_v51 = vrot.slane %v3208_v29, 4 }
 0x261   : > { %v3210_v17 = vmax.f32 %v3208_v29, %v3209_v51 }
 0x263   : > { %v3211_v3 = vrot.slane %v3210_v17, 2 }
 0x265   : > { %v3212_v53 = vmax.f32 %v3210_v17, %v3211_v3 }
 0x267   : > { %v3213_v11 = vrot.slane %v3212_v53, 1 }
 0x269   : > { %v3214_v20 = vmax.f32 %v3212_v53, %v3213_v11 }
 0x26b   : > { %3216 = vst.msk [vmem:[%s12129_s23] sm:$0x1] %vm3215_vm6, %v3214_v20 }
 0x26c PF: > { %p9198_p1 = scmp.ne.s32.totalorder %s12001_s15, 1 }
 0x26d   : > { %v9199_v22 = vld [vmem:[%s14361_s1 + $0x2] sm:$0x3] (!%p9198_p1)  ;;  %vm3370_vm7 = vcmask (!%p9198_p1), 1041408   ;;  %v13237_v8 = vld [vmem:[%s14361_s1 + $0x8] sm:$0x3] (!%p9198_p1)  ;;  %v3271_v63 = vld [vmem:[#allocation2 + $0x11] sm:$0xff] (!%p9198_p1) }
 0x26e   : > { %3220 = sbr.rel (%p9198_p1) target bundleno = 1146 (0x47a), region = 36  ;;  %11829 = vmatprep.subr.msk.bf16.mxu1 (!%p9198_p1), %vm3370_vm7, %v9199_v22  ;;  %11833 = vmatprep.subr.msk.bf16.mxu0 (!%p9198_p1), %vm3370_vm7, %v13237_v8  ;;  %v3372_v13 = vsel (!%p9198_p1), %vm3370_vm7, %v9199_v22, 0  ;;  %v13245_v34 = vsel (!%p9198_p1), %vm3370_vm7, %v13237_v8, 0  ;;  %v3272_v14 = vld [vmem:[#allocation2 + $0x21] sm:$0xff] (!%p9198_p1)  ;;  %vm3321_vm8 = vcmask (!%p9198_p1), 31744   ;;  %v4336_v41 = vld [vmem:[#allocation2 + $0xb1] sm:$0xff] (!%p9198_p1) }
 0x26f   : > { %v4337_v19 = vld [vmem:[#allocation2 + $0xc1] sm:$0xff] (!%p9198_p1)  ;;  %10434 = vmatpush3.bf16.msra.mxu1 (!%p9198_p1), %v3372_v13  ;;  %10570 = vmatpush3.bf16.msra.mxu0 (!%p9198_p1), %v13245_v34  ;;  %v3303_v43 = vpack.c.bf16 (!%p9198_p1), %v3272_v14, %v3271_v63  ;;  %v3273_v37 = vld [vmem:[#allocation2 + $0x31] sm:$0xff] (!%p9198_p1)  ;;  %v9283_v45 = vld [vmem:[%s14361_s1 + $0xa] sm:$0x3] (!%p9198_p1)  ;;  %vm5935_vm9 = vcmask (!%p9198_p1), 60416   ;;  %vm5968_vm10 = vcmask (!%p9198_p1), 64512  }
 0x270   : > { %v4368_v6 = vpack.c.bf16 (!%p9198_p1), %v4337_v19, %v4336_v41  ;;  %v3274_v46 = vld [vmem:[#allocation2 + $0x41] sm:$0xff] (!%p9198_p1)  ;;  %v4338_v47 = vld [vmem:[#allocation2 + $0xd1] sm:$0xff] (!%p9198_p1)  ;;  %v4729_v42 = vsel (!%p9198_p1), %vm3370_vm7, %v9283_v45, 0  ;;  %11835 = vmatprep.subr.msk.bf16.mxu0 (!%p9198_p1), %vm3370_vm7, %v9283_v45  ;;  %v9300_v26 = vld [vmem:[%s14361_s1 + $0xc] sm:$0x3] (!%p9198_p1)  ;;  %vm6038_vm11 = vcmask (!%p9198_p1), 57344  }
 0x271   : > { %v3270_v55 = vld [vmem:[%s14361_s1] sm:$0x3] (!%p9198_p1)  ;;  %v3304_v57 = vpack.c.bf16 (!%p9198_p1), %v3274_v46, %v3273_v37  ;;  %10435 = vmatprep.mubr.msk.bf16.mxu1 (!%p9198_p1), %vm3321_vm8, %v3303_v43  ;;  %v3275_v61 = vld [vmem:[#allocation2 + $0x51] sm:$0xff] (!%p9198_p1)  ;;  %v13282_v2 = vld [vmem:[%s14361_s1 + $0x4] sm:$0x3] (!%p9198_p1)  ;;  %v5024_v27 = vsel (!%p9198_p1), %vm3370_vm7, %v9300_v26, 0 }
 0x272   : > { %11830 = vmatprep.subr.msk.bf16.mxu1 (!%p9198_p1), %vm3370_vm7, %v3270_v55  ;;  %v4339_v38 = vld [vmem:[#allocation2 + $0xe1] sm:$0xff] (!%p9198_p1)  ;;  %v3584_v58 = vsel (!%p9198_p1), %vm3370_vm7, %v3270_v55, 0  ;;  %10571 = vmatprep.mubr.msk.bf16.mxu0 (!%p9198_p1), %vm3321_vm8, %v4368_v6  ;;  %v4340_v62 = vld [vmem:[#allocation2 + $0xf1] sm:$0xff] (!%p9198_p1)  ;;  %v13313_v32 = vld [vmem:[%s14361_s1 + $0xe] sm:$0x3] (!%p9198_p1) }
 0x273   : > { %v4369_v39 = vpack.c.bf16 (!%p9198_p1), %v4339_v38, %v4338_v47  ;;  %v3276_v36 = vld [vmem:[#allocation2 + $0x61] sm:$0xff] (!%p9198_p1)  ;;  %10436 = vmatmul.mubr.msk.bf16.vlgmr.msra.gmra.mrb[0].mxu1 (!%p9198_p1), %vm3321_vm8, %v3304_v57  ;;  %v3277_v24 = vld [vmem:[#allocation2 + $0x71] sm:$0xff] (!%p9198_p1) }
 0x274   : > { %v3305_v0 = vpack.c.bf16 (!%p9198_p1), %v3276_v36, %v3275_v61  ;;  %v4341_v54 = vld [vmem:[#allocation2 + $0x101] sm:$0xff] (!%p9198_p1)  ;;  %10468 = vmatpush3.bf16.msra.mxu1 (!%p9198_p1), %v3584_v58  ;;  %v4342_v23 = vld [vmem:[#allocation2 + $0x111] sm:$0xff] (!%p9198_p1) }
 0x275   : > { %10572 = vmatmul.mubr.msk.bf16.vlgmr.msra.gmra.mrb[0].mxu0 %vm3321_vm8, %v4369_v39  ;;  %v4370_v4 = vpack.c.bf16 %v4341_v54, %v4340_v62  ;;  %v3278_v31 = vld [vmem:[#allocation2 + $0x81] sm:$0xff]  ;;  %v4344_v25 = vld [vmem:[#allocation2 + $0x151] sm:$0xff]  ;;  %11831 = vmatprep.subr.msk.bf16.mxu1 %vm3370_vm7, %v13282_v2 }
 0x276   : > { %10604 = vmatpush3.bf16.msra.mxu0 %v4729_v42  ;;  %10439 = vmatprep.mubr.msk.bf16.mxu1 %vm3321_vm8, %v3305_v0  ;;  %v4343_v12 = vld [vmem:[#allocation2 + $0x121] sm:$0xff]  ;;  %v3306_v52 = vpack.c.bf16 %v3278_v31, %v3277_v24  ;;  %v4346_v21 = vld [vmem:[#allocation2 + $0x171] sm:$0xff] }
 0x277   : > { %10575 = vmatprep.mubr.msk.bf16.mxu0 %vm3321_vm8, %v4370_v4  ;;  %v4345_v28 = vld [vmem:[#allocation2 + $0x161] sm:$0xff]  ;;  %v4371_v10 = vpack.c.bf16 %v4343_v12, %v4342_v23  ;;  %11836 = vmatprep.subr.msk.bf16.mxu0 %vm3370_vm7, %v9300_v26  ;;  %v4348_v59 = vld [vmem:[#allocation2 + $0x191] sm:$0xff] }
 0x278   : > { %v13267_v30 = vpack.c.bf16 %v4345_v28, %v4344_v25  ;;  %v4347_v60 = vld [vmem:[#allocation2 + $0x181] sm:$0xff]  ;;  %v4350_v49 = vld [vmem:[#allocation2 + $0x1b1] sm:$0xff] }
 0x279   : > { %v4349_v56 = vld [vmem:[#allocation2 + $0x1a1] sm:$0xff]  ;;  %v13275_v5 = vpack.c.bf16 %v4347_v60, %v4346_v21  ;;  %v4630_v35 = vld [vmem:[#allocation2 + $0xb2] sm:$0xff] }
 0x27a   : > { %v13277_v1 = vpack.c.bf16 %v4349_v56, %v4348_v59  ;;  %v4351_v15 = vld [vmem:[#allocation2 + $0x1c1] sm:$0xff]  ;;  %v4632_v40 = vld [vmem:[#allocation2 + $0xd2] sm:$0xff]  ;;  %v3846_v56 = vsel %vm3370_vm7, %v13282_v2, 0 }
 0x27b   : > { %10440 = vmatmul.mubr.msk.bf16.gmra.mrb[4].mxu1 %vm3321_vm8, %v3306_v52  ;;  %v4631_v33 = vld [vmem:[#allocation2 + $0xc2] sm:$0xff]  ;;  %v13292_v50 = vpack.c.bf16 %v4351_v15, %v4350_v49  ;;  %v4634_v44 = vld [vmem:[#allocation2 + $0xf2] sm:$0xff] }
 0x27c   : > { %10443 = vmatprep.mubr.msk.bf16.mxu1 %vm3321_vm8, %v4368_v6  ;;  %v13294_v7 = vpack.c.bf16 %v4631_v33, %v4630_v35  ;;  %v4633_v9 = vld [vmem:[#allocation2 + $0xe2] sm:$0xff]  ;;  %v4636_v29 = vld [vmem:[#allocation2 + $0x112] sm:$0xff] }
 0x27d   : > { %10576 = vmatmul.mubr.msk.bf16.gmra.mrb[4].mxu0 %vm3321_vm8, %v4371_v10  ;;  %v4635_v48 = vld [vmem:[#allocation2 + $0x102] sm:$0xff]  ;;  %v13303_v16 = vpack.c.bf16 %v4633_v9, %v4632_v40  ;;  %v3295_v17 = vld [vmem:[#allocation2 + $0x1f1] sm:$0xff] }
 0x27e   : > { %10579 = vmatprep.mubr.msk.bf16.mxu0 %vm3321_vm8, %v13267_v30  ;;  %v13305_v18 = vpack.c.bf16 %v4635_v48, %v4634_v44  ;;  %v4637_v51 = vld [vmem:[#allocation2 + $0x122] sm:$0xff]  ;;  %v4638_v53 = vld [vmem:[#allocation2 + $0x152] sm:$0xff] }
 0x27f   : > { %v3296_v3 = vld [vmem:[#allocation2 + $0x201] sm:$0xff]  ;;  %v13323_v20 = vpack.c.bf16 %v4637_v51, %v4636_v29  ;;  %v3297_v13 = vld [vmem:[#allocation2 + $0x211] sm:$0xff] }
 0x280   : > { %v4639_v11 = vld [vmem:[#allocation2 + $0x162] sm:$0xff]  ;;  %v13325_v22 = vpack.c.bf16 %v3296_v3, %v3295_v17  ;;  %v4640_v41 = vld [vmem:[#allocation2 + $0x172] sm:$0xff] }
 0x281   : > { %v13327_v63 = vpack.c.bf16 %v4639_v11, %v4638_v53  ;;  %v3298_v14 = vld [vmem:[#allocation2 + $0x221] sm:$0xff]  ;;  %v3299_v43 = vld [vmem:[#allocation2 + $0x231] sm:$0xff] }
 0x282   : > { %v4641_v19 = vld [vmem:[#allocation2 + $0x182] sm:$0xff]  ;;  %v4642_v37 = vld [vmem:[#allocation2 + $0x192] sm:$0xff]  ;;  %v13337_v55 = vpack.c.bf16 %v3298_v14, %v3297_v13 }
 0x283   : > { %10444 = vmatmul.mubr.msk.bf16.gmra.mrb[8].mxu1 %vm3321_vm8, %v4369_v39  ;;  %v3300_v6 = vld [vmem:[#allocation2 + $0x241] sm:$0xff]  ;;  %v13339_v57 = vpack.c.bf16 %v4641_v19, %v4640_v41  ;;  %v3301_v45 = vld [vmem:[#allocation2 + $0x251] sm:$0xff] }
 0x284   : > { %10447 = vmatprep.mubr.msk.bf16.mxu1 %vm3321_vm8, %v4370_v4  ;;  %v4643_v46 = vld [vmem:[#allocation2 + $0x1a2] sm:$0xff]  ;;  %v13341_v47 = vpack.c.bf16 %v3300_v6, %v3299_v43  ;;  %v4644_v39 = vld [vmem:[#allocation2 + $0x1b2] sm:$0xff] }
 0x285   : > { %10580 = vmatmul.mubr.msk.bf16.gmra.mrb[8].mxu0 %vm3321_vm8, %v13275_v5  ;;  %v13343_v38 = vpack.c.bf16 %v4643_v46, %v4642_v37  ;;  %v3302_v58 = vld [vmem:[#allocation2 + $0x261] sm:$0xff]  ;;  %v3222_v61 = vld [vmem:[#allocation2 + $0x10] sm:$0xff] }
 0x286   : > { %10583 = vmatprep.mubr.msk.bf16.mxu0 %vm3321_vm8, %v13277_v1  ;;  %v4645_v42 = vld [vmem:[#allocation2 + $0x1c2] sm:$0xff]  ;;  %v4646_v62 = vld [vmem:[#allocation2 + $0x1f2] sm:$0xff]  ;;  %v13353_v54 = vpack.c.bf16 %v3302_v58, %v3301_v45 }
 0x287   : > { %v3223_v36 = vld [vmem:[#allocation2 + $0x20] sm:$0xff]  ;;  %v13355_v4 = vpack.c.bf16 %v4645_v42, %v4644_v39  ;;  %v3224_v23 = vld [vmem:[#allocation2 + $0x30] sm:$0xff] }
 0x288   : > { %v4647_v0 = vld [vmem:[#allocation2 + $0x202] sm:$0xff]  ;;  %v3254_v24 = vpack.c.bf16 %v3223_v36, %v3222_v61  ;;  %v4648_v25 = vld [vmem:[#allocation2 + $0x212] sm:$0xff] }
 0x289   : > { %v13357_v31 = vpack.c.bf16 %v4647_v0, %v4646_v62  ;;  %v3225_v12 = vld [vmem:[#allocation2 + $0x40] sm:$0xff]  ;;  %v3226_v52 = vld [vmem:[#allocation2 + $0x50] sm:$0xff] }
 0x28a   : > { %v4649_v28 = vld [vmem:[#allocation2 + $0x222] sm:$0xff]  ;;  %v4650_v26 = vld [vmem:[#allocation2 + $0x232] sm:$0xff]  ;;  %v3255_v60 = vpack.c.bf16 %v3225_v12, %v3224_v23 }
 0x28b   : > { %10448 = vmatmul.mubr.msk.bf16.gmra.mrb[12].mxu1 %vm3321_vm8, %v4371_v10  ;;  %v3227_v10 = vld [vmem:[#allocation2 + $0x60] sm:$0xff]  ;;  %v13366_v59 = vpack.c.bf16 %v4649_v28, %v4648_v25  ;;  %v3228_v33 = vld [vmem:[#allocation2 + $0x70] sm:$0xff] }
 0x28c   : > { %10451 = vmatprep.mubr.msk.bf16.mxu1 %vm3321_vm8, %v13267_v30  ;;  %v4651_v21 = vld [vmem:[#allocation2 + $0x242] sm:$0xff]  ;;  %v3256_v49 = vpack.c.bf16 %v3227_v10, %v3226_v52  ;;  %v4652_v9 = vld [vmem:[#allocation2 + $0x252] sm:$0xff] }
 0x28d   : > { %10584 = vmatmul.mubr.msk.bf16.gmra.mrb[12].mxu0 %vm3321_vm8, %v13292_v50  ;;  %v13370_v15 = vpack.c.bf16 %v4651_v21, %v4650_v26  ;;  %v13376_v35 = vld [vmem:[%s14361_s1 + $0x6] sm:$0x3]  ;;  %v3230_v44 = vld [vmem:[#allocation2 + $0xb0] sm:$0xff] }
 0x28e   : > { %10605 = vmatprep.mubr.msk.bf16.mxu0 %vm3321_vm8, %v13294_v7  ;;  %v3229_v40 = vld [vmem:[#allocation2 + $0x80] sm:$0xff]  ;;  %v3232_v11 = vld [vmem:[#allocation2 + $0xd0] sm:$0xff] }
 0x28f   : > { %v4653_v2 = vld [vmem:[#allocation2 + $0x262] sm:$0xff]  ;;  %v3257_v51 = vpack.c.bf16 %v3229_v40, %v3228_v33  ;;  %v4656_v14 = vld [vmem:[#allocation2 + $0x2b2] sm:$0xff] }
 0x290   : > { %v3231_v48 = vld [vmem:[#allocation2 + $0xc0] sm:$0xff]  ;;  %v13385_v17 = vpack.c.bf16 %v4653_v2, %v4652_v9  ;;  %v3234_v19 = vld [vmem:[#allocation2 + $0xf0] sm:$0xff] }
 0x291   : > { %v4655_v29 = vld [vmem:[#allocation2 + $0x2a2] sm:$0xff]  ;;  %v13387_v3 = vpack.c.bf16 %v3231_v48, %v3230_v44  ;;  %v4658_v6 = vld [vmem:[#allocation2 + $0x2d2] sm:$0xff] }
 0x292   : > { %v3233_v13 = vld [vmem:[#allocation2 + $0xe0] sm:$0xff]  ;;  %v3236_v42 = vld [vmem:[#allocation2 + $0x110] sm:$0xff] }
 0x293   : > { %10452 = vmatmul.mubr.msk.bf16.gmra.mrb[16].mxu1 %vm3321_vm8, %v13275_v5  ;;  %v4657_v41 = vld [vmem:[#allocation2 + $0x2c2] sm:$0xff]  ;;  %v13398_v46 = vpack.c.bf16 %v3233_v13, %v3232_v11  ;;  %v4660_v36 = vld [vmem:[#allocation2 + $0x2f2] sm:$0xff] }
 0x294   : > { %10455 = vmatprep.mubr.msk.bf16.mxu1 %vm3321_vm8, %v13277_v1  ;;  %v3235_v43 = vld [vmem:[#allocation2 + $0x100] sm:$0xff]  ;;  %v13400_v45 = vpack.c.bf16 %v4657_v41, %v4656_v14  ;;  %v3238_v0 = vld [vmem:[#allocation2 + $0x150] sm:$0xff] }
 0x295   : > { %10606 = vmatmul.mubr.msk.bf16.vlgmr.msra.gmra.mrb[0].mxu0 %vm3321_vm8, %v13303_v16  ;;  %v4659_v37 = vld [vmem:[#allocation2 + $0x2e2] sm:$0xff]  ;;  %v13402_v58 = vpack.c.bf16 %v3235_v43, %v3234_v19  ;;  %v3240_v28 = vld [vmem:[#allocation2 + $0x170] sm:$0xff] }
 0x296   : > { %10638 = vmatpush3.bf16.msra.mxu0 %v5024_v27  ;;  %10609 = vmatprep.mubr.msk.bf16.mxu0 %vm3321_vm8, %v13305_v18  ;;  %v4654_v27 = vld [vmem:[#allocation2 + $0x292] sm:$0xff]  ;;  %v13404_v39 = vpack.c.bf16 %v4659_v37, %v4658_v6  ;;  %v3237_v61 = vld [vmem:[#allocation2 + $0x120] sm:$0xff] }
 0x297   : > { %11837 = vmatprep.subr.msk.bf16.mxu0 %vm3370_vm7, %v13313_v32  ;;  %v13389_v53 = vpack.c.bf16 %v4655_v29, %v4654_v27  ;;  %v4661_v62 = vld [vmem:[#allocation2 + $0x302] sm:$0xff]  ;;  %v13414_v23 = vpack.c.bf16 %v3237_v61, %v3236_v42  ;;  %v3242_v10 = vld [vmem:[#allocation2 + $0x190] sm:$0xff] }
 0x298   : > { %v13416_v12 = vpack.c.bf16 %v4661_v62, %v4660_v36  ;;  %v3241_v52 = vld [vmem:[#allocation2 + $0x180] sm:$0xff]  ;;  %v3244_v33 = vld [vmem:[#allocation2 + $0x1b0] sm:$0xff] }
 0x299   : > { %v3243_v26 = vld [vmem:[#allocation2 + $0x1a0] sm:$0xff]  ;;  %v13428_v21 = vpack.c.bf16 %v3241_v52, %v3240_v28  ;;  %v3248_v48 = vld [vmem:[#allocation2 + $0x210] sm:$0xff] }
 0x29a   : > { %v3245_v40 = vld [vmem:[#allocation2 + $0x1c0] sm:$0xff]  ;;  %v3250_v29 = vld [vmem:[#allocation2 + $0x230] sm:$0xff] }
 0x29b   : > { %10456 = vmatmul.mubr.msk.bf16.gmra.mrb[20].mxu1 %vm3321_vm8, %v13292_v50  ;;  %v3247_v9 = vld [vmem:[#allocation2 + $0x200] sm:$0xff]  ;;  %v13449_v2 = vpack.c.bf16 %v3245_v40, %v3244_v33  ;;  %v3252_v14 = vld [vmem:[#allocation2 + $0x250] sm:$0xff] }
 0x29c   : > { %10459 = vmatprep.mubr.msk.bf16.mxu1 %vm3321_vm8, %v13325_v22  ;;  %v3249_v27 = vld [vmem:[#allocation2 + $0x220] sm:$0xff]  ;;  %v3747_v19 = vld [vmem:[#allocation2 + $0x12] sm:$0xff] }
 0x29d   : > { %10610 = vmatmul.mubr.msk.bf16.gmra.mrb[4].mxu0 %vm3321_vm8, %v13323_v20  ;;  %v13461_v11 = vpack.c.bf16 %v3249_v27, %v3248_v48  ;;  %v3253_v41 = vld [vmem:[#allocation2 + $0x260] sm:$0xff]  ;;  %v4941_v6 = vld [vmem:[#allocation2 + $0x290] sm:$0xff] }
 0x29e   : > { %10613 = vmatprep.mubr.msk.bf16.mxu0 %vm3321_vm8, %v13327_v63  ;;  %v3748_v43 = vld [vmem:[#allocation2 + $0x22] sm:$0xff]  ;;  %v13473_v42 = vpack.c.bf16 %v3253_v41, %v3252_v14  ;;  %v3749_v62 = vld [vmem:[#allocation2 + $0x32] sm:$0xff] }
 0x29f   : > { %v4942_v37 = vld [vmem:[#allocation2 + $0x2a0] sm:$0xff]  ;;  %v3779_v61 = vpack.c.bf16 %v3748_v43, %v3747_v19  ;;  %v3751_v52 = vld [vmem:[#allocation2 + $0x52] sm:$0xff] }
 0x2a0   : > { %v13475_v36 = vpack.c.bf16 %v4942_v37, %v4941_v6  ;;  %v4944_v28 = vld [vmem:[#allocation2 + $0x2c0] sm:$0xff]  ;;  %v3753_v27 = vld [vmem:[#allocation2 + $0x72] sm:$0xff] }
 0x2a1   : > { %v4948_v14 = vld [vmem:[#allocation2 + $0x300] sm:$0xff]  ;;  %v4949_v41 = vld [vmem:[#allocation2 + $0x330] sm:$0xff] }
 0x2a2   : > { %v4951_v37 = vld [vmem:[#allocation2 + $0x350] sm:$0xff] }
 0x2a3   : > { %10460 = vmatmul.mubr.msk.bf16.gmra.mrb[24].mxu1 %vm3321_vm8, %v13337_v55 }
 0x2a4   : > { %10463 = vmatprep.mubr.msk.bf16.mxu1 %vm3321_vm8, %v13341_v47 }
 0x2a5   : > { %10614 = vmatmul.mubr.msk.bf16.gmra.mrb[8].mxu0 %vm3321_vm8, %v13339_v57 }
 0x2a6   : > { %10617 = vmatprep.mubr.msk.bf16.mxu0 %vm3321_vm8, %v13343_v38 }
 0x2ab   : > { %10464 = vmatmul.mubr.msk.bf16.gmra.mrb[28].mxu1 %vm3321_vm8, %v13353_v54 }
 0x2ac   : > { %10469 = vmatprep.mubr.msk.bf16.mxu1 %vm3321_vm8, %v3254_v24  ;;  %v3239_v24 = vld [vmem:[#allocation2 + $0x160] sm:$0xff] }
 0x2ad   : > { %10618 = vmatmul.mubr.msk.bf16.gmra.mrb[12].mxu0 %vm3321_vm8, %v13355_v4  ;;  %v13418_v25 = vpack.c.bf16 %v3239_v24, %v3238_v0  ;;  %v3750_v0 = vld [vmem:[#allocation2 + $0x42] sm:$0xff]  ;;  %v4943_v24 = vld [vmem:[#allocation2 + $0x2b0] sm:$0xff] }
 0x2ae   : > { %10621 = vmatprep.mubr.msk.bf16.mxu0 %vm3321_vm8, %v13357_v31  ;;  %v3780_v33 = vpack.c.bf16 %v3750_v0, %v3749_v62  ;;  %v13484_v40 = vpack.c.bf16 %v4944_v28, %v4943_v24  ;;  %v4953_v62 = vld [vmem:[#allocation2 + $0x370] sm:$0xff]  ;;  %v4954_v0 = vld [vmem:[#allocation2 + $0x380] sm:$0xff] }
 0x2af   : > { %v4955_v28 = vld [vmem:[#allocation2 + $0x390] sm:$0xff] }
 0x2b3   : > { %10470 = vmatmul.mubr.msk.bf16.vlgmr.msra.gmra.mrb[0].mxu1 %vm3321_vm8, %v3255_v60  ;;  %v13430_v60 = vpack.c.bf16 %v3243_v26, %v3242_v10  ;;  %v3752_v10 = vld [vmem:[#allocation2 + $0x62] sm:$0xff]  ;;  %v4945_v26 = vld [vmem:[#allocation2 + $0x2d0] sm:$0xff] }
 0x2b4   : > { %10502 = vmatpush3.bf16.msra.mxu1 %v3846_v56  ;;  %10473 = vmatprep.mubr.msk.bf16.mxu1 %vm3321_vm8, %v3256_v49  ;;  %v5318_v56 = vsel %vm3370_vm7, %v13313_v32, 0  ;;  %v13439_v49 = vld [vmem:[%s14361_s1 + $0x10] sm:$0x3] }
 0x2b5   : > { %10622 = vmatmul.mubr.msk.bf16.gmra.mrb[16].mxu0 %vm3321_vm8, %v13366_v59  ;;  %11832 = vmatprep.subr.msk.bf16.mxu1 %vm3370_vm7, %v13376_v35  ;;  %v3246_v32 = vld [vmem:[#allocation2 + $0x1f0] sm:$0xff] }
 0x2b6   : > { %10625 = vmatprep.mubr.msk.bf16.mxu0 %vm3321_vm8, %v13370_v15  ;;  %v13451_v44 = vpack.c.bf16 %v3247_v9, %v3246_v32  ;;  %v4141_v32 = vsel %vm3370_vm7, %v13376_v35, 0  ;;  %v3781_v9 = vpack.c.bf16 %v3752_v10, %v3751_v52  ;;  %v4950_v35 = vld [vmem:[#allocation2 + $0x340] sm:$0xff] }
 0x2b7   : > { %v4969_v6 = vpack.c.bf16 %v4950_v35, %v4949_v41 }
 0x2bb   : > { %10474 = vmatmul.mubr.msk.bf16.gmra.mrb[4].mxu1 %vm3321_vm8, %v3257_v51  ;;  %v3251_v51 = vld [vmem:[#allocation2 + $0x240] sm:$0xff] }
 0x2bc   : > { %10477 = vmatprep.mubr.msk.bf16.mxu1 %vm3321_vm8, %v13387_v3  ;;  %v13463_v13 = vpack.c.bf16 %v3251_v51, %v3250_v29  ;;  %v3754_v29 = vld [vmem:[#allocation2 + $0x82] sm:$0xff]  ;;  %v4947_v51 = vld [vmem:[#allocation2 + $0x2f0] sm:$0xff] }
 0x2bd   : > { %10626 = vmatmul.mubr.msk.bf16.gmra.mrb[20].mxu0 %vm3321_vm8, %v13385_v17  ;;  %v3782_v19 = vpack.c.bf16 %v3754_v29, %v3753_v27  ;;  %v13498_v43 = vpack.c.bf16 %v4948_v14, %v4947_v51  ;;  %v5248_v29 = vld [vmem:[#allocation2 + $0x381] sm:$0xff] }
 0x2be   : > { %10629 = vmatprep.mubr.msk.bf16.mxu0 %vm3321_vm8, %v13389_v53 }
 0x2c3   : > { %10478 = vmatmul.mubr.msk.bf16.gmra.mrb[8].mxu1 %vm3321_vm8, %v13398_v46 }
 0x2c4   : > { %10481 = vmatprep.mubr.msk.bf16.mxu1 %vm3321_vm8, %v13402_v58 }
 0x2c5   : > { %10630 = vmatmul.mubr.msk.bf16.gmra.mrb[24].mxu0 %vm3321_vm8, %v13400_v45 }
 0x2c6   : > { %10633 = vmatprep.mubr.msk.bf16.mxu0 %vm3321_vm8, %v13404_v39 }
 0x2cb   : > { %10482 = vmatmul.mubr.msk.bf16.gmra.mrb[12].mxu1 %vm3321_vm8, %v13414_v23 }
 0x2cc   : > { %10485 = vmatprep.mubr.msk.bf16.mxu1 %vm3321_vm8, %v13418_v25 }
 0x2cd   : > { %10634 = vmatmul.mubr.msk.bf16.gmra.mrb[28].mxu0 %vm3321_vm8, %v13416_v12 }
 0x2ce   : > { %10639 = vmatprep.mubr.msk.bf16.mxu0 %vm3321_vm8, %v13418_v25 }
 0x2d3   : > { %10486 = vmatmul.mubr.msk.bf16.gmra.mrb[16].mxu1 %vm3321_vm8, %v13428_v21 }
 0x2d4   : > { %10489 = vmatprep.mubr.msk.bf16.mxu1 %vm3321_vm8, %v13430_v60 }
 0x2d5   : > { %10640 = vmatmul.mubr.msk.bf16.vlgmr.msra.gmra.mrb[0].mxu0 %vm3321_vm8, %v13428_v21 }
 0x2d6   : > { %10672 = vmatpush3.bf16.msra.mxu0 %v5318_v56  ;;  %10643 = vmatprep.mubr.msk.bf16.mxu0 %vm3321_vm8, %v13430_v60  ;;  %v4946_v56 = vld [vmem:[#allocation2 + $0x2e0] sm:$0xff] }
 0x2d7   : > { %11838 = vmatprep.subr.msk.bf16.mxu0 %vm3370_vm7, %v13439_v49  ;;  %v13488_v48 = vpack.c.bf16 %v4946_v56, %v4945_v26  ;;  %v5242_v56 = vld [vmem:[#allocation2 + $0x301] sm:$0xff] }
 0x2db   : > { %10490 = vmatmul.mubr.msk.bf16.gmra.mrb[20].mxu1 %vm3321_vm8, %v13449_v2 }
 0x2dc   : > { %10493 = vmatprep.mubr.msk.bf16.mxu1 %vm3321_vm8, %v13451_v44 }
 0x2dd   : > { %10644 = vmatmul.mubr.msk.bf16.gmra.mrb[4].mxu0 %vm3321_vm8, %v13449_v2 }
 0x2de   : > { %10647 = vmatprep.mubr.msk.bf16.mxu0 %vm3321_vm8, %v13451_v44 }
 0x2e3   : > { %10494 = vmatmul.mubr.msk.bf16.gmra.mrb[24].mxu1 %vm3321_vm8, %v13461_v11 }
 0x2e4   : > { %10497 = vmatprep.mubr.msk.bf16.mxu1 %vm3321_vm8, %v13463_v13 }
 0x2e5   : > { %10648 = vmatmul.mubr.msk.bf16.gmra.mrb[8].mxu0 %vm3321_vm8, %v13461_v11 }
 0x2e6   : > { %10651 = vmatprep.mubr.msk.bf16.mxu0 %vm3321_vm8, %v13463_v13 }
 0x2eb   : > { %10498 = vmatmul.mubr.msk.bf16.gmra.mrb[28].mxu1 %vm3321_vm8, %v13473_v42 }
 0x2ec   : > { %10503 = vmatprep.mubr.msk.bf16.mxu1 %vm3321_vm8, %v3779_v61  ;;  %v4952_v61 = vld [vmem:[#allocation2 + $0x360] sm:$0xff] }
 0x2ed   : > { %10652 = vmatmul.mubr.msk.bf16.gmra.mrb[12].mxu0 %vm3321_vm8, %v13473_v42  ;;  %v4970_v24 = vpack.c.bf16 %v4952_v61, %v4951_v37 }
 0x2ee   : > { %10655 = vmatprep.mubr.msk.bf16.mxu0 %vm3321_vm8, %v13475_v36 }
 0x2f3   : > { %10504 = vmatmul.mubr.msk.bf16.vlgmr.msra.gmra.mrb[0].mxu1 %vm3321_vm8, %v3780_v33  ;;  %v5243_v33 = vld [vmem:[#allocation2 + $0x331] sm:$0xff] }
 0x2f4   : > { %10536 = vmatpush3.bf16.msra.mxu1 %v4141_v32  ;;  %10507 = vmatprep.mubr.msk.bf16.mxu1 %vm3321_vm8, %v3781_v9  ;;  %v5244_v32 = vld [vmem:[#allocation2 + $0x341] sm:$0xff] }
 0x2f5   : > { %10656 = vmatmul.mubr.msk.bf16.gmra.mrb[16].mxu0 %vm3321_vm8, %v13484_v40  ;;  %11834 = vmatprep.subr.msk.bf16.mxu1 %vm3370_vm7, %v13237_v8  ;;  %v4971_v8 = vpack.c.bf16 %v4954_v0, %v4953_v62  ;;  %v5263_v27 = vpack.c.bf16 %v5244_v32, %v5243_v33 }
 0x2f6   : > { %10659 = vmatprep.mubr.msk.bf16.mxu0 %vm3321_vm8, %v13488_v48 }
 0x2fb   : > { %10508 = vmatmul.mubr.msk.bf16.gmra.mrb[4].mxu1 %vm3321_vm8, %v3782_v19 }
 0x2fc   : > { %10511 = vmatprep.mubr.msk.bf16.mxu1 %vm3321_vm8, %v13294_v7  ;;  %v4956_v7 = vld [vmem:[#allocation2 + $0x3a0] sm:$0xff] }
 0x2fd   : > { %10660 = vmatmul.mubr.msk.bf16.gmra.mrb[20].mxu0 %vm3321_vm8, %v13498_v43  ;;  %v4972_v52 = vpack.c.bf16 %v4956_v7, %v4955_v28 }
 0x2fe   : > { %10663 = vmatprep.mubr.msk.bf16.mxu0 %vm3321_vm8, %v4969_v6 }
 0x303   : > { %10512 = vmatmul.mubr.msk.bf16.gmra.mrb[8].mxu1 %vm3321_vm8, %v13303_v16  ;;  %v5612_v16 = vsel %vm3370_vm7, %v13439_v49, 0  ;;  %v5240_v49 = vld [vmem:[#allocation2 + $0x2e1] sm:$0xff] }
 0x304   : > { %10515 = vmatprep.mubr.msk.bf16.mxu1 %vm3321_vm8, %v13305_v18  ;;  %v5238_v18 = vld [vmem:[#allocation2 + $0x2c1] sm:$0xff] }
 0x305   : > { %10664 = vmatmul.mubr.msk.bf16.gmra.mrb[24].mxu0 %vm3321_vm8, %v4970_v24 }
 0x306   : > { %10667 = vmatprep.mubr.msk.bf16.mxu0 %vm3321_vm8, %v4971_v8 }
 0x30b   : > { %10516 = vmatmul.mubr.msk.bf16.gmra.mrb[12].mxu1 %vm3321_vm8, %v13323_v20  ;;  %v5239_v20 = vld [vmem:[#allocation2 + $0x2d1] sm:$0xff] }
 0x30c   : > { %10519 = vmatprep.mubr.msk.bf16.mxu1 %vm3321_vm8, %v13327_v63  ;;  %v13557_v26 = vpack.c.bf16 %v5240_v49, %v5239_v20 }
 0x30d   : > { %10668 = vmatmul.mubr.msk.bf16.gmra.mrb[28].mxu0 %vm3321_vm8, %v4972_v52 }
 0x30e   : > { %10673 = vmatprep.mubr.msk.bf16.mxu0 %vm3321_vm8, %v13267_v30  ;;  %v5235_v30 = vld [vmem:[#allocation2 + $0x291] sm:$0xff] }
 0x313   : > { %10520 = vmatmul.mubr.msk.bf16.gmra.mrb[16].mxu1 %vm3321_vm8, %v13339_v57 }
 0x314   : > { %10523 = vmatprep.mubr.msk.bf16.mxu1 %vm3321_vm8, %v13343_v38 }
 0x315   : > { %10674 = vmatmul.mubr.msk.bf16.vlgmr.msra.gmra.mrb[0].mxu0 %vm3321_vm8, %v13275_v5  ;;  %v5236_v5 = vld [vmem:[#allocation2 + $0x2a1] sm:$0xff] }
 0x316   : > { %10706 = vmatpush3.bf16.msra.mxu0 %v5612_v16  ;;  %10677 = vmatprep.mubr.msk.bf16.mxu0 %vm3321_vm8, %v13277_v1  ;;  %v13545_v1 = vpack.c.bf16 %v5236_v5, %v5235_v30 }
 0x31b   : > { %10524 = vmatmul.mubr.msk.bf16.gmra.mrb[20].mxu1 %vm3321_vm8, %v13355_v4 }
 0x31c   : > { %10527 = vmatprep.mubr.msk.bf16.mxu1 %vm3321_vm8, %v13357_v31 }
 0x31d   : > { %10678 = vmatmul.mubr.msk.bf16.gmra.mrb[4].mxu0 %vm3321_vm8, %v13292_v50  ;;  %v5237_v50 = vld [vmem:[#allocation2 + $0x2b1] sm:$0xff] }
 0x31e   : > { %10681 = vmatprep.mubr.msk.bf16.mxu0 %vm3321_vm8, %v13325_v22  ;;  %v13555_v10 = vpack.c.bf16 %v5238_v18, %v5237_v50 }
 0x323   : > { %10528 = vmatmul.mubr.msk.bf16.gmra.mrb[24].mxu1 %vm3321_vm8, %v13366_v59 }
 0x324   : > { %10531 = vmatprep.mubr.msk.bf16.mxu1 %vm3321_vm8, %v13370_v15 }
 0x325   : > { %10682 = vmatmul.mubr.msk.bf16.gmra.mrb[8].mxu0 %vm3321_vm8, %v13337_v55 }
 0x326   : > { %10685 = vmatprep.mubr.msk.bf16.mxu0 %vm3321_vm8, %v13341_v47 }
 0x32b   : > { %10532 = vmatmul.mubr.msk.bf16.gmra.mrb[28].mxu1 %vm3321_vm8, %v13385_v17 }
 0x32c   : > { %10537 = vmatprep.mubr.msk.bf16.mxu1 %vm3321_vm8, %v13387_v3  ;;  %v5241_v3 = vld [vmem:[#allocation2 + $0x2f1] sm:$0xff] }
 0x32d   : > { %10686 = vmatmul.mubr.msk.bf16.gmra.mrb[12].mxu0 %vm3321_vm8, %v13353_v54  ;;  %v13568_v9 = vpack.c.bf16 %v5242_v56, %v5241_v3 }
 0x32e   : > { %10689 = vmatprep.mubr.msk.bf16.mxu0 %vm3321_vm8, %v13545_v1 }
 0x333   : > { %10538 = vmatmul.mubr.msk.bf16.vlgmr.msra.gmra.mrb[0].mxu1 %vm3321_vm8, %v13398_v46  ;;  %v5246_v46 = vld [vmem:[#allocation2 + $0x361] sm:$0xff] }
 0x334   : > { %11304 = vmatpush3.bf16.msra.mxu1 %v13245_v34  ;;  %10541 = vmatprep.mubr.msk.bf16.mxu1 %vm3321_vm8, %v13402_v58  ;;  %v5245_v34 = vld [vmem:[#allocation2 + $0x351] sm:$0xff] }
 0x335   : > { %10690 = vmatmul.mubr.msk.bf16.gmra.mrb[16].mxu0 %vm3321_vm8, %v13555_v10  ;;  %v5247_v58 = vld [vmem:[#allocation2 + $0x371] sm:$0xff]  ;;  %v5264_v51 = vpack.c.bf16 %v5246_v46, %v5245_v34 }
 0x336   : > { %10693 = vmatprep.mubr.msk.bf16.mxu0 %vm3321_vm8, %v13557_v26  ;;  %v5265_v14 = vpack.c.bf16 %v5248_v29, %v5247_v58 }
 0x33b   : > { %10542 = vmatmul.mubr.msk.bf16.gmra.mrb[4].mxu1 %vm3321_vm8, %v13414_v23  ;;  %v5249_v23 = vld [vmem:[#allocation2 + $0x391] sm:$0xff] }
 0x33c   : > { %10545 = vmatprep.mubr.msk.bf16.mxu1 %vm3321_vm8, %v13418_v25  ;;  %v5250_v25 = vld [vmem:[#allocation2 + $0x3a1] sm:$0xff] }
 0x33d   : > { %10694 = vmatmul.mubr.msk.bf16.gmra.mrb[20].mxu0 %vm3321_vm8, %v13568_v9  ;;  %v5266_v41 = vpack.c.bf16 %v5250_v25, %v5249_v23 }
 0x33e   : > { %10697 = vmatprep.mubr.msk.bf16.mxu0 %vm3321_vm8, %v5263_v27 }
 0x343   : > { %10546 = vmatmul.mubr.msk.bf16.gmra.mrb[8].mxu1 %vm3321_vm8, %v13428_v21 }
 0x344   : > { %10549 = vmatprep.mubr.msk.bf16.mxu1 %vm3321_vm8, %v13430_v60 }
 0x345   : > { %10698 = vmatmul.mubr.msk.bf16.gmra.mrb[24].mxu0 %vm3321_vm8, %v5264_v51 }
 0x346   : > { %10701 = vmatprep.mubr.msk.bf16.mxu0 %vm3321_vm8, %v5265_v14 }
 0x34b   : > { %10550 = vmatmul.mubr.msk.bf16.gmra.mrb[12].mxu1 %vm3321_vm8, %v13449_v2 }
 0x34c   : > { %10553 = vmatprep.mubr.msk.bf16.mxu1 %vm3321_vm8, %v13451_v44 }
 0x34d   : > { %10702 = vmatmul.mubr.msk.bf16.gmra.mrb[28].mxu0 %vm3321_vm8, %v5266_v41 }
 0x34e   : > { %10707 = vmatprep.mubr.msk.bf16.mxu0 %vm3321_vm8, %v13327_v63  ;;  %v5537_v63 = vld [vmem:[#allocation2 + $0x332] sm:$0xff] }
 0x353   : > { %10554 = vmatmul.mubr.msk.bf16.gmra.mrb[16].mxu1 %vm3321_vm8, %v13461_v11 }
 0x354   : > { %10557 = vmatprep.mubr.msk.bf16.mxu1 %vm3321_vm8, %v13463_v13 }
 0x355   : > { %10708 = vmatmul.mubr.msk.bf16.vlgmr.msra.gmra.mrb[0].mxu0 %vm3321_vm8, %v13339_v57  ;;  %v5538_v57 = vld [vmem:[#allocation2 + $0x342] sm:$0xff] }
 0x356   : > { %10711 = vmatprep.mubr.msk.bf16.mxu0 %vm3321_vm8, %v13343_v38  ;;  %v5557_v38 = vpack.c.bf16 %v5538_v57, %v5537_v63 }
 0x35b   : > { %10558 = vmatmul.mubr.msk.bf16.gmra.mrb[20].mxu1 %vm3321_vm8, %v13473_v42 }
 0x35c   : > { %10561 = vmatprep.mubr.msk.bf16.mxu1 %vm3321_vm8, %v13475_v36 }
 0x35d   : > { %10712 = vmatmul.mubr.msk.bf16.gmra.mrb[4].mxu0 %vm3321_vm8, %v13355_v4  ;;  %v5542_v4 = vld [vmem:[#allocation2 + $0x382] sm:$0xff] }
 0x35e   : > { %10715 = vmatprep.mubr.msk.bf16.mxu0 %vm3321_vm8, %v13357_v31 }
 0x363   : > { %10562 = vmatmul.mubr.msk.bf16.gmra.mrb[24].mxu1 %vm3321_vm8, %v13484_v40 }
 0x364   : > { %10565 = vmatprep.mubr.msk.bf16.mxu1 %vm3321_vm8, %v13488_v48 }
 0x365   : > { %10716 = vmatmul.mubr.msk.bf16.gmra.mrb[8].mxu0 %vm3321_vm8, %v13366_v59 }
 0x366   : > { %10719 = vmatprep.mubr.msk.bf16.mxu0 %vm3321_vm8, %v13370_v15  ;;  %v5544_v15 = vld [vmem:[#allocation2 + $0x3a2] sm:$0xff] }
 0x36b   : > { %10566 = vmatmul.mubr.msk.bf16.gmra.mrb[28].mxu1 %vm3321_vm8, %v13498_v43 }
 0x36c   : > { %10587 = vmatprep.mubr.msk.bf16.mxu1 %vm3321_vm8, %v13325_v22  ;;  %v5539_v22 = vld [vmem:[#allocation2 + $0x352] sm:$0xff] }
 0x36d   : > { %10720 = vmatmul.mubr.msk.bf16.gmra.mrb[12].mxu0 %vm3321_vm8, %v13385_v17 }
 0x36e   : > { %10723 = vmatprep.mubr.msk.bf16.mxu0 %vm3321_vm8, %v13389_v53 }
 0x373   : > { %10588 = vmatmul.mubr.msk.bf16.vlgmr.msra.gmra.mrb[16].mxu1 %vm3321_vm8, %v13337_v55  ;;  %v5540_v55 = vld [vmem:[#allocation2 + $0x362] sm:$0xff] }
 0x374   : > { %10591 = vmatprep.mubr.msk.bf16.mxu1 %vm3321_vm8, %v13341_v47  ;;  %v5541_v47 = vld [vmem:[#allocation2 + $0x372] sm:$0xff]  ;;  %v5558_v31 = vpack.c.bf16 %v5540_v55, %v5539_v22 }
 0x375   : > { %10724 = vmatmul.mubr.msk.bf16.gmra.mrb[16].mxu0 %vm3321_vm8, %v13400_v45  ;;  %v5559_v59 = vpack.c.bf16 %v5542_v4, %v5541_v47 }
 0x376   : > { %10727 = vmatprep.mubr.msk.bf16.mxu0 %vm3321_vm8, %v13404_v39 }
 0x37b   : > { %10592 = vmatmul.mubr.msk.bf16.gmra.mrb[20].mxu1 %vm3321_vm8, %v13353_v54  ;;  %v5543_v54 = vld [vmem:[#allocation2 + $0x392] sm:$0xff] }
 0x37c   : > { %10595 = vmatprep.mubr.msk.bf16.mxu1 %vm3321_vm8, %v13545_v1  ;;  %v5560_v17 = vpack.c.bf16 %v5544_v15, %v5543_v54 }
 0x37d   : > { %10728 = vmatmul.mubr.msk.bf16.gmra.mrb[20].mxu0 %vm3321_vm8, %v13416_v12 }
 0x37e   : > { %10731 = vmatprep.mubr.msk.bf16.mxu0 %vm3321_vm8, %v5557_v38 }
 0x383   : > { %10596 = vmatmul.mubr.msk.bf16.gmra.mrb[24].mxu1 %vm3321_vm8, %v13555_v10 }
 0x384   : > { %10599 = vmatprep.mubr.msk.bf16.mxu1 %vm3321_vm8, %v13557_v26 }
 0x385   : > { %10732 = vmatmul.mubr.msk.bf16.gmra.mrb[24].mxu0 %vm3321_vm8, %v5558_v31 }
 0x386   : > { %10735 = vmatprep.mubr.msk.bf16.mxu0 %vm3321_vm8, %v5559_v59 }
 0x38b   : > { %10600 = vmatmul.mubr.msk.bf16.gmra.mrb[28].mxu1 %vm3321_vm8, %v13568_v9 }
 0x38d   : > { %10736 = vmatmul.mubr.msk.bf16.gmra.mrb[28].mxu0 %vm3321_vm8, %v5560_v17 }
 0x406   : > { %v10539_v53 = vpop.f32.mrb[0].mxu1 }
 0x407   : > { %v4177_v45 = vpop.f32.mrb[1].mxu1 }
 0x408   : > { %v10540_v39 = vpop.f32.mrb[2].mxu1 }
 0x409   : > { %v4180_v12 = vpop.f32.mrb[3].mxu1 }
 0x40e   : > { %v10543_v21 = vpop.f32.mrb[4].mxu1 }
 0x40f   : > { %v4193_v60 = vpop.f32.mrb[5].mxu1 }
 0x410   : > { %v10544_v2 = vpop.f32.mrb[6].mxu1 }
 0x411   : > { %v4196_v44 = vpop.f32.mrb[7].mxu1 }
 0x416   : > { %v10547_v11 = vpop.f32.mrb[8].mxu1 }
 0x417   : > { %v4209_v13 = vpop.f32.mrb[9].mxu1 }
 0x418   : > { %v10548_v42 = vpop.f32.mrb[10].mxu1 }
 0x419   : > { %v13646_v36 = vpop.f32.mrb[11].mxu1 }
 0x41e   : > { %v13648_v40 = vpop.f32.mrb[12].mxu1 }
 0x41f   : > { %v13650_v48 = vpop.f32.mrb[13].mxu1 }
 0x420   : > { %v13652_v35 = vpop.f32.mrb[14].mxu1 }
 0x421   : > { %v13654_v19 = vpop.f32.mrb[15].mxu1 }
 0x428   : > { %v10709_v43 = vpop.f32.mrb[0].mxu0 }
 0x429   : > { %v11305_v6 = vadd.f32 %v10709_v43, %v10539_v53  ;;  %v5648_v37 = vpop.f32.mrb[1].mxu0 }
 0x42a   : > { %v11306_v61 = vadd.f32 %v5648_v37, %v4177_v45  ;;  %v10710_v62 = vpop.f32.mrb[2].mxu0 }
 0x42b   : > { %v9606_v0 = vpack.c.bf16 %v11305_v6, %v11305_v6  ;;  %v11307_v24 = vadd.f32 %v10710_v62, %v10540_v39  ;;  %v5651_v8 = vpop.f32.mrb[3].mxu0  ;;  %v5971_v50 = vsel %vm5968_vm10, %v11305_v6, -inf }
 0x42c   : > { %v9604_v28 = vpack.c.bf16 %v11306_v61, %v11306_v61  ;;  %v11308_v7 = vadd.f32 %v5651_v8, %v4180_v12  ;;  %v5969_v49 = vsel %vm5968_vm10, %v11306_v61, -inf }
 0x42d   : > { %5938 = vst.msk [vmem:[%s12125_s29 + $0x8] sm:$0xf] %vm5935_vm9, %v9606_v0  ;;  %v9607_v52 = vpack.c.bf16 %v11307_v24, %v11307_v24  ;;  %v5972_v34 = vsel %vm5968_vm10, %v11307_v24, -inf }
 0x42e   : > { %5936 = vst.msk [vmem:[%s12125_s29] sm:$0xf] %vm5935_vm9, %v9604_v28  ;;  %v9605_v16 = vpack.c.bf16 %v11308_v7, %v11308_v7  ;;  %v5970_v51 = vsel %vm5968_vm10, %v11308_v7, -inf }
 0x42f   : > { %5939 = vst.msk [vmem:[%s12125_s29 + $0xc] sm:$0xf] %vm5935_vm9, %v9607_v52 }
 0x430   : > { %5937 = vst.msk [vmem:[%s12125_s29 + $0x4] sm:$0xf] %vm5935_vm9, %v9605_v16  ;;  %v10713_v30 = vpop.f32.mrb[4].mxu0 }
 0x431   : > { %v11309_v5 = vadd.f32 %v10713_v30, %v10543_v21  ;;  %v5664_v1 = vpop.f32.mrb[5].mxu0 }
 0x432   : > { %v11310_v18 = vadd.f32 %v5664_v1, %v4193_v60  ;;  %v10714_v20 = vpop.f32.mrb[6].mxu0 }
 0x433   : > { %v9610_v10 = vpack.c.bf16 %v11309_v5, %v11309_v5  ;;  %v5977_v26 = vsel %vm5968_vm10, %v11309_v5, -inf  ;;  %v11311_v3 = vadd.f32 %v10714_v20, %v10544_v2  ;;  %v5667_v56 = vpop.f32.mrb[7].mxu0 }
 0x434   : > { %v5978_v33 = vmax.f32 %v5971_v50, %v5977_v26  ;;  %v9608_v32 = vpack.c.bf16 %v11310_v18, %v11310_v18  ;;  %v5973_v9 = vsel %vm5968_vm10, %v11310_v18, -inf  ;;  %v11312_v27 = vadd.f32 %v5667_v56, %v4196_v44 }
 0x435   : > { %5942 = vst.msk [vmem:[%s12125_s29 + $0x18] sm:$0xf] %vm5935_vm9, %v9610_v10  ;;  %v5974_v46 = vmax.f32 %v5969_v49, %v5973_v9  ;;  %v9611_v58 = vpack.c.bf16 %v11311_v3, %v11311_v3  ;;  %v5979_v29 = vsel %vm5968_vm10, %v11311_v3, -inf }
 0x436   : > { %5940 = vst.msk [vmem:[%s12125_s29 + $0x10] sm:$0xf] %vm5935_vm9, %v9608_v32  ;;  %v5980_v14 = vmax.f32 %v5972_v34, %v5979_v29  ;;  %v9609_v23 = vpack.c.bf16 %v11312_v27, %v11312_v27  ;;  %v5975_v25 = vsel %vm5968_vm10, %v11312_v27, -inf }
 0x437   : > { %5943 = vst.msk [vmem:[%s12125_s29 + $0x1c] sm:$0xf] %vm5935_vm9, %v9611_v58  ;;  %v5976_v41 = vmax.f32 %v5970_v51, %v5975_v25 }
 0x438   : > { %5941 = vst.msk [vmem:[%s12125_s29 + $0x14] sm:$0xf] %vm5935_vm9, %v9609_v23  ;;  %v10717_v63 = vpop.f32.mrb[8].mxu0 }
 0x439   : > { %v11313_v57 = vadd.f32 %v10717_v63, %v10547_v11  ;;  %v5680_v38 = vpop.f32.mrb[9].mxu0 }
 0x43a   : > { %v11314_v22 = vadd.f32 %v5680_v38, %v4209_v13  ;;  %v10718_v55 = vpop.f32.mrb[10].mxu0 }
 0x43b   : > { %v9614_v47 = vpack.c.bf16 %v11313_v57, %v11313_v57  ;;  %v5985_v4 = vsel %vm5968_vm10, %v11313_v57, -inf  ;;  %v11315_v31 = vadd.f32 %v10718_v55, %v10548_v42  ;;  %v5683_v59 = vpop.f32.mrb[11].mxu0 }
 0x43c   : > { %v5986_v54 = vmax.f32 %v5978_v33, %v5985_v4  ;;  %v9612_v15 = vpack.c.bf16 %v11314_v22, %v11314_v22  ;;  %v5981_v17 = vsel %vm5968_vm10, %v11314_v22, -inf  ;;  %v11316_v53 = vadd.f32 %v5683_v59, %v13646_v36 }
 0x43d   : > { %5946 = vst.msk [vmem:[%s12125_s29 + $0x28] sm:$0xf] %vm5935_vm9, %v9614_v47  ;;  %v5982_v45 = vmax.f32 %v5974_v46, %v5981_v17  ;;  %v9615_v39 = vpack.c.bf16 %v11315_v31, %v11315_v31  ;;  %v5987_v12 = vsel %vm5968_vm10, %v11315_v31, -inf }
 0x43e   : > { %5944 = vst.msk [vmem:[%s12125_s29 + $0x20] sm:$0xf] %vm5935_vm9, %v9612_v15  ;;  %v5988_v21 = vmax.f32 %v5980_v14, %v5987_v12  ;;  %v9613_v60 = vpack.c.bf16 %v11316_v53, %v11316_v53  ;;  %v5983_v2 = vsel %vm5968_vm10, %v11316_v53, -inf }
 0x43f   : > { %5947 = vst.msk [vmem:[%s12125_s29 + $0x2c] sm:$0xf] %vm5935_vm9, %v9615_v39  ;;  %v5984_v44 = vmax.f32 %v5976_v41, %v5983_v2 }
 0x440   : > { %5945 = vst.msk [vmem:[%s12125_s29 + $0x24] sm:$0xf] %vm5935_vm9, %v9613_v60  ;;  %v10721_v11 = vpop.f32.mrb[12].mxu0 }
 0x441   : > { %v11317_v13 = vadd.f32 %v10721_v11, %v13648_v40  ;;  %v5696_v42 = vpop.f32.mrb[13].mxu0 }
 0x442   : > { %v11318_v36 = vadd.f32 %v5696_v42, %v13650_v48  ;;  %v10722_v43 = vpop.f32.mrb[14].mxu0 }
 0x443   : > { %v9618_v6 = vpack.c.bf16 %v11317_v13, %v11317_v13  ;;  %v5993_v37 = vsel %vm5968_vm10, %v11317_v13, -inf  ;;  %v11319_v61 = vadd.f32 %v10722_v43, %v13652_v35  ;;  %v5699_v62 = vpop.f32.mrb[15].mxu0 }
 0x444   : > { %v5994_v0 = vmax.f32 %v5986_v54, %v5993_v37  ;;  %v9616_v24 = vpack.c.bf16 %v11318_v36, %v11318_v36  ;;  %v5989_v8 = vsel %vm5968_vm10, %v11318_v36, -inf  ;;  %v11320_v28 = vadd.f32 %v5699_v62, %v13654_v19 }
 0x445   : > { %5950 = vst.msk [vmem:[%s12125_s29 + $0x38] sm:$0xf] %vm5935_vm9, %v9618_v6  ;;  %v5990_v40 = vmax.f32 %v5982_v45, %v5989_v8  ;;  %v9619_v7 = vpack.c.bf16 %v11319_v61, %v11319_v61  ;;  %v5995_v48 = vsel %vm5968_vm10, %v11319_v61, -inf }
 0x446   : > { %5948 = vst.msk [vmem:[%s12125_s29 + $0x30] sm:$0xf] %vm5935_vm9, %v9616_v24  ;;  %v5996_v52 = vmax.f32 %v5988_v21, %v5995_v48  ;;  %v9617_v16 = vpack.c.bf16 %v11320_v28, %v11320_v28  ;;  %v5991_v35 = vsel %vm5968_vm10, %v11320_v28, -inf  ;;  %v10589_v5 = vpop.f32.mrb[16].mxu1 }
 0x447   : > { %5951 = vst.msk [vmem:[%s12125_s29 + $0x3c] sm:$0xf] %vm5935_vm9, %v9619_v7  ;;  %v5992_v30 = vmax.f32 %v5984_v44, %v5991_v35  ;;  %v4535_v19 = vpop.f32.mrb[17].mxu1 }
 0x448   : > { %5949 = vst.msk [vmem:[%s12125_s29 + $0x34] sm:$0xf] %vm5935_vm9, %v9617_v16  ;;  %v10725_v1 = vpop.f32.mrb[16].mxu0  ;;  %v10590_v20 = vpop.f32.mrb[18].mxu1 }
 0x449   : > { %v11321_v50 = vadd.f32 %v10725_v1, %v10589_v5  ;;  %v5712_v18 = vpop.f32.mrb[17].mxu0  ;;  %v4538_v26 = vpop.f32.mrb[19].mxu1 }
 0x44a   : > { %v11322_v49 = vadd.f32 %v5712_v18, %v4535_v19  ;;  %v10726_v10 = vpop.f32.mrb[18].mxu0 }
 0x44b   : > { %v9622_v3 = vpack.c.bf16 %v11321_v50, %v11321_v50  ;;  %v6001_v56 = vsel %vm5968_vm10, %v11321_v50, -inf  ;;  %v11323_v33 = vadd.f32 %v10726_v10, %v10590_v20  ;;  %v5715_v32 = vpop.f32.mrb[19].mxu0 }
 0x44c   : > { %v6002_v9 = vmax.f32 %v5994_v0, %v6001_v56  ;;  %v9620_v27 = vpack.c.bf16 %v11322_v49, %v11322_v49  ;;  %v5997_v34 = vsel %vm5968_vm10, %v11322_v49, -inf  ;;  %v11324_v46 = vadd.f32 %v5715_v32, %v4538_v26 }
 0x44d   : > { %5954 = vst.msk [vmem:[%s12125_s29 + $0x48] sm:$0xf] %vm5935_vm9, %v9622_v3  ;;  %v5998_v58 = vmax.f32 %v5990_v40, %v5997_v34  ;;  %v9623_v29 = vpack.c.bf16 %v11323_v33, %v11323_v33  ;;  %v6003_v51 = vsel %vm5968_vm10, %v11323_v33, -inf }
 0x44e   : > { %5952 = vst.msk [vmem:[%s12125_s29 + $0x40] sm:$0xf] %vm5935_vm9, %v9620_v27  ;;  %v6004_v14 = vmax.f32 %v5996_v52, %v6003_v51  ;;  %v9621_v23 = vpack.c.bf16 %v11324_v46, %v11324_v46  ;;  %v5999_v25 = vsel %vm5968_vm10, %v11324_v46, -inf  ;;  %v10593_v63 = vpop.f32.mrb[20].mxu1 }
 0x44f   : > { %5955 = vst.msk [vmem:[%s12125_s29 + $0x4c] sm:$0xf] %vm5935_vm9, %v9623_v29  ;;  %v6000_v41 = vmax.f32 %v5992_v30, %v5999_v25  ;;  %v4551_v38 = vpop.f32.mrb[21].mxu1 }
 0x450   : > { %5953 = vst.msk [vmem:[%s12125_s29 + $0x44] sm:$0xf] %vm5935_vm9, %v9621_v23  ;;  %v10729_v57 = vpop.f32.mrb[20].mxu0  ;;  %v10594_v47 = vpop.f32.mrb[22].mxu1 }
 0x451   : > { %v11325_v22 = vadd.f32 %v10729_v57, %v10593_v63  ;;  %v5728_v55 = vpop.f32.mrb[21].mxu0  ;;  %v4554_v59 = vpop.f32.mrb[23].mxu1 }
 0x452   : > { %v11326_v4 = vadd.f32 %v5728_v55, %v4551_v38  ;;  %v10730_v31 = vpop.f32.mrb[22].mxu0 }
 0x453   : > { %v9626_v54 = vpack.c.bf16 %v11325_v22, %v11325_v22  ;;  %v6009_v15 = vsel %vm5968_vm10, %v11325_v22, -inf  ;;  %v11327_v17 = vadd.f32 %v10730_v31, %v10594_v47  ;;  %v5731_v53 = vpop.f32.mrb[23].mxu0 }
 0x454   : > { %v6010_v45 = vmax.f32 %v6002_v9, %v6009_v15  ;;  %v9624_v39 = vpack.c.bf16 %v11326_v4, %v11326_v4  ;;  %v6005_v12 = vsel %vm5968_vm10, %v11326_v4, -inf  ;;  %v11328_v21 = vadd.f32 %v5731_v53, %v4554_v59 }
 0x455   : > { %5958 = vst.msk [vmem:[%s12125_s29 + $0x58] sm:$0xf] %vm5935_vm9, %v9626_v54  ;;  %v6006_v60 = vmax.f32 %v5998_v58, %v6005_v12  ;;  %v9627_v2 = vpack.c.bf16 %v11327_v17, %v11327_v17  ;;  %v6011_v44 = vsel %vm5968_vm10, %v11327_v17, -inf }
 0x456   : > { %5956 = vst.msk [vmem:[%s12125_s29 + $0x50] sm:$0xf] %vm5935_vm9, %v9624_v39  ;;  %v6012_v11 = vmax.f32 %v6004_v14, %v6011_v44  ;;  %v9625_v13 = vpack.c.bf16 %v11328_v21, %v11328_v21  ;;  %v6007_v42 = vsel %vm5968_vm10, %v11328_v21, -inf  ;;  %v10597_v43 = vpop.f32.mrb[24].mxu1 }
 0x457   : > { %5959 = vst.msk [vmem:[%s12125_s29 + $0x5c] sm:$0xf] %vm5935_vm9, %v9627_v2  ;;  %v6008_v36 = vmax.f32 %v6000_v41, %v6007_v42  ;;  %v4567_v37 = vpop.f32.mrb[25].mxu1 }
 0x458   : > { %5957 = vst.msk [vmem:[%s12125_s29 + $0x54] sm:$0xf] %vm5935_vm9, %v9625_v13  ;;  %v10733_v6 = vpop.f32.mrb[24].mxu0  ;;  %v10598_v0 = vpop.f32.mrb[26].mxu1 }
 0x459   : > { %v11329_v61 = vadd.f32 %v10733_v6, %v10597_v43  ;;  %v5744_v62 = vpop.f32.mrb[25].mxu0  ;;  %v4570_v28 = vpop.f32.mrb[27].mxu1 }
 0x45a   : > { %v11330_v24 = vadd.f32 %v5744_v62, %v4567_v37  ;;  %v10734_v8 = vpop.f32.mrb[26].mxu0 }
 0x45b   : > { %v9630_v40 = vpack.c.bf16 %v11329_v61, %v11329_v61  ;;  %v6017_v7 = vsel %vm5968_vm10, %v11329_v61, -inf  ;;  %v11331_v48 = vadd.f32 %v10734_v8, %v10598_v0  ;;  %v5747_v52 = vpop.f32.mrb[27].mxu0 }
 0x45c   : > { %v6018_v16 = vmax.f32 %v6010_v45, %v6017_v7  ;;  %v9628_v35 = vpack.c.bf16 %v11330_v24, %v11330_v24  ;;  %v6013_v30 = vsel %vm5968_vm10, %v11330_v24, -inf  ;;  %v11332_v5 = vadd.f32 %v5747_v52, %v4570_v28 }
 0x45d   : > { %5962 = vst.msk [vmem:[%s12125_s29 + $0x68] sm:$0xf] %vm5935_vm9, %v9630_v40  ;;  %v6014_v1 = vmax.f32 %v6006_v60, %v6013_v30  ;;  %v9631_v19 = vpack.c.bf16 %v11331_v48, %v11331_v48  ;;  %v6019_v50 = vsel %vm5968_vm10, %v11331_v48, -inf }
 0x45e   : > { %5960 = vst.msk [vmem:[%s12125_s29 + $0x60] sm:$0xf] %vm5935_vm9, %v9628_v35  ;;  %v6020_v18 = vmax.f32 %v6012_v11, %v6019_v50  ;;  %v9629_v20 = vpack.c.bf16 %v11332_v5, %v11332_v5  ;;  %v6015_v49 = vsel %vm5968_vm10, %v11332_v5, -inf  ;;  %v10601_v26 = vpop.f32.mrb[28].mxu1 }
 0x45f   : > { %5963 = vst.msk [vmem:[%s12125_s29 + $0x6c] sm:$0xf] %vm5935_vm9, %v9631_v19  ;;  %v6016_v10 = vmax.f32 %v6008_v36, %v6015_v49  ;;  %v4583_v56 = vpop.f32.mrb[29].mxu1 }
 0x460   : > { %5961 = vst.msk [vmem:[%s12125_s29 + $0x64] sm:$0xf] %vm5935_vm9, %v9629_v20  ;;  %v10737_v3 = vpop.f32.mrb[28].mxu0  ;;  %v10602_v9 = vpop.f32.mrb[30].mxu1 }
 0x461   : > { %v11333_v33 = vadd.f32 %v10737_v3, %v10601_v26  ;;  %v5760_v32 = vpop.f32.mrb[29].mxu0  ;;  %v4586_v46 = vpop.f32.mrb[31].mxu1 }
 0x462   : > { %v11334_v27 = vadd.f32 %v5760_v32, %v4583_v56  ;;  %v10738_v34 = vpop.f32.mrb[30].mxu0 }
 0x463   : > { %v9634_v58 = vpack.c.bf16 %v11333_v33, %v11333_v33  ;;  %v6025_v29 = vsel %vm5968_vm10, %v11333_v33, -inf  ;;  %v11335_v51 = vadd.f32 %v10738_v34, %v10602_v9  ;;  %v5763_v14 = vpop.f32.mrb[31].mxu0 }
 0x464   : > { %v6026_v23 = vmax.f32 %v6018_v16, %v6025_v29  ;;  %v9632_v25 = vpack.c.bf16 %v11334_v27, %v11334_v27  ;;  %v6021_v41 = vsel %vm5968_vm10, %v11334_v27, -inf  ;;  %v11336_v63 = vadd.f32 %v5763_v14, %v4586_v46 }
 0x465   : > { %5966 = vst.msk [vmem:[%s12125_s29 + $0x78] sm:$0xf] %vm5935_vm9, %v9634_v58  ;;  %v6022_v57 = vmax.f32 %v6014_v1, %v6021_v41  ;;  %v9635_v38 = vpack.c.bf16 %v11335_v51, %v11335_v51  ;;  %v6027_v22 = vsel %vm5968_vm10, %v11335_v51, -inf }
 0x466   : > { %5964 = vst.msk [vmem:[%s12125_s29 + $0x70] sm:$0xf] %vm5935_vm9, %v9632_v25  ;;  %v6028_v55 = vmax.f32 %v6020_v18, %v6027_v22  ;;  %v9633_v47 = vpack.c.bf16 %v11336_v63, %v11336_v63  ;;  %v6023_v4 = vsel %vm5968_vm10, %v11336_v63, -inf }
 0x467   : > { %5967 = vst.msk [vmem:[%s12125_s29 + $0x7c] sm:$0xf] %vm5935_vm9, %v9635_v38  ;;  %v6024_v31 = vmax.f32 %v6016_v10, %v6023_v4 }
 0x468   : > { %v6030_v59 = vmax.f32 %v6026_v23, %v6028_v55  ;;  %5965 = vst.msk [vmem:[%s12125_s29 + $0x74] sm:$0xf] %vm5935_vm9, %v9633_v47 }
 0x469   : > { %v6029_v54 = vmax.f32 %v6022_v57, %v6024_v31 }
 0x46b   : > { %v6031_v15 = vmax.f32 %v6029_v54, %v6030_v59 }
 0x46d   : > { %v6032_v17 = vrot.slane %v6031_v15, 4 }
 0x46f   : > { %v6033_v53 = vmax.f32 %v6031_v15, %v6032_v17 }
 0x471   : > { %v6034_v45 = vrot.slane %v6033_v53, 2 }
 0x473   : > { %v6035_v39 = vmax.f32 %v6033_v53, %v6034_v45 }
 0x475   : > { %v6036_v12 = vrot.slane %v6035_v39, 1 }
 0x477   : > { %v6037_v21 = vmax.f32 %v6035_v39, %v6036_v12 }
 0x479   : > { %6039 = vst.msk [vmem:[%s12129_s23] sm:$0x1] %vm6038_vm11, %v6037_v21 }
 0x47a PF: > { %p9383_p2 = scmp.ne.s32.totalorder %s12001_s15, 2 }
 0x47b   : > { %v9384_v60 = vld [vmem:[%s14361_s1 + $0x2] sm:$0x3] (!%p9383_p2)  ;;  %vm6193_vm12 = vcmask (!%p9383_p2), 1041408   ;;  %v13765_v2 = vld [vmem:[%s14361_s1 + $0x8] sm:$0x3] (!%p9383_p2)  ;;  %v13767_v44 = vld [vmem:[#allocation2 + $0x11] sm:$0xff] (!%p9383_p2) }
 0x47c   : > { %6043 = sbr.rel (%p9383_p2) target bundleno = 1672 (0x688), region = 40  ;;  %11839 = vmatprep.subr.msk.bf16.mxu1 (!%p9383_p2), %vm6193_vm12, %v9384_v60  ;;  %11843 = vmatprep.subr.msk.bf16.mxu0 (!%p9383_p2), %vm6193_vm12, %v13765_v2  ;;  %v6195_v11 = vsel (!%p9383_p2), %vm6193_vm12, %v9384_v60, 0  ;;  %v13775_v13 = vsel (!%p9383_p2), %vm6193_vm12, %v13765_v2, 0  ;;  %v6095_v42 = vld [vmem:[#allocation2 + $0x21] sm:$0xff] (!%p9383_p2)  ;;  %vm6144_vm13 = vcmask (!%p9383_p2), 31744   ;;  %v13777_v36 = vld [vmem:[#allocation2 + $0xb1] sm:$0xff] (!%p9383_p2) }
 0x47d   : > { %v13779_v43 = vld [vmem:[#allocation2 + $0xc1] sm:$0xff] (!%p9383_p2)  ;;  %10740 = vmatpush3.bf16.msra.mxu1 (!%p9383_p2), %v6195_v11  ;;  %10876 = vmatpush3.bf16.msra.mxu0 (!%p9383_p2), %v13775_v13  ;;  %v6126_v6 = vpack.c.bf16 (!%p9383_p2), %v6095_v42, %v13767_v44  ;;  %v6096_v61 = vld [vmem:[#allocation2 + $0x31] sm:$0xff] (!%p9383_p2)  ;;  %v9468_v40 = vld [vmem:[%s14361_s1 + $0xa] sm:$0x3] (!%p9383_p2)  ;;  %vm8763_vm14 = vcmask (!%p9383_p2), 60416   ;;  %vm8796_vm15 = vcmask (!%p9383_p2), 64512  }
 0x47e   : > { %v7193_v37 = vpack.c.bf16 (!%p9383_p2), %v13779_v43, %v13777_v36  ;;  %v6097_v62 = vld [vmem:[#allocation2 + $0x41] sm:$0xff] (!%p9383_p2)  ;;  %v7163_v8 = vld [vmem:[#allocation2 + $0xd1] sm:$0xff] (!%p9383_p2)  ;;  %v13793_v48 = vpack.c.bf16 (!%p9383_p2), %v6096_v61, %v6095_v42  ;;  %v7555_v16 = vsel (!%p9383_p2), %vm6193_vm12, %v9468_v40, 0  ;;  %11845 = vmatprep.subr.msk.bf16.mxu0 (!%p9383_p2), %vm6193_vm12, %v9468_v40  ;;  %v9485_v9 = vld [vmem:[%s14361_s1 + $0xc] sm:$0x3] (!%p9383_p2)  ;;  %vm8866_vm0 = vcmask (!%p9383_p2), 57344  }
 0x47f   : > { %v6092_v0 = vld [vmem:[%s14361_s1] sm:$0x3] (!%p9383_p2)  ;;  %v6127_v24 = vpack.c.bf16 (!%p9383_p2), %v6097_v62, %v6096_v61  ;;  %10741 = vmatprep.mubr.msk.bf16.mxu1 (!%p9383_p2), %vm6144_vm13, %v6126_v6  ;;  %v6098_v35 = vld [vmem:[#allocation2 + $0x51] sm:$0xff] (!%p9383_p2)  ;;  %v13823_v46 = vld [vmem:[%s14361_s1 + $0x4] sm:$0x3] (!%p9383_p2)  ;;  %v13844_v38 = vpack.c.bf16 (!%p9383_p2), %v7163_v8, %v13779_v43  ;;  %v7850_v47 = vsel (!%p9383_p2), %vm6193_vm12, %v9485_v9, 0 }
 0x480   : > { %11840 = vmatprep.subr.msk.bf16.mxu1 (!%p9383_p2), %vm6193_vm12, %v6092_v0  ;;  %v7164_v28 = vld [vmem:[#allocation2 + $0xe1] sm:$0xff] (!%p9383_p2)  ;;  %v6407_v7 = vsel (!%p9383_p2), %vm6193_vm12, %v6092_v0, 0  ;;  %10877 = vmatprep.mubr.msk.bf16.mxu0 (!%p9383_p2), %vm6144_vm13, %v7193_v37  ;;  %v7165_v5 = vld [vmem:[#allocation2 + $0xf1] sm:$0xff] (!%p9383_p2)  ;;  %v13800_v18 = vpack.c.bf16 (!%p9383_p2), %v6098_v35, %v6097_v62  ;;  %v13863_v4 = vld [vmem:[%s14361_s1 + $0xe] sm:$0x3] (!%p9383_p2) }
 0x481   : > { %v7194_v52 = vpack.c.bf16 (!%p9383_p2), %v7164_v28, %v7163_v8  ;;  %v6099_v30 = vld [vmem:[#allocation2 + $0x61] sm:$0xff] (!%p9383_p2)  ;;  %10742 = vmatmul.mubr.msk.bf16.vlgmr.msra.gmra.mrb[0].mxu1 (!%p9383_p2), %vm6144_vm13, %v6127_v24  ;;  %v6100_v50 = vld [vmem:[#allocation2 + $0x71] sm:$0xff] (!%p9383_p2)  ;;  %v13853_v22 = vpack.c.bf16 (!%p9383_p2), %v7165_v5, %v7164_v28 }
 0x482   : > { %v6128_v1 = vpack.c.bf16 (!%p9383_p2), %v6099_v30, %v6098_v35  ;;  %v7166_v19 = vld [vmem:[#allocation2 + $0x101] sm:$0xff] (!%p9383_p2)  ;;  %10774 = vmatpush3.bf16.msra.mxu1 (!%p9383_p2), %v6407_v7  ;;  %v13805_v10 = vpack.c.bf16 (!%p9383_p2), %v6100_v50, %v6099_v30  ;;  %v7167_v26 = vld [vmem:[#allocation2 + $0x111] sm:$0xff] (!%p9383_p2) }
 0x483   : > { %10878 = vmatmul.mubr.msk.bf16.vlgmr.msra.gmra.mrb[0].mxu0 %vm6144_vm13, %v7194_v52  ;;  %v7195_v20 = vpack.c.bf16 %v7166_v19, %v7165_v5  ;;  %v13803_v49 = vld [vmem:[#allocation2 + $0x81] sm:$0xff]  ;;  %v13809_v56 = vld [vmem:[#allocation2 + $0x151] sm:$0xff]  ;;  %11841 = vmatprep.subr.msk.bf16.mxu1 %vm6193_vm12, %v13823_v46  ;;  %v13855_v55 = vpack.c.bf16 %v7167_v26, %v7166_v19 }
 0x484   : > { %10910 = vmatpush3.bf16.msra.mxu0 %v7555_v16  ;;  %10745 = vmatprep.mubr.msk.bf16.mxu1 %vm6144_vm13, %v6128_v1  ;;  %v7168_v3 = vld [vmem:[#allocation2 + $0x121] sm:$0xff]  ;;  %v6129_v32 = vpack.c.bf16 %v13803_v49, %v6100_v50  ;;  %v7171_v58 = vld [vmem:[#allocation2 + $0x171] sm:$0xff]  ;;  %v6670_v16 = vsel %vm6193_vm12, %v13823_v46, 0 }
 0x485   : > { %10881 = vmatprep.mubr.msk.bf16.mxu0 %vm6144_vm13, %v7195_v20  ;;  %v7170_v33 = vld [vmem:[#allocation2 + $0x161] sm:$0xff]  ;;  %v7196_v27 = vpack.c.bf16 %v7168_v3, %v7167_v26  ;;  %11846 = vmatprep.subr.msk.bf16.mxu0 %vm6193_vm12, %v9485_v9  ;;  %v7173_v51 = vld [vmem:[#allocation2 + $0x191] sm:$0xff] }
 0x486   : > { %v13817_v34 = vpack.c.bf16 %v7170_v33, %v13809_v56  ;;  %v7172_v29 = vld [vmem:[#allocation2 + $0x181] sm:$0xff]  ;;  %v7175_v41 = vld [vmem:[#allocation2 + $0x1b1] sm:$0xff]  ;;  %v13880_v53 = vpack.c.bf16 %v7171_v58, %v7170_v33 }
 0x487   : > { %v7174_v14 = vld [vmem:[#allocation2 + $0x1a1] sm:$0xff]  ;;  %v13831_v23 = vpack.c.bf16 %v7172_v29, %v7171_v58  ;;  %v7463_v31 = vld [vmem:[#allocation2 + $0x131] sm:$0xff]  ;;  %v13892_v11 = vpack.c.bf16 %v7173_v51, %v7172_v29 }
 0x488   : > { %v13833_v25 = vpack.c.bf16 %v7174_v14, %v7173_v51  ;;  %v7176_v63 = vld [vmem:[#allocation2 + $0x1c1] sm:$0xff]  ;;  %v13871_v59 = vld [vmem:[#allocation2 + $0x1f1] sm:$0xff]  ;;  %v13875_v15 = vpack.c.bf16 %v7463_v31, %v7168_v3  ;;  %v13896_v43 = vpack.c.bf16 %v7175_v41, %v7174_v14  ;;  %v8145_v31 = vsel %vm6193_vm12, %v13863_v4, 0 }
 0x489   : > { %10746 = vmatmul.mubr.msk.bf16.gmra.mrb[4].mxu1 %vm6144_vm13, %v6129_v32  ;;  %v13841_v57 = vpack.c.bf16 %v7176_v63, %v7175_v41  ;;  %v6119_v54 = vld [vmem:[#allocation2 + $0x201] sm:$0xff]  ;;  %v6120_v45 = vld [vmem:[#allocation2 + $0x211] sm:$0xff] }
 0x48a   : > { %10749 = vmatprep.mubr.msk.bf16.mxu1 %vm6144_vm13, %v7193_v37  ;;  %v13878_v17 = vpack.c.bf16 %v6119_v54, %v13871_v59  ;;  %v6121_v39 = vld [vmem:[#allocation2 + $0x221] sm:$0xff]  ;;  %v6122_v12 = vld [vmem:[#allocation2 + $0x231] sm:$0xff]  ;;  %v13911_v28 = vpack.c.bf16 %v6120_v45, %v6119_v54 }
 0x48b   : > { %10882 = vmatmul.mubr.msk.bf16.gmra.mrb[4].mxu0 %vm6144_vm13, %v7196_v27  ;;  %v6123_v21 = vld [vmem:[#allocation2 + $0x241] sm:$0xff]  ;;  %v13890_v60 = vpack.c.bf16 %v6121_v39, %v6120_v45  ;;  %v6124_v6 = vld [vmem:[#allocation2 + $0x251] sm:$0xff] }
 0x48c   : > { %10885 = vmatprep.mubr.msk.bf16.mxu0 %vm6144_vm13, %v13817_v34  ;;  %v13894_v42 = vpack.c.bf16 %v6123_v21, %v6122_v12  ;;  %v6125_v37 = vld [vmem:[#allocation2 + $0x261] sm:$0xff]  ;;  %v7471_v61 = vld [vmem:[#allocation2 + $0x1d1] sm:$0xff]  ;;  %v13929_v35 = vpack.c.bf16 %v6124_v6, %v6123_v21 }
 0x48d   : > { %v6044_v62 = vld [vmem:[#allocation2 + $0x1] sm:$0xff]  ;;  %v13906_v0 = vpack.c.bf16 %v6125_v37, %v6124_v6  ;;  %v13908_v24 = vpack.c.bf16 %v7471_v61, %v7176_v63  ;;  %v13915_v7 = vld [vmem:[#allocation2 + $0x291] sm:$0xff] }
 0x48e   : > { %v6076_v8 = vpack.c.bf16 %v13767_v44, %v6044_v62  ;;  %v7480_v40 = vld [vmem:[#allocation2 + $0x2a1] sm:$0xff]  ;;  %v13925_v44 = vpack.c.bf16 %v6122_v12, %v6121_v39  ;;  %v7481_v30 = vld [vmem:[#allocation2 + $0x2b1] sm:$0xff] }
 0x48f   : > { %v7482_v5 = vld [vmem:[#allocation2 + $0x2c1] sm:$0xff]  ;;  %v7483_v50 = vld [vmem:[#allocation2 + $0x2d1] sm:$0xff] }
 0x490   : > { %v13931_v1 = vpack.c.bf16 %v7482_v5, %v7481_v30  ;;  %v9434_v19 = vld [vmem:[%s14361_s1 + $0x6] sm:$0x3]  ;;  %v7479_v26 = vld [vmem:[#allocation2 + $0x271] sm:$0xff] }
 0x491   : > { %10750 = vmatmul.mubr.msk.bf16.gmra.mrb[8].mxu1 %vm6144_vm13, %v7194_v52  ;;  %v13921_v52 = vpack.c.bf16 %v7480_v40, %v13915_v7  ;;  %v6052_v3 = vld [vmem:[#allocation2 + $0xa1] sm:$0xff]  ;;  %v13947_v32 = vpack.c.bf16 %v7479_v26, %v6125_v37  ;;  %v7485_v46 = vld [vmem:[#allocation2 + $0x2f1] sm:$0xff]  ;;  %v6965_v39 = vsel %vm6193_vm12, %v9434_v19, 0 }
 0x492   : > { %10753 = vmatprep.mubr.msk.bf16.mxu1 %vm6144_vm13, %v7195_v20  ;;  %v7484_v20 = vld [vmem:[#allocation2 + $0x2e1] sm:$0xff]  ;;  %v13950_v9 = vpack.c.bf16 %v13777_v36, %v6052_v3  ;;  %v13964_v36 = vpack.c.bf16 %v7483_v50, %v7482_v5  ;;  %v7487_v14 = vld [vmem:[#allocation2 + $0x311] sm:$0xff] }
 0x493   : > { %10886 = vmatmul.mubr.msk.bf16.gmra.mrb[8].mxu0 %vm6144_vm13, %v13831_v23  ;;  %v13944_v33 = vpack.c.bf16 %v7484_v20, %v7483_v50  ;;  %v7486_v58 = vld [vmem:[#allocation2 + $0x301] sm:$0xff]  ;;  %v13966_v51 = vpack.c.bf16 %v7485_v46, %v7484_v20  ;;  %v6578_v12 = vld [vmem:[#allocation2 + $0x91] sm:$0xff] }
 0x494   : > { %10889 = vmatprep.mubr.msk.bf16.mxu0 %vm6144_vm13, %v13833_v25  ;;  %v13954_v29 = vpack.c.bf16 %v7486_v58, %v7485_v46  ;;  %v6060_v41 = vld [vmem:[#allocation2 + $0x141] sm:$0xff]  ;;  %v13976_v63 = vpack.c.bf16 %v7487_v14, %v7486_v58  ;;  %v7776_v21 = vld [vmem:[#allocation2 + $0x331] sm:$0xff]  ;;  %v6606_v6 = vpack.c.bf16 %v6578_v12, %v13803_v49 }
 0x495   : > { %v6068_v54 = vld [vmem:[#allocation2 + $0x1e1] sm:$0xff]  ;;  %v7780_v62 = vld [vmem:[#allocation2 + $0x371] sm:$0xff] }
 0x496   : > { %v7779_v61 = vld [vmem:[#allocation2 + $0x361] sm:$0xff] }
 0x497   : > { %v7781_v49 = vld [vmem:[#allocation2 + $0x381] sm:$0xff] }
 0x499   : > { %10754 = vmatmul.mubr.msk.bf16.gmra.mrb[12].mxu1 %vm6144_vm13, %v7196_v27  ;;  %v13952_v27 = vpack.c.bf16 %v7481_v30, %v7480_v40  ;;  %v7782_v40 = vld [vmem:[#allocation2 + $0x391] sm:$0xff] }
 0x49a   : > { %10757 = vmatprep.mubr.msk.bf16.mxu1 %vm6144_vm13, %v13817_v34 }
 0x49b   : > { %10890 = vmatmul.mubr.msk.bf16.gmra.mrb[12].mxu0 %vm6144_vm13, %v13841_v57 }
 0x49c   : > { %10911 = vmatprep.mubr.msk.bf16.mxu0 %vm6144_vm13, %v13844_v38 }
 0x4a1   : > { %10758 = vmatmul.mubr.msk.bf16.gmra.mrb[16].mxu1 %vm6144_vm13, %v13831_v23 }
 0x4a2   : > { %10761 = vmatprep.mubr.msk.bf16.mxu1 %vm6144_vm13, %v13833_v25 }
 0x4a3   : > { %10912 = vmatmul.mubr.msk.bf16.vlgmr.msra.gmra.mrb[0].mxu0 %vm6144_vm13, %v13853_v22 }
 0x4a4   : > { %10944 = vmatpush3.bf16.msra.mxu0 %v7850_v47  ;;  %10915 = vmatprep.mubr.msk.bf16.mxu0 %vm6144_vm13, %v13855_v55  ;;  %v13979_v47 = vpack.c.bf16 %v13809_v56, %v6060_v41  ;;  %v9519_v56 = vld [vmem:[%s14361_s1 + $0x10] sm:$0x3] }
 0x4a5   : > { %11847 = vmatprep.subr.msk.bf16.mxu0 %vm6193_vm12, %v13863_v4  ;;  %v14004_v4 = vpack.c.bf16 %v13871_v59, %v6068_v54  ;;  %v7767_v59 = vld [vmem:[#allocation2 + $0x281] sm:$0xff] }
 0x4a6   : > { %v14023_v45 = vpack.c.bf16 %v13915_v7, %v7767_v59  ;;  %v14063_v7 = vpack.c.bf16 %v7782_v40, %v7781_v49 }
 0x4a9   : > { %10762 = vmatmul.mubr.msk.bf16.gmra.mrb[20].mxu1 %vm6144_vm13, %v13841_v57 }
 0x4aa   : > { %10765 = vmatprep.mubr.msk.bf16.mxu1 %vm6144_vm13, %v13878_v17 }
 0x4ab   : > { %10916 = vmatmul.mubr.msk.bf16.gmra.mrb[4].mxu0 %vm6144_vm13, %v13875_v15 }
 0x4ac   : > { %10919 = vmatprep.mubr.msk.bf16.mxu0 %vm6144_vm13, %v13880_v53 }
 0x4b1   : > { %10766 = vmatmul.mubr.msk.bf16.gmra.mrb[24].mxu1 %vm6144_vm13, %v13890_v60 }
 0x4b2   : > { %10769 = vmatprep.mubr.msk.bf16.mxu1 %vm6144_vm13, %v13894_v42 }
 0x4b3   : > { %10920 = vmatmul.mubr.msk.bf16.gmra.mrb[8].mxu0 %vm6144_vm13, %v13892_v11 }
 0x4b4   : > { %10923 = vmatprep.mubr.msk.bf16.mxu0 %vm6144_vm13, %v13896_v43 }
 0x4b9   : > { %10770 = vmatmul.mubr.msk.bf16.gmra.mrb[28].mxu1 %vm6144_vm13, %v13906_v0 }
 0x4ba   : > { %10775 = vmatprep.mubr.msk.bf16.mxu1 %vm6144_vm13, %v6076_v8 }
 0x4bb   : > { %10924 = vmatmul.mubr.msk.bf16.gmra.mrb[12].mxu0 %vm6144_vm13, %v13908_v24 }
 0x4bc   : > { %10927 = vmatprep.mubr.msk.bf16.mxu0 %vm6144_vm13, %v13911_v28 }
 0x4c1   : > { %10776 = vmatmul.mubr.msk.bf16.vlgmr.msra.gmra.mrb[0].mxu1 %vm6144_vm13, %v13793_v48 }
 0x4c2   : > { %10808 = vmatpush3.bf16.msra.mxu1 %v6670_v16  ;;  %10779 = vmatprep.mubr.msk.bf16.mxu1 %vm6144_vm13, %v13800_v18  ;;  %v8440_v16 = vsel %vm6193_vm12, %v9519_v56, 0 }
 0x4c3   : > { %10928 = vmatmul.mubr.msk.bf16.gmra.mrb[16].mxu0 %vm6144_vm13, %v13925_v44  ;;  %11842 = vmatprep.subr.msk.bf16.mxu1 %vm6193_vm12, %v9434_v19 }
 0x4c4   : > { %10931 = vmatprep.mubr.msk.bf16.mxu0 %vm6144_vm13, %v13929_v35 }
 0x4c9   : > { %10780 = vmatmul.mubr.msk.bf16.gmra.mrb[4].mxu1 %vm6144_vm13, %v13805_v10 }
 0x4ca   : > { %10783 = vmatprep.mubr.msk.bf16.mxu1 %vm6144_vm13, %v13950_v9 }
 0x4cb   : > { %10932 = vmatmul.mubr.msk.bf16.gmra.mrb[20].mxu0 %vm6144_vm13, %v13947_v32 }
 0x4cc   : > { %10935 = vmatprep.mubr.msk.bf16.mxu0 %vm6144_vm13, %v13952_v27 }
 0x4d1   : > { %10784 = vmatmul.mubr.msk.bf16.gmra.mrb[8].mxu1 %vm6144_vm13, %v13844_v38 }
 0x4d2   : > { %10787 = vmatprep.mubr.msk.bf16.mxu1 %vm6144_vm13, %v13853_v22 }
 0x4d3   : > { %10936 = vmatmul.mubr.msk.bf16.gmra.mrb[24].mxu0 %vm6144_vm13, %v13964_v36 }
 0x4d4   : > { %10939 = vmatprep.mubr.msk.bf16.mxu0 %vm6144_vm13, %v13966_v51 }
 0x4d9   : > { %10788 = vmatmul.mubr.msk.bf16.gmra.mrb[12].mxu1 %vm6144_vm13, %v13855_v55 }
 0x4da   : > { %10791 = vmatprep.mubr.msk.bf16.mxu1 %vm6144_vm13, %v13979_v47 }
 0x4db   : > { %10940 = vmatmul.mubr.msk.bf16.gmra.mrb[28].mxu0 %vm6144_vm13, %v13976_v63 }
 0x4dc   : > { %10945 = vmatprep.mubr.msk.bf16.mxu0 %vm6144_vm13, %v13979_v47 }
 0x4e1   : > { %10792 = vmatmul.mubr.msk.bf16.gmra.mrb[16].mxu1 %vm6144_vm13, %v13880_v53 }
 0x4e2   : > { %10795 = vmatprep.mubr.msk.bf16.mxu1 %vm6144_vm13, %v13892_v11 }
 0x4e3   : > { %10946 = vmatmul.mubr.msk.bf16.vlgmr.msra.gmra.mrb[0].mxu0 %vm6144_vm13, %v13880_v53 }
 0x4e4   : > { %10978 = vmatpush3.bf16.msra.mxu0 %v8145_v31  ;;  %10949 = vmatprep.mubr.msk.bf16.mxu0 %vm6144_vm13, %v13892_v11 }
 0x4e5   : > { %11848 = vmatprep.subr.msk.bf16.mxu0 %vm6193_vm12, %v9519_v56 }
 0x4e9   : > { %10796 = vmatmul.mubr.msk.bf16.gmra.mrb[20].mxu1 %vm6144_vm13, %v13896_v43 }
 0x4ea   : > { %10799 = vmatprep.mubr.msk.bf16.mxu1 %vm6144_vm13, %v14004_v4 }
 0x4eb   : > { %10950 = vmatmul.mubr.msk.bf16.gmra.mrb[4].mxu0 %vm6144_vm13, %v13896_v43 }
 0x4ec   : > { %10953 = vmatprep.mubr.msk.bf16.mxu0 %vm6144_vm13, %v14004_v4 }
 0x4f1   : > { %10800 = vmatmul.mubr.msk.bf16.gmra.mrb[24].mxu1 %vm6144_vm13, %v13911_v28 }
 0x4f2   : > { %10803 = vmatprep.mubr.msk.bf16.mxu1 %vm6144_vm13, %v13925_v44 }
 0x4f3   : > { %10954 = vmatmul.mubr.msk.bf16.gmra.mrb[8].mxu0 %vm6144_vm13, %v13911_v28 }
 0x4f4   : > { %10957 = vmatprep.mubr.msk.bf16.mxu0 %vm6144_vm13, %v13925_v44 }
 0x4f9   : > { %10804 = vmatmul.mubr.msk.bf16.gmra.mrb[28].mxu1 %vm6144_vm13, %v13929_v35 }
 0x4fa   : > { %10809 = vmatprep.mubr.msk.bf16.mxu1 %vm6144_vm13, %v13793_v48  ;;  %v7775_v48 = vld [vmem:[#allocation2 + $0x321] sm:$0xff] }
 0x4fb   : > { %10958 = vmatmul.mubr.msk.bf16.gmra.mrb[12].mxu0 %vm6144_vm13, %v13929_v35  ;;  %v7795_v37 = vpack.c.bf16 %v7776_v21, %v7775_v48 }
 0x4fc   : > { %10961 = vmatprep.mubr.msk.bf16.mxu0 %vm6144_vm13, %v14023_v45 }
 0x501   : > { %10810 = vmatmul.mubr.msk.bf16.vlgmr.msra.gmra.mrb[0].mxu1 %vm6144_vm13, %v13800_v18  ;;  %v7777_v18 = vld [vmem:[#allocation2 + $0x341] sm:$0xff] }
 0x502   : > { %10842 = vmatpush3.bf16.msra.mxu1 %v6965_v39  ;;  %10813 = vmatprep.mubr.msk.bf16.mxu1 %vm6144_vm13, %v13805_v10  ;;  %v7778_v10 = vld [vmem:[#allocation2 + $0x351] sm:$0xff] }
 0x503   : > { %10962 = vmatmul.mubr.msk.bf16.gmra.mrb[16].mxu0 %vm6144_vm13, %v13952_v27  ;;  %11844 = vmatprep.subr.msk.bf16.mxu1 %vm6193_vm12, %v13765_v2  ;;  %v14051_v8 = vpack.c.bf16 %v7778_v10, %v7777_v18  ;;  %v14053_v2 = vpack.c.bf16 %v7780_v62, %v7779_v61 }
 0x504   : > { %10965 = vmatprep.mubr.msk.bf16.mxu0 %vm6144_vm13, %v13964_v36 }
 0x509   : > { %10814 = vmatmul.mubr.msk.bf16.gmra.mrb[4].mxu1 %vm6144_vm13, %v6606_v6 }
 0x50a   : > { %10817 = vmatprep.mubr.msk.bf16.mxu1 %vm6144_vm13, %v13844_v38 }
 0x50b   : > { %10966 = vmatmul.mubr.msk.bf16.gmra.mrb[20].mxu0 %vm6144_vm13, %v13966_v51 }
 0x50c   : > { %10969 = vmatprep.mubr.msk.bf16.mxu0 %vm6144_vm13, %v7795_v37 }
 0x511   : > { %10818 = vmatmul.mubr.msk.bf16.gmra.mrb[8].mxu1 %vm6144_vm13, %v13853_v22 }
 0x512   : > { %10821 = vmatprep.mubr.msk.bf16.mxu1 %vm6144_vm13, %v13855_v55 }
 0x513   : > { %10970 = vmatmul.mubr.msk.bf16.gmra.mrb[24].mxu0 %vm6144_vm13, %v14051_v8 }
 0x514   : > { %10973 = vmatprep.mubr.msk.bf16.mxu0 %vm6144_vm13, %v14053_v2 }
 0x519   : > { %10822 = vmatmul.mubr.msk.bf16.gmra.mrb[12].mxu1 %vm6144_vm13, %v13875_v15 }
 0x51a   : > { %10825 = vmatprep.mubr.msk.bf16.mxu1 %vm6144_vm13, %v13880_v53 }
 0x51b   : > { %10974 = vmatmul.mubr.msk.bf16.gmra.mrb[28].mxu0 %vm6144_vm13, %v14063_v7 }
 0x51c   : > { %10979 = vmatprep.mubr.msk.bf16.mxu0 %vm6144_vm13, %v13817_v34  ;;  %v8090_v34 = vpack.c.bf16 %v7777_v18, %v7776_v21 }
 0x521   : > { %10826 = vmatmul.mubr.msk.bf16.gmra.mrb[16].mxu1 %vm6144_vm13, %v13892_v11 }
 0x522   : > { %10829 = vmatprep.mubr.msk.bf16.mxu1 %vm6144_vm13, %v13896_v43 }
 0x523   : > { %10980 = vmatmul.mubr.msk.bf16.vlgmr.msra.gmra.mrb[0].mxu0 %vm6144_vm13, %v13831_v23  ;;  %v8091_v23 = vpack.c.bf16 %v7779_v61, %v7778_v10 }
 0x524   : > { %11012 = vmatpush3.bf16.msra.mxu0 %v8440_v16  ;;  %10983 = vmatprep.mubr.msk.bf16.mxu0 %vm6144_vm13, %v13833_v25  ;;  %v8077_v25 = vld [vmem:[#allocation2 + $0x3a1] sm:$0xff] }
 0x529   : > { %10830 = vmatmul.mubr.msk.bf16.gmra.mrb[20].mxu1 %vm6144_vm13, %v13908_v24 }
 0x52a   : > { %10833 = vmatprep.mubr.msk.bf16.mxu1 %vm6144_vm13, %v13911_v28 }
 0x52b   : > { %10984 = vmatmul.mubr.msk.bf16.gmra.mrb[4].mxu0 %vm6144_vm13, %v13841_v57  ;;  %v8093_v57 = vpack.c.bf16 %v8077_v25, %v7782_v40 }
 0x52c   : > { %10987 = vmatprep.mubr.msk.bf16.mxu0 %vm6144_vm13, %v13878_v17 }
 0x531   : > { %10834 = vmatmul.mubr.msk.bf16.gmra.mrb[24].mxu1 %vm6144_vm13, %v13925_v44 }
 0x532   : > { %10837 = vmatprep.mubr.msk.bf16.mxu1 %vm6144_vm13, %v13929_v35 }
 0x533   : > { %10988 = vmatmul.mubr.msk.bf16.gmra.mrb[8].mxu0 %vm6144_vm13, %v13890_v60 }
 0x534   : > { %10991 = vmatprep.mubr.msk.bf16.mxu0 %vm6144_vm13, %v13894_v42 }
 0x539   : > { %10838 = vmatmul.mubr.msk.bf16.gmra.mrb[28].mxu1 %vm6144_vm13, %v13947_v32 }
 0x53a   : > { %10843 = vmatprep.mubr.msk.bf16.mxu1 %vm6144_vm13, %v13950_v9 }
 0x53b   : > { %10992 = vmatmul.mubr.msk.bf16.gmra.mrb[12].mxu0 %vm6144_vm13, %v13906_v0 }
 0x53c   : > { %10995 = vmatprep.mubr.msk.bf16.mxu0 %vm6144_vm13, %v13921_v52 }
 0x541   : > { %10844 = vmatmul.mubr.msk.bf16.vlgmr.msra.gmra.mrb[0].mxu1 %vm6144_vm13, %v13844_v38  ;;  %v8372_v38 = vld [vmem:[#allocation2 + $0x3b1] sm:$0xff] }
 0x542   : > { %11562 = vmatpush3.bf16.msra.mxu1 %v13775_v13  ;;  %10847 = vmatprep.mubr.msk.bf16.mxu1 %vm6144_vm13, %v13853_v22  ;;  %v8092_v13 = vpack.c.bf16 %v7781_v49, %v7780_v62  ;;  %v8388_v22 = vpack.c.bf16 %v8372_v38, %v8077_v25 }
 0x543   : > { %10996 = vmatmul.mubr.msk.bf16.gmra.mrb[16].mxu0 %vm6144_vm13, %v13931_v1 }
 0x544   : > { %10999 = vmatprep.mubr.msk.bf16.mxu0 %vm6144_vm13, %v13944_v33 }
 0x549   : > { %10848 = vmatmul.mubr.msk.bf16.gmra.mrb[4].mxu1 %vm6144_vm13, %v13855_v55 }
 0x54a   : > { %10851 = vmatprep.mubr.msk.bf16.mxu1 %vm6144_vm13, %v13979_v47 }
 0x54b   : > { %11000 = vmatmul.mubr.msk.bf16.gmra.mrb[20].mxu0 %vm6144_vm13, %v13954_v29 }
 0x54c   : > { %11003 = vmatprep.mubr.msk.bf16.mxu0 %vm6144_vm13, %v8090_v34 }
 0x551   : > { %10852 = vmatmul.mubr.msk.bf16.gmra.mrb[8].mxu1 %vm6144_vm13, %v13880_v53 }
 0x552   : > { %10855 = vmatprep.mubr.msk.bf16.mxu1 %vm6144_vm13, %v13892_v11 }
 0x553   : > { %11004 = vmatmul.mubr.msk.bf16.gmra.mrb[24].mxu0 %vm6144_vm13, %v8091_v23 }
 0x554   : > { %11007 = vmatprep.mubr.msk.bf16.mxu0 %vm6144_vm13, %v8092_v13 }
 0x559   : > { %10856 = vmatmul.mubr.msk.bf16.gmra.mrb[12].mxu1 %vm6144_vm13, %v13896_v43 }
 0x55a   : > { %10859 = vmatprep.mubr.msk.bf16.mxu1 %vm6144_vm13, %v14004_v4 }
 0x55b   : > { %11008 = vmatmul.mubr.msk.bf16.gmra.mrb[28].mxu0 %vm6144_vm13, %v8093_v57 }
 0x55c   : > { %11013 = vmatprep.mubr.msk.bf16.mxu0 %vm6144_vm13, %v13880_v53 }
 0x561   : > { %10860 = vmatmul.mubr.msk.bf16.gmra.mrb[16].mxu1 %vm6144_vm13, %v13911_v28 }
 0x562   : > { %10863 = vmatprep.mubr.msk.bf16.mxu1 %vm6144_vm13, %v13925_v44 }
 0x563   : > { %11014 = vmatmul.mubr.msk.bf16.vlgmr.msra.gmra.mrb[0].mxu0 %vm6144_vm13, %v13892_v11 }
 0x564   : > { %11017 = vmatprep.mubr.msk.bf16.mxu0 %vm6144_vm13, %v13896_v43 }
 0x569   : > { %10864 = vmatmul.mubr.msk.bf16.gmra.mrb[20].mxu1 %vm6144_vm13, %v13929_v35 }
 0x56a   : > { %10867 = vmatprep.mubr.msk.bf16.mxu1 %vm6144_vm13, %v14023_v45 }
 0x56b   : > { %11018 = vmatmul.mubr.msk.bf16.gmra.mrb[4].mxu0 %vm6144_vm13, %v13908_v24 }
 0x56c   : > { %11021 = vmatprep.mubr.msk.bf16.mxu0 %vm6144_vm13, %v13911_v28 }
 0x571   : > { %10868 = vmatmul.mubr.msk.bf16.gmra.mrb[24].mxu1 %vm6144_vm13, %v13952_v27 }
 0x572   : > { %10871 = vmatprep.mubr.msk.bf16.mxu1 %vm6144_vm13, %v13964_v36 }
 0x573   : > { %11022 = vmatmul.mubr.msk.bf16.gmra.mrb[8].mxu0 %vm6144_vm13, %v13925_v44 }
 0x574   : > { %11025 = vmatprep.mubr.msk.bf16.mxu0 %vm6144_vm13, %v13929_v35 }
 0x579   : > { %10872 = vmatmul.mubr.msk.bf16.gmra.mrb[28].mxu1 %vm6144_vm13, %v13966_v51 }
 0x57a   : > { %10893 = vmatprep.mubr.msk.bf16.mxu1 %vm6144_vm13, %v13878_v17 }
 0x57b   : > { %11026 = vmatmul.mubr.msk.bf16.gmra.mrb[12].mxu0 %vm6144_vm13, %v13947_v32 }
 0x57c   : > { %11029 = vmatprep.mubr.msk.bf16.mxu0 %vm6144_vm13, %v13952_v27 }
 0x581   : > { %10894 = vmatmul.mubr.msk.bf16.vlgmr.msra.gmra.mrb[16].mxu1 %vm6144_vm13, %v13890_v60 }
 0x582   : > { %10897 = vmatprep.mubr.msk.bf16.mxu1 %vm6144_vm13, %v13894_v42 }
 0x583   : > { %11030 = vmatmul.mubr.msk.bf16.gmra.mrb[16].mxu0 %vm6144_vm13, %v13964_v36 }
 0x584   : > { %11033 = vmatprep.mubr.msk.bf16.mxu0 %vm6144_vm13, %v13966_v51 }
 0x589   : > { %10898 = vmatmul.mubr.msk.bf16.gmra.mrb[20].mxu1 %vm6144_vm13, %v13906_v0 }
 0x58a   : > { %10901 = vmatprep.mubr.msk.bf16.mxu1 %vm6144_vm13, %v13921_v52 }
 0x58b   : > { %11034 = vmatmul.mubr.msk.bf16.gmra.mrb[20].mxu0 %vm6144_vm13, %v13976_v63 }
 0x58c   : > { %11037 = vmatprep.mubr.msk.bf16.mxu0 %vm6144_vm13, %v14051_v8 }
 0x591   : > { %10902 = vmatmul.mubr.msk.bf16.gmra.mrb[24].mxu1 %vm6144_vm13, %v13931_v1 }
 0x592   : > { %10905 = vmatprep.mubr.msk.bf16.mxu1 %vm6144_vm13, %v13944_v33 }
 0x593   : > { %11038 = vmatmul.mubr.msk.bf16.gmra.mrb[24].mxu0 %vm6144_vm13, %v14053_v2 }
 0x594   : > { %11041 = vmatprep.mubr.msk.bf16.mxu0 %vm6144_vm13, %v14063_v7 }
 0x599   : > { %10906 = vmatmul.mubr.msk.bf16.gmra.mrb[28].mxu1 %vm6144_vm13, %v13954_v29 }
 0x59b   : > { %11042 = vmatmul.mubr.msk.bf16.gmra.mrb[28].mxu0 %vm6144_vm13, %v8388_v22 }
 0x614   : > { %v10845_v55 = vpop.f32.mrb[0].mxu1 }
 0x615   : > { %v7001_v15 = vpop.f32.mrb[1].mxu1 }
 0x616   : > { %v10846_v17 = vpop.f32.mrb[2].mxu1 }
 0x617   : > { %v7004_v53 = vpop.f32.mrb[3].mxu1 }
 0x61c   : > { %v10849_v60 = vpop.f32.mrb[4].mxu1 }
 0x61d   : > { %v7017_v11 = vpop.f32.mrb[5].mxu1 }
 0x61e   : > { %v10850_v42 = vpop.f32.mrb[6].mxu1 }
 0x61f   : > { %v7020_v43 = vpop.f32.mrb[7].mxu1 }
 0x624   : > { %v10853_v0 = vpop.f32.mrb[8].mxu1 }
 0x625   : > { %v7033_v24 = vpop.f32.mrb[9].mxu1 }
 0x626   : > { %v10854_v28 = vpop.f32.mrb[10].mxu1 }
 0x627   : > { %v14194_v52 = vpop.f32.mrb[11].mxu1 }
 0x62c   : > { %v14196_v44 = vpop.f32.mrb[12].mxu1 }
 0x62d   : > { %v14198_v35 = vpop.f32.mrb[13].mxu1 }
 0x62e   : > { %v14200_v30 = vpop.f32.mrb[14].mxu1 }
 0x62f   : > { %v14202_v5 = vpop.f32.mrb[15].mxu1 }
 0x636   : > { %v11015_v1 = vpop.f32.mrb[0].mxu0 }
 0x637   : > { %v11563_v19 = vadd.f32 %v11015_v1, %v10845_v55  ;;  %v8476_v50 = vpop.f32.mrb[1].mxu0 }
 0x638   : > { %v11564_v20 = vadd.f32 %v8476_v50, %v7001_v15  ;;  %v11016_v26 = vpop.f32.mrb[2].mxu0 }
 0x639   : > { %v9638_v3 = vpack.c.bf16 %v11563_v19, %v11563_v19  ;;  %v11565_v33 = vadd.f32 %v11016_v26, %v10846_v17  ;;  %v8479_v32 = vpop.f32.mrb[3].mxu0  ;;  %v8799_v14 = vsel %vm8796_vm15, %v11563_v19, -inf }
 0x63a   : > { %v9636_v9 = vpack.c.bf16 %v11564_v20, %v11564_v20  ;;  %v11566_v27 = vadd.f32 %v8479_v32, %v7004_v53  ;;  %v8797_v47 = vsel %vm8796_vm15, %v11564_v20, -inf }
 0x63b   : > { %8766 = vst.msk [vmem:[%s12125_s29 + $0x8] sm:$0xf] %vm8763_vm14, %v9638_v3  ;;  %v9639_v46 = vpack.c.bf16 %v11565_v33, %v11565_v33  ;;  %v8800_v48 = vsel %vm8796_vm15, %v11565_v33, -inf }
 0x63c   : > { %8764 = vst.msk [vmem:[%s12125_s29] sm:$0xf] %vm8763_vm14, %v9636_v9  ;;  %v9637_v58 = vpack.c.bf16 %v11566_v27, %v11566_v27  ;;  %v8798_v18 = vsel %vm8796_vm15, %v11566_v27, -inf }
 0x63d   : > { %8767 = vst.msk [vmem:[%s12125_s29 + $0xc] sm:$0xf] %vm8763_vm14, %v9639_v46 }
 0x63e   : > { %8765 = vst.msk [vmem:[%s12125_s29 + $0x4] sm:$0xf] %vm8763_vm14, %v9637_v58  ;;  %v11019_v29 = vpop.f32.mrb[4].mxu0 }
 0x63f   : > { %v11567_v36 = vadd.f32 %v11019_v29, %v10849_v60  ;;  %v8492_v51 = vpop.f32.mrb[5].mxu0 }
 0x640   : > { %v11568_v41 = vadd.f32 %v8492_v51, %v7017_v11  ;;  %v11020_v63 = vpop.f32.mrb[6].mxu0 }
 0x641   : > { %v9642_v31 = vpack.c.bf16 %v11567_v36, %v11567_v36  ;;  %v8805_v56 = vsel %vm8796_vm15, %v11567_v36, -inf  ;;  %v11569_v54 = vadd.f32 %v11020_v63, %v10850_v42  ;;  %v8495_v4 = vpop.f32.mrb[7].mxu0 }
 0x642   : > { %v8806_v59 = vmax.f32 %v8799_v14, %v8805_v56  ;;  %v9640_v45 = vpack.c.bf16 %v11568_v41, %v11568_v41  ;;  %v8801_v39 = vsel %vm8796_vm15, %v11568_v41, -inf  ;;  %v11570_v12 = vadd.f32 %v8495_v4, %v7020_v43 }
 0x643   : > { %8770 = vst.msk [vmem:[%s12125_s29 + $0x18] sm:$0xf] %vm8763_vm14, %v9642_v31  ;;  %v8802_v21 = vmax.f32 %v8797_v47, %v8801_v39  ;;  %v9643_v6 = vpack.c.bf16 %v11569_v54, %v11569_v54  ;;  %v8807_v37 = vsel %vm8796_vm15, %v11569_v54, -inf }
 0x644   : > { %8768 = vst.msk [vmem:[%s12125_s29 + $0x10] sm:$0xf] %vm8763_vm14, %v9640_v45  ;;  %v8808_v10 = vmax.f32 %v8800_v48, %v8807_v37  ;;  %v9641_v61 = vpack.c.bf16 %v11570_v12, %v11570_v12  ;;  %v8803_v62 = vsel %vm8796_vm15, %v11570_v12, -inf }
 0x645   : > { %8771 = vst.msk [vmem:[%s12125_s29 + $0x1c] sm:$0xf] %vm8763_vm14, %v9643_v6  ;;  %v8804_v8 = vmax.f32 %v8798_v18, %v8803_v62 }
 0x646   : > { %8769 = vst.msk [vmem:[%s12125_s29 + $0x14] sm:$0xf] %vm8763_vm14, %v9641_v61  ;;  %v11023_v2 = vpop.f32.mrb[8].mxu0 }
 0x647   : > { %v11571_v49 = vadd.f32 %v11023_v2, %v10853_v0  ;;  %v8508_v40 = vpop.f32.mrb[9].mxu0 }
 0x648   : > { %v11572_v7 = vadd.f32 %v8508_v40, %v7033_v24  ;;  %v11024_v16 = vpop.f32.mrb[10].mxu0 }
 0x649   : > { %v9646_v34 = vpack.c.bf16 %v11571_v49, %v11571_v49  ;;  %v8813_v23 = vsel %vm8796_vm15, %v11571_v49, -inf  ;;  %v11573_v13 = vadd.f32 %v11024_v16, %v10854_v28  ;;  %v8511_v25 = vpop.f32.mrb[11].mxu0 }
 0x64a   : > { %v8814_v57 = vmax.f32 %v8806_v59, %v8813_v23  ;;  %v9644_v38 = vpack.c.bf16 %v11572_v7, %v11572_v7  ;;  %v8809_v22 = vsel %vm8796_vm15, %v11572_v7, -inf  ;;  %v11574_v55 = vadd.f32 %v8511_v25, %v14194_v52 }
 0x64b   : > { %8774 = vst.msk [vmem:[%s12125_s29 + $0x28] sm:$0xf] %vm8763_vm14, %v9646_v34  ;;  %v8810_v15 = vmax.f32 %v8802_v21, %v8809_v22  ;;  %v9647_v17 = vpack.c.bf16 %v11573_v13, %v11573_v13  ;;  %v8815_v53 = vsel %vm8796_vm15, %v11573_v13, -inf }
 0x64c   : > { %8772 = vst.msk [vmem:[%s12125_s29 + $0x20] sm:$0xf] %vm8763_vm14, %v9644_v38  ;;  %v8816_v60 = vmax.f32 %v8808_v10, %v8815_v53  ;;  %v9645_v11 = vpack.c.bf16 %v11574_v55, %v11574_v55  ;;  %v8811_v42 = vsel %vm8796_vm15, %v11574_v55, -inf }
 0x64d   : > { %8775 = vst.msk [vmem:[%s12125_s29 + $0x2c] sm:$0xf] %vm8763_vm14, %v9647_v17  ;;  %v8812_v43 = vmax.f32 %v8804_v8, %v8811_v42 }
 0x64e   : > { %8773 = vst.msk [vmem:[%s12125_s29 + $0x24] sm:$0xf] %vm8763_vm14, %v9645_v11  ;;  %v11027_v0 = vpop.f32.mrb[12].mxu0 }
 0x64f   : > { %v11575_v24 = vadd.f32 %v11027_v0, %v14196_v44  ;;  %v8524_v28 = vpop.f32.mrb[13].mxu0 }
 0x650   : > { %v11576_v52 = vadd.f32 %v8524_v28, %v14198_v35  ;;  %v11028_v1 = vpop.f32.mrb[14].mxu0 }
 0x651   : > { %v9650_v19 = vpack.c.bf16 %v11575_v24, %v11575_v24  ;;  %v8821_v50 = vsel %vm8796_vm15, %v11575_v24, -inf  ;;  %v11577_v20 = vadd.f32 %v11028_v1, %v14200_v30  ;;  %v8527_v26 = vpop.f32.mrb[15].mxu0 }
 0x652   : > { %v8822_v3 = vmax.f32 %v8814_v57, %v8821_v50  ;;  %v9648_v33 = vpack.c.bf16 %v11576_v52, %v11576_v52  ;;  %v8817_v32 = vsel %vm8796_vm15, %v11576_v52, -inf  ;;  %v11578_v9 = vadd.f32 %v8527_v26, %v14202_v5 }
 0x653   : > { %8778 = vst.msk [vmem:[%s12125_s29 + $0x38] sm:$0xf] %vm8763_vm14, %v9650_v19  ;;  %v8818_v44 = vmax.f32 %v8810_v15, %v8817_v32  ;;  %v9651_v27 = vpack.c.bf16 %v11577_v20, %v11577_v20  ;;  %v8823_v35 = vsel %vm8796_vm15, %v11577_v20, -inf }
 0x654   : > { %8776 = vst.msk [vmem:[%s12125_s29 + $0x30] sm:$0xf] %vm8763_vm14, %v9648_v33  ;;  %v8824_v46 = vmax.f32 %v8816_v60, %v8823_v35  ;;  %v9649_v58 = vpack.c.bf16 %v11578_v9, %v11578_v9  ;;  %v8819_v30 = vsel %vm8796_vm15, %v11578_v9, -inf  ;;  %v10895_v36 = vpop.f32.mrb[16].mxu1 }
 0x655   : > { %8779 = vst.msk [vmem:[%s12125_s29 + $0x3c] sm:$0xf] %vm8763_vm14, %v9651_v27  ;;  %v8820_v29 = vmax.f32 %v8812_v43, %v8819_v30  ;;  %v7360_v5 = vpop.f32.mrb[17].mxu1 }
 0x656   : > { %8777 = vst.msk [vmem:[%s12125_s29 + $0x34] sm:$0xf] %vm8763_vm14, %v9649_v58  ;;  %v11031_v51 = vpop.f32.mrb[16].mxu0  ;;  %v10896_v63 = vpop.f32.mrb[18].mxu1 }
 0x657   : > { %v11579_v14 = vadd.f32 %v11031_v51, %v10895_v36  ;;  %v8540_v41 = vpop.f32.mrb[17].mxu0  ;;  %v7363_v56 = vpop.f32.mrb[19].mxu1 }
 0x658   : > { %v11580_v47 = vadd.f32 %v8540_v41, %v7360_v5  ;;  %v11032_v31 = vpop.f32.mrb[18].mxu0 }
 0x659   : > { %v9654_v54 = vpack.c.bf16 %v11579_v14, %v11579_v14  ;;  %v8829_v4 = vsel %vm8796_vm15, %v11579_v14, -inf  ;;  %v11581_v59 = vadd.f32 %v11032_v31, %v10896_v63  ;;  %v8543_v45 = vpop.f32.mrb[19].mxu0 }
 0x65a   : > { %v8830_v39 = vmax.f32 %v8822_v3, %v8829_v4  ;;  %v9652_v12 = vpack.c.bf16 %v11580_v47, %v11580_v47  ;;  %v8825_v48 = vsel %vm8796_vm15, %v11580_v47, -inf  ;;  %v11582_v21 = vadd.f32 %v8543_v45, %v7363_v56 }
 0x65b   : > { %8782 = vst.msk [vmem:[%s12125_s29 + $0x48] sm:$0xf] %vm8763_vm14, %v9654_v54  ;;  %v8826_v6 = vmax.f32 %v8818_v44, %v8825_v48  ;;  %v9655_v37 = vpack.c.bf16 %v11581_v59, %v11581_v59  ;;  %v8831_v18 = vsel %vm8796_vm15, %v11581_v59, -inf }
 0x65c   : > { %8780 = vst.msk [vmem:[%s12125_s29 + $0x40] sm:$0xf] %vm8763_vm14, %v9652_v12  ;;  %v8832_v10 = vmax.f32 %v8824_v46, %v8831_v18  ;;  %v9653_v61 = vpack.c.bf16 %v11582_v21, %v11582_v21  ;;  %v8827_v62 = vsel %vm8796_vm15, %v11582_v21, -inf  ;;  %v10899_v2 = vpop.f32.mrb[20].mxu1 }
 0x65d   : > { %8783 = vst.msk [vmem:[%s12125_s29 + $0x4c] sm:$0xf] %vm8763_vm14, %v9655_v37  ;;  %v8828_v8 = vmax.f32 %v8820_v29, %v8827_v62  ;;  %v7376_v40 = vpop.f32.mrb[21].mxu1 }
 0x65e   : > { %8781 = vst.msk [vmem:[%s12125_s29 + $0x44] sm:$0xf] %vm8763_vm14, %v9653_v61  ;;  %v11035_v49 = vpop.f32.mrb[20].mxu0  ;;  %v10900_v34 = vpop.f32.mrb[22].mxu1 }
 0x65f   : > { %v11583_v7 = vadd.f32 %v11035_v49, %v10899_v2  ;;  %v8556_v16 = vpop.f32.mrb[21].mxu0  ;;  %v7379_v25 = vpop.f32.mrb[23].mxu1 }
 0x660   : > { %v11584_v23 = vadd.f32 %v8556_v16, %v7376_v40  ;;  %v11036_v13 = vpop.f32.mrb[22].mxu0 }
 0x661   : > { %v9658_v57 = vpack.c.bf16 %v11583_v7, %v11583_v7  ;;  %v8837_v38 = vsel %vm8796_vm15, %v11583_v7, -inf  ;;  %v11585_v22 = vadd.f32 %v11036_v13, %v10900_v34  ;;  %v8559_v55 = vpop.f32.mrb[23].mxu0 }
 0x662   : > { %v8838_v15 = vmax.f32 %v8830_v39, %v8837_v38  ;;  %v9656_v17 = vpack.c.bf16 %v11584_v23, %v11584_v23  ;;  %v8833_v53 = vsel %vm8796_vm15, %v11584_v23, -inf  ;;  %v11586_v60 = vadd.f32 %v8559_v55, %v7379_v25 }
 0x663   : > { %8786 = vst.msk [vmem:[%s12125_s29 + $0x58] sm:$0xf] %vm8763_vm14, %v9658_v57  ;;  %v8834_v11 = vmax.f32 %v8826_v6, %v8833_v53  ;;  %v9659_v42 = vpack.c.bf16 %v11585_v22, %v11585_v22  ;;  %v8839_v43 = vsel %vm8796_vm15, %v11585_v22, -inf }
 0x664   : > { %8784 = vst.msk [vmem:[%s12125_s29 + $0x50] sm:$0xf] %vm8763_vm14, %v9656_v17  ;;  %v8840_v0 = vmax.f32 %v8832_v10, %v8839_v43  ;;  %v9657_v24 = vpack.c.bf16 %v11586_v60, %v11586_v60  ;;  %v8835_v28 = vsel %vm8796_vm15, %v11586_v60, -inf  ;;  %v10903_v1 = vpop.f32.mrb[24].mxu1 }
 0x665   : > { %8787 = vst.msk [vmem:[%s12125_s29 + $0x5c] sm:$0xf] %vm8763_vm14, %v9659_v42  ;;  %v8836_v52 = vmax.f32 %v8828_v8, %v8835_v28  ;;  %v7392_v50 = vpop.f32.mrb[25].mxu1 }
 0x666   : > { %8785 = vst.msk [vmem:[%s12125_s29 + $0x54] sm:$0xf] %vm8763_vm14, %v9657_v24  ;;  %v11039_v19 = vpop.f32.mrb[24].mxu0  ;;  %v10904_v3 = vpop.f32.mrb[26].mxu1 }
 0x667   : > { %v11587_v20 = vadd.f32 %v11039_v19, %v10903_v1  ;;  %v8572_v26 = vpop.f32.mrb[25].mxu0  ;;  %v7395_v9 = vpop.f32.mrb[27].mxu1 }
 0x668   : > { %v11588_v33 = vadd.f32 %v8572_v26, %v7392_v50  ;;  %v11040_v32 = vpop.f32.mrb[26].mxu0 }
 0x669   : > { %v9662_v44 = vpack.c.bf16 %v11587_v20, %v11587_v20  ;;  %v8845_v27 = vsel %vm8796_vm15, %v11587_v20, -inf  ;;  %v11589_v35 = vadd.f32 %v11040_v32, %v10904_v3  ;;  %v8575_v46 = vpop.f32.mrb[27].mxu0 }
 0x66a   : > { %v8846_v58 = vmax.f32 %v8838_v15, %v8845_v27  ;;  %v9660_v30 = vpack.c.bf16 %v11588_v33, %v11588_v33  ;;  %v8841_v29 = vsel %vm8796_vm15, %v11588_v33, -inf  ;;  %v11590_v36 = vadd.f32 %v8575_v46, %v7395_v9 }
 0x66b   : > { %8790 = vst.msk [vmem:[%s12125_s29 + $0x68] sm:$0xf] %vm8763_vm14, %v9662_v44  ;;  %v8842_v51 = vmax.f32 %v8834_v11, %v8841_v29  ;;  %v9663_v5 = vpack.c.bf16 %v11589_v35, %v11589_v35  ;;  %v8847_v14 = vsel %vm8796_vm15, %v11589_v35, -inf }
 0x66c   : > { %8788 = vst.msk [vmem:[%s12125_s29 + $0x60] sm:$0xf] %vm8763_vm14, %v9660_v30  ;;  %v8848_v41 = vmax.f32 %v8840_v0, %v8847_v14  ;;  %v9661_v63 = vpack.c.bf16 %v11590_v36, %v11590_v36  ;;  %v8843_v47 = vsel %vm8796_vm15, %v11590_v36, -inf  ;;  %v10907_v56 = vpop.f32.mrb[28].mxu1 }
 0x66d   : > { %8791 = vst.msk [vmem:[%s12125_s29 + $0x6c] sm:$0xf] %vm8763_vm14, %v9663_v5  ;;  %v8844_v31 = vmax.f32 %v8836_v52, %v8843_v47  ;;  %v7408_v4 = vpop.f32.mrb[29].mxu1 }
 0x66e   : > { %8789 = vst.msk [vmem:[%s12125_s29 + $0x64] sm:$0xf] %vm8763_vm14, %v9661_v63  ;;  %v11043_v54 = vpop.f32.mrb[28].mxu0  ;;  %v10908_v39 = vpop.f32.mrb[30].mxu1 }
 0x66f   : > { %v11591_v59 = vadd.f32 %v11043_v54, %v10907_v56  ;;  %v8588_v45 = vpop.f32.mrb[29].mxu0  ;;  %v7411_v21 = vpop.f32.mrb[31].mxu1 }
 0x670   : > { %v11592_v12 = vadd.f32 %v8588_v45, %v7408_v4  ;;  %v11044_v48 = vpop.f32.mrb[30].mxu0 }
 0x671   : > { %v9666_v6 = vpack.c.bf16 %v11591_v59, %v11591_v59  ;;  %v8853_v37 = vsel %vm8796_vm15, %v11591_v59, -inf  ;;  %v11593_v18 = vadd.f32 %v11044_v48, %v10908_v39  ;;  %v8591_v10 = vpop.f32.mrb[31].mxu0 }
 0x672   : > { %v8854_v61 = vmax.f32 %v8846_v58, %v8853_v37  ;;  %v9664_v62 = vpack.c.bf16 %v11592_v12, %v11592_v12  ;;  %v8849_v8 = vsel %vm8796_vm15, %v11592_v12, -inf  ;;  %v11594_v2 = vadd.f32 %v8591_v10, %v7411_v21 }
 0x673   : > { %8794 = vst.msk [vmem:[%s12125_s29 + $0x78] sm:$0xf] %vm8763_vm14, %v9666_v6  ;;  %v8850_v49 = vmax.f32 %v8842_v51, %v8849_v8  ;;  %v9667_v40 = vpack.c.bf16 %v11593_v18, %v11593_v18  ;;  %v8855_v7 = vsel %vm8796_vm15, %v11593_v18, -inf }
 0x674   : > { %8792 = vst.msk [vmem:[%s12125_s29 + $0x70] sm:$0xf] %vm8763_vm14, %v9664_v62  ;;  %v8856_v16 = vmax.f32 %v8848_v41, %v8855_v7  ;;  %v9665_v34 = vpack.c.bf16 %v11594_v2, %v11594_v2  ;;  %v8851_v23 = vsel %vm8796_vm15, %v11594_v2, -inf }
 0x675   : > { %8795 = vst.msk [vmem:[%s12125_s29 + $0x7c] sm:$0xf] %vm8763_vm14, %v9667_v40  ;;  %v8852_v13 = vmax.f32 %v8844_v31, %v8851_v23 }
 0x676   : > { %v8858_v25 = vmax.f32 %v8854_v61, %v8856_v16  ;;  %8793 = vst.msk [vmem:[%s12125_s29 + $0x74] sm:$0xf] %vm8763_vm14, %v9665_v34 }
 0x677   : > { %v8857_v57 = vmax.f32 %v8850_v49, %v8852_v13 }
 0x679   : > { %v8859_v38 = vmax.f32 %v8857_v57, %v8858_v25 }
 0x67b   : > { %v8860_v22 = vrot.slane %v8859_v38, 4 }
 0x67d   : > { %v8861_v55 = vmax.f32 %v8859_v38, %v8860_v22 }
 0x67f   : > { %v8862_v15 = vrot.slane %v8861_v55, 2 }
 0x681   : > { %v8863_v17 = vmax.f32 %v8861_v55, %v8862_v15 }
 0x683   : > { %v8864_v53 = vrot.slane %v8863_v17, 1 }
 0x685   : > { %v8865_v60 = vmax.f32 %v8863_v17, %v8864_v53 }
 0x687   : > { %8867 = vst.msk [vmem:[%s12129_s23] sm:$0x1] %vm8866_vm0, %v8865_v60 }
 0x688 PF: > { %s11850_s6 = smul.u32 3, %s12005_s16  ;;  %s8895_s7 = sshll.u32 %s12129_s23, 4  ;;  %s14309_s7 = int_to_ptr.vmem [resolvable:$true] %s8895_s7 }
 0x689   : > { %s8878_s20 = scalar_lea.sflag [#allocation4], %s189_s4  ;;  %s11923_s21 = scalar_lea.vmem %s14309_s7, 16 }
 0x68a   : > { %s8891_s22 = sadd.s32 %s12001_s15, %s11850_s6  ;;  %p11924_p4 = scmp.ne.s32.totalorder %s14309_s7, %s11923_s21 }
 0x68b   : > { %s9568_s29 = sshll.u32 %s8891_s22, 4  ;;  %s12020_s16 = smov [#allocation3]  }
 0x68c   : > { %s8893_s10 = scalar_lea.hbm %s14363_s3, %s9568_s29  ;;  %p11925_p5 = pnand %p11924_p4, %p12092_p3 }
 0x68d   : > { %s11927_s23 = sshll.u32 %s12020_s16, 4  ;;  %s11928_s23 = int_to_ptr.vmem [resolvable:$false] %s11927_s23 }
 0x68e   : > { %p11926_p6 = pneg %p11925_p5  ;;  %s11929_s15 = scalar_lea.vmem %s11928_s23, 32 }
 0x68f   : > { %p11930_p7 = scmp.lt.s32.totalorder %s14309_s7, %s11928_s23  ;;  %p11931_p9 = scmp.lt.s32.totalorder %s11929_s15, %s11923_s21 }
 0x691   : > { %p11932_p10 = por %p11931_p9, %p11930_p7 }
 0x693   : > { %p11933_p11 = pnand %p11932_p10, %p11926_p6 }
 0x695   : > { %11936 = shalt.err (!%p11933_p11)
}
 0x696   : > { %s11937_s24 = scalar_lea.hbm %s8893_s10, 16  ;;  %s11941_s11 = scalar_lea.hbm %s14363_s3, 96 }
 0x697   : > { %p11938_p12 = scmp.ne.s32.totalorder %s8893_s10, %s11937_s24  ;;  %p11942_p1 = scmp.lt.u32.totalorder %s8893_s10, %s14363_s3 }
 0x698   : > { %p11943_p2 = scmp.lt.u32.totalorder %s11941_s11, %s11937_s24  ;;  %p11945_p5 = scmp.lt.u32.totalorder %s11937_s24, %s8893_s10 }
 0x699   : > { %p11939_p13 = pnand %p11938_p12, %p12092_p3 }
 0x69a   : > { %p11944_p4 = por %p11943_p2, %p11942_p1 }
 0x69b   : > { %p11940_p0 = pneg %p11939_p13 }
 0x69c   : > { %p11946_p7 = por %p11945_p5, %p11944_p4 }
 0x69e   : > { %p11947_p6 = pnand %p11946_p7, %p11940_p0 }
 0x6a0   : > { %11950 = shalt.err (!%p11947_p6)
}
 0x6a1   : > { %11851 = dma.vmem_to_hbm [thread:$0]  (%p12092_p3), %s14309_s7, 16, %s8893_s10, %s8878_s20  }
 0x6a2 PF: > { %p11857_p9 = scmp.ge.s32.totalorder %s12017_s19, 2  ;;  %s8919_s6 = sand.u32 1, %s11989_s12  }
 0x6a3   : > { %s8920_s22 = scalar_lea.sflag [#allocation4], %s8919_s6 }
 0x6a4   : > { %p11854_p10 = pnand %p11857_p9, %p12101_p8 }
 0x6a6   : > { %11984 = dma.done.wait (!%p11854_p10), %s8920_s22, 16  }
 0x6a7   : > { %11986 = vsyncadd (!%p11854_p10), %s8920_s22, 4294967280  ;;  %s17_s19 = sadd.s32 1, %s12017_s19   ;;  %s14467_s25 = sld [smem:[#allocation6_spill]] }
 0x6a8   : > { %p14_p11 = scmp.ge.s32.totalorder %s17_s19, 8   ;;  %s14468_s7 = sld [smem:[#allocation7_spill]] }
 0x6a9   : > { %s14469_s12 = smov %s11993_s13  ;;  %s14470_s13 = smov %s11997_s14 }
 0x6aa   : > { %s14471_s14 = smov %s12110_s30  ;;  %s14472_s15 = smov %s12009_s17 }
 0x6ab   : > { %s14473_s16 = smov %s12013_s18  ;;  %16 = sbr.rel (!%p14_p11) target bundleno = 5 (0x5), region = 127 }
 0x6ad   : > { %s14474_s17 = smov %s14467_s25 }
 0x6ae   : > { %s14475_s18 = smov %s14468_s7 }
 0x6b2   :  { %8924 = vsyncpa [#allocation4], 1 }
 0x6b3   :  { %8926 = vsyncpa [#allocation4 + $0x1], 1 }

</bundles_post_ra>
